<compile_context>
chip_gen: v6e
topology: v6e:2x2x1
jax: 0.10.0
libtpu: 0.0.40
codegen_flags: <defaults>
</compile_context>

<pallas_src>
import math

import jax
import jax.numpy as jnp
from jax import lax
from jax.experimental import pallas as pl
from jax.experimental.pallas import tpu as pltpu


def _round_up(x, m):
    return -(-x // m) * m


_VMEM_LIMIT_BYTES = 52 * 1024 * 1024    # < v7x 64 MiB physical, > default scoped limits
_VMEM_BUDGET_BYTES = 40 * 1024 * 1024   # headroom for tile selection


# ----------------------------------------------------------------------------
# Pallas kernel: fused bidirectional single-layer LSTM recurrence.
#   gx_ref : (L, Bt, 8H)  pre-projected gates (x@W_ih + b), time-major; gate
#                         blocks interleaved by direction:
#                         [i_f, i_b, f_f, f_b, g_f, g_b, o_f, o_b]
#                         (forward stream uses x[t], backward stream x[L-1-t])
#   whh_ref: (2H, 8H)     block-diagonal fused hidden->gate weights (same layout)
#   y_ref  : (L, Bt, 2H)  output: lanes 0:H forward, H:2H backward (per step)
# ----------------------------------------------------------------------------
def bilstm_kernel(gx_ref, whh_ref, y_ref):
    L, Bt, H8 = gx_ref.shape
    H = H8 // 8
    H2 = 2 * H

    whh = whh_ref[...]                                    # (2H, 8H), loaded once

    # Single-sigmoid activation trick: tanh(x) = 2*sigmoid(2x) - 1 on the 'g'
    # gate lanes, plain sigmoid elsewhere -> one EUP pass over 8H per step
    # (plus tanh(c)), instead of evaluating tanh AND sigmoid full-width.
    lane = lax.broadcasted_iota(jnp.int32, (Bt, H8), 1)
    is_g = (lane >= 4 * H) & (lane < 6 * H)
    pre_scale = jnp.where(is_g, 2.0, 1.0).astype(jnp.float32)   # also post_scale
    post_shift = jnp.where(is_g, -1.0, 0.0).astype(jnp.float32)

    def step(t, carry):
        h, c = carry                                      # (Bt, 2H): [fwd | bwd]
        gates = gx_ref[t] + jnp.dot(h, whh, preferred_element_type=jnp.float32)
        act = jax.nn.sigmoid(gates * pre_scale) * pre_scale + post_shift
        i_cat = act[:, 0 * H2:1 * H2]
        f_cat = act[:, 1 * H2:2 * H2]
        g_cat = act[:, 2 * H2:3 * H2]
        o_cat = act[:, 3 * H2:4 * H2]
        c_new = f_cat * c + i_cat * g_cat
        h_new = o_cat * jnp.tanh(c_new)
        # single packed store; backward half is time-reversed here, fixed below
        y_ref[t] = h_new
        return h_new, c_new

    zeros = jnp.zeros((Bt, H2), jnp.float32)
    unroll = True if L <= 32 else 4
    lax.fori_loop(0, L, step, (zeros, zeros), unroll=unroll)

    # Pairwise un-reverse of the backward half: only two rows are live at a
    # time (no spill storm at large L), outside the serial recurrence.
    for t in range(L // 2):
        u = L - 1 - t
        a = y_ref[t]
        b = y_ref[u]
        y_ref[t] = jnp.concatenate([a[:, :H], b[:, H:]], axis=1)
        y_ref[u] = jnp.concatenate([b[:, :H], a[:, H:]], axis=1)


def _pick_batch_tile(L, b_pad, h):
    """VMEM-aware batch tile.

    Accounts for the double-buffered, lane-padded gx and y blocks and keeps at
    least two programs on the parallel grid axis (both v7x TensorCores busy).
    """
    in_lanes = _round_up(8 * h, 128)
    out_lanes = _round_up(2 * h, 128)
    per_row_bytes = 2 * L * (in_lanes + out_lanes) * 4    # 2x double buffering
    best = 8
    for cand in range(8, min(b_pad, 512) + 1, 8):
        if b_pad % cand != 0:
            continue
        if b_pad >= 16 and cand > b_pad // 2:
            continue                                      # keep >= 2 programs
        if cand * per_row_bytes > _VMEM_BUDGET_BYTES:
            continue
        best = cand
    return best


def bilstm_time_major(x_lbd, params):
    """x_lbd: (L, B, D) float32 time-major. Returns (L, B, 2H) time-major."""
    L, B, D = x_lbd.shape
    wih, whh, bias = params["wih"], params["whh"], params["b"]
    H8 = wih.shape[1]
    H = H8 // 8

    # pad batch to a multiple of 8 (sublane friendliness); padded rows dropped
    B_pad = _round_up(B, 8)
    if B_pad != B:
        x_lbd = jnp.pad(x_lbd, ((0, 0), (0, B_pad - B), (0, 0)))

    # Hoisted input projection for BOTH directions, done once as a plain XLA
    # matmul in the wrapper (bias folded in).  The kernel only runs the serial
    # recurrence on the lane-dense gx, so the lane-padded x block and the gx
    # VMEM scratch disappear from the kernel.
    x_cat = jnp.concatenate([x_lbd, jnp.flip(x_lbd, axis=0)], axis=-1)
    gx = jnp.einsum("lbd,dg->lbg", x_cat.astype(jnp.float32), wih) + bias
    gx = gx.astype(jnp.float32)                            # (L, B_pad, 8H)

    bt = _pick_batch_tile(L, B_pad, H)
    grid = (B_pad // bt,)

    in_lanes = _round_up(H8, 128)
    out_lanes = _round_up(2 * H, 128)
    flops = 2 * L * B_pad * (2 * H) * H8                   # recurrent matmul
    transcendentals = L * B_pad * (H8 + 2 * H)              # sigmoid + tanh(c)
    bytes_accessed = 4 * (L * B_pad * in_lanes              # gx read (padded)
                          + 2 * H * H8                      # whh
                          + 3 * L * B_pad * out_lanes)      # y write + epilogue RMW

    y = pl.pallas_call(
        bilstm_kernel,
        out_shape=jax.ShapeDtypeStruct((L, B_pad, 2 * H), jnp.float32),
        grid=grid,
        in_specs=[
            pl.BlockSpec((L, bt, H8), lambda b: (0, b, 0)),
            pl.BlockSpec((2 * H, H8), lambda b: (0, 0)),
        ],
        out_specs=pl.BlockSpec((L, bt, 2 * H), lambda b: (0, b, 0)),
        compiler_params=pltpu.CompilerParams(
            dimension_semantics=("parallel",),
            vmem_limit_bytes=_VMEM_LIMIT_BYTES),
        cost_estimate=pl.CostEstimate(flops=flops,
                                      transcendentals=transcendentals,
                                      bytes_accessed=bytes_accessed),
    )(gx, whh)

    if B_pad != B:
        y = y[:, :B, :]
    return y


# ----------------------------------------------------------------------------
# Parameter packing / init
# ----------------------------------------------------------------------------
def fuse_bilstm_params(wih_f, whh_f, b_f, wih_b, whh_b, b_b):
    """Pack per-direction PyTorch-layout weights (columns in [i|f|g|o] order,
    pre-transposed to (in, 4H)) into the kernel's fused layout."""
    D, H4 = wih_f.shape
    H = H4 // 4

    def gate_blocks(w):
        return [w[:, k * H:(k + 1) * H] for k in range(4)]

    gf, gb = gate_blocks(wih_f), gate_blocks(wih_b)
    zx = jnp.zeros((D, H), jnp.float32)
    top = jnp.concatenate([gf[0], zx, gf[1], zx, gf[2], zx, gf[3], zx], axis=1)
    bot = jnp.concatenate([zx, gb[0], zx, gb[1], zx, gb[2], zx, gb[3]], axis=1)
    wih = jnp.concatenate([top, bot], axis=0)                    # (2D, 8H)

    hf, hb = gate_blocks(whh_f), gate_blocks(whh_b)
    zh = jnp.zeros((H, H), jnp.float32)
    topr = jnp.concatenate([hf[0], zh, hf[1], zh, hf[2], zh, hf[3], zh], axis=1)
    botr = jnp.concatenate([zh, hb[0], zh, hb[1], zh, hb[2], zh, hb[3]], axis=1)
    whh = jnp.concatenate([topr, botr], axis=0)                  # (2H, 8H)

    bf = [b_f[:, k * H:(k + 1) * H] for k in range(4)]
    bb = [b_b[:, k * H:(k + 1) * H] for k in range(4)]
    b = jnp.concatenate([bf[0], bb[0], bf[1], bb[1],
                         bf[2], bb[2], bf[3], bb[3]], axis=1)    # (1, 8H)
    return {"wih": wih, "whh": whh, "b": b}


def init_bilstm_params(key, input_dim, hidden_dim):
    """PyTorch-style U(-1/sqrt(H), 1/sqrt(H)) init; combined b_ih+b_hh bias."""
    k = 1.0 / math.sqrt(hidden_dim)
    keys = jax.random.split(key, 8)

    def u(kk, shape):
        return jax.random.uniform(kk, shape, jnp.float32, minval=-k, maxval=k)

    wih_f = u(keys[0], (input_dim, 4 * hidden_dim))
    whh_f = u(keys[1], (hidden_dim, 4 * hidden_dim))
    b_f = u(keys[2], (1, 4 * hidden_dim)) + u(keys[3], (1, 4 * hidden_dim))
    wih_b = u(keys[4], (input_dim, 4 * hidden_dim))
    whh_b = u(keys[5], (hidden_dim, 4 * hidden_dim))
    b_b = u(keys[6], (1, 4 * hidden_dim)) + u(keys[7], (1, 4 * hidden_dim))
    return fuse_bilstm_params(wih_f, whh_f, b_f, wih_b, whh_b, b_b)


def init_fnblock_params(key, input_size, hidden_size=32, add_skip_dim=4,
                        is_first=True, is_online=False):
    # TODO(synk): is_online=True (unidirectional narrLstm) path not implemented;
    # this covers the module's default bidirectional (is_online=False) path.
    full_hidden = hidden_size // 2
    narr_hidden = hidden_size if is_online else hidden_size // 2
    full_in = input_size if is_first else input_size + add_skip_dim
    narr_in = 2 * full_hidden + add_skip_dim
    k_full, k_narr = jax.random.split(key)
    return {
        "full": init_bilstm_params(k_full, full_in, full_hidden),
        "narr": init_bilstm_params(k_narr, narr_in, narr_hidden),
    }


# ----------------------------------------------------------------------------
# FNblock.forward (wrapper kept time-major to minimise layout glue)
# ----------------------------------------------------------------------------
def fnblock_forward(x, fb_skip, nb_skip, params):
    """
    x       : (nb, nt, nf, nc)
    fb_skip : (nb*nt, nf, add_skip_dim)
    nb_skip : (nb*nf, nt, add_skip_dim)
    returns : (nb, nt, nf, hidden_size + add_skip_dim)
    """
    nb, nt, nf, nc = x.shape

    # full-band bi-LSTM over frequency (time-major: L=nf, B=nb*nt)
    x_fb = jnp.transpose(x, (2, 0, 1, 3)).reshape(nf, nb * nt, nc)
    y_full = bilstm_time_major(x_fb, params["full"])        # (nf, nb*nt, 2Hf)
    # TODO(synk): nn.Dropout implemented as identity (inference / eval mode).
    fb = jnp.transpose(fb_skip, (1, 0, 2))                  # (nf, nb*nt, add)
    y_full = jnp.concatenate([y_full, fb], axis=-1)

    # one rearrangement to time-major for the narrow-band LSTM (L=nt, B=nb*nf)
    c_full = y_full.shape[-1]
    y_nb = (y_full.reshape(nf, nb, nt, c_full)
                  .transpose(2, 1, 0, 3)
                  .reshape(nt, nb * nf, c_full))
    y_narr = bilstm_time_major(y_nb, params["narr"])        # (nt, nb*nf, 2Hn)
    nbs = jnp.transpose(nb_skip, (1, 0, 2))                 # (nt, nb*nf, add)
    y_narr = jnp.concatenate([y_narr, nbs], axis=-1)

    c_out = y_narr.shape[-1]
    out = (y_narr.reshape(nt, nb, nf, c_out)
                 .transpose(1, 0, 2, 3))                    # (nb, nt, nf, .)
    return out


if __name__ == "__main__":
    # small shapes consistent with the module
    nb, nt, nf = 2, 8, 16
    input_size = 4          # nc (is_first=True, so fullLstm input_size == nc)
    hidden_size = 32
    add_skip_dim = 4

    key = jax.random.PRNGKey(0)
    k_x, k_fb, k_nb, k_p = jax.random.split(key, 4)

    x = jax.random.normal(k_x, (nb, nt, nf, input_size), jnp.float32)
    fb_skip = jax.random.normal(k_fb, (nb * nt, nf, add_skip_dim), jnp.float32)
    nb_skip = jax.random.normal(k_nb, (nb * nf, nt, add_skip_dim), jnp.float32)

    params = init_fnblock_params(k_p, input_size, hidden_size, add_skip_dim,
                                 is_first=True, is_online=False)

    out = jax.jit(fnblock_forward)(x, fb_skip, nb_skip, params)
    out = jax.block_until_ready(out)

    expected = (nb, nt, nf, hidden_size + add_skip_dim)
    assert out.shape == expected, (out.shape, expected)
    assert out.dtype == jnp.float32
    print("KERNEL_OK")
</pallas_src>

<mosaic_0001>
module attributes {stable_mosaic.version = 11 : i64} {
  func.func @bilstm_kernel(%arg0: i32, %arg1: memref<16x8x128xf32, #tpu.memory_space<vmem>>, %arg2: memref<32x128xf32, #tpu.memory_space<vmem>>, %arg3: memref<16x8x32xf32, #tpu.memory_space<vmem>>) attributes {dimension_semantics = [#tpu.dimension_semantics<parallel>], iteration_bounds = array<i64: 2>, scalar_prefetch = 0 : i64, scratch_operands = 0 : i64, tpu.core_type = #tpu.core_type<tc>, window_params = [{transform_indices = @transform_0, window_bounds = array<i64: 16, 8, 128>}, {pipeline_mode = #tpu.pipeline_mode<synchronous>, transform_indices = @transform_1, window_bounds = array<i64: 32, 128>}, {transform_indices = @transform_2, window_bounds = array<i64: 16, 8, 32>}]} {
    %c0 = arith.constant 0 : index
    %c0_0 = arith.constant 0 : index
    %0 = vector.load %arg2[%c0, %c0_0] : memref<32x128xf32, #tpu.memory_space<vmem>>, vector<32x128xf32>
    %1 = tpu.iota {dimensions = array<i32: 1>} : vector<8x128xi32>
    %c64_i32 = arith.constant 64 : i32
    %2 = vector.broadcast %c64_i32 : i32 to vector<8x128xi32>
    %3 = arith.cmpi sge, %1, %2 : vector<8x128xi32>
    %c96_i32 = arith.constant 96 : i32
    %4 = vector.broadcast %c96_i32 : i32 to vector<8x128xi32>
    %5 = arith.cmpi slt, %1, %4 : vector<8x128xi32>
    %6 = arith.andi %3, %5 : vector<8x128xi1>
    %cst = arith.constant 2.000000e+00 : f32
    %cst_1 = arith.constant 1.000000e+00 : f32
    %7 = vector.broadcast %cst : f32 to vector<8x128xf32>
    %8 = vector.broadcast %cst_1 : f32 to vector<8x128xf32>
    %9 = arith.select %6, %7, %8 : vector<8x128xi1>, vector<8x128xf32>
    %cst_2 = arith.constant -1.000000e+00 : f32
    %cst_3 = arith.constant 0.000000e+00 : f32
    %10 = vector.broadcast %cst_2 : f32 to vector<8x128xf32>
    %11 = vector.broadcast %cst_3 : f32 to vector<8x128xf32>
    %12 = arith.select %6, %10, %11 : vector<8x128xi1>, vector<8x128xf32>
    %cst_4 = arith.constant 0.000000e+00 : f32
    %13 = vector.broadcast %cst_4 : f32 to vector<8x32xf32>
    %c0_i32 = arith.constant 0 : i32
    %14 = arith.index_cast %c0_i32 : i32 to index
    %c0_5 = arith.constant 0 : index
    %c0_6 = arith.constant 0 : index
    %15 = vector.load %arg1[%14, %c0_5, %c0_6] : memref<16x8x128xf32, #tpu.memory_space<vmem>>, vector<1x8x128xf32>
    %16 = vector.shape_cast %15 : vector<1x8x128xf32> to vector<8x128xf32>
    %cst_7 = arith.constant dense<0.000000e+00> : vector<8x128xf32>
    %17 = tpu.matmul %13, %0, %cst_7 {dimension_numbers = #tpu.dot_dimension_numbers<[1], [0], [0], [1], [0, 0, 1, 1], [], []>} : vector<8x32xf32>, vector<32x128xf32>, vector<8x128xf32> -> vector<8x128xf32>
    %18 = arith.addf %16, %17 : vector<8x128xf32>
    %19 = arith.mulf %18, %9 : vector<8x128xf32>
    %20 = arith.negf %19 : vector<8x128xf32>
    %21 = math.exp %20 : vector<8x128xf32>
    %cst_8 = arith.constant 1.000000e+00 : f32
    %22 = vector.broadcast %cst_8 : f32 to vector<8x128xf32>
    %23 = arith.addf %22, %21 : vector<8x128xf32>
    %24 = arith.divf %22, %23 : vector<8x128xf32>
    %25 = arith.mulf %24, %9 : vector<8x128xf32>
    %26 = arith.addf %25, %12 : vector<8x128xf32>
    %27 = vector.extract_strided_slice %26 {offsets = [0, 0], sizes = [8, 32], strides = [1, 1]} : vector<8x128xf32> to vector<8x32xf32>
    %28 = vector.extract_strided_slice %26 {offsets = [0, 32], sizes = [8, 32], strides = [1, 1]} : vector<8x128xf32> to vector<8x32xf32>
    %29 = vector.extract_strided_slice %26 {offsets = [0, 64], sizes = [8, 32], strides = [1, 1]} : vector<8x128xf32> to vector<8x32xf32>
    %30 = vector.extract_strided_slice %26 {offsets = [0, 96], sizes = [8, 32], strides = [1, 1]} : vector<8x128xf32> to vector<8x32xf32>
    %31 = arith.mulf %28, %13 : vector<8x32xf32>
    %32 = arith.mulf %27, %29 : vector<8x32xf32>
    %33 = arith.addf %31, %32 : vector<8x32xf32>
    %34 = math.tanh %33 : vector<8x32xf32>
    %35 = arith.mulf %30, %34 : vector<8x32xf32>
    %36 = arith.index_cast %c0_i32 : i32 to index
    %c0_9 = arith.constant 0 : index
    %c0_10 = arith.constant 0 : index
    %37 = vector.load %arg3[%36, %c0_9, %c0_10] : memref<16x8x32xf32, #tpu.memory_space<vmem>>, vector<1x8x32xf32>
    %38 = vector.shape_cast %37 : vector<1x8x32xf32> to vector<8x32xf32>
    %39 = vector.shape_cast %35 : vector<8x32xf32> to vector<1x8x32xf32>
    tpu.vector_store %arg3[%36, %c0_9, %c0_10], %39 {strides = array<i32>} : memref<16x8x32xf32, #tpu.memory_space<vmem>>, vector<1x8x32xf32>,
    %c1_i32 = arith.constant 1 : i32
    %40 = arith.index_cast %c1_i32 : i32 to index
    %c0_11 = arith.constant 0 : index
    %c0_12 = arith.constant 0 : index
    %41 = vector.load %arg1[%40, %c0_11, %c0_12] : memref<16x8x128xf32, #tpu.memory_space<vmem>>, vector<1x8x128xf32>
    %42 = vector.shape_cast %41 : vector<1x8x128xf32> to vector<8x128xf32>
    %cst_13 = arith.constant dense<0.000000e+00> : vector<8x128xf32>
    %43 = tpu.matmul %35, %0, %cst_13 {dimension_numbers = #tpu.dot_dimension_numbers<[1], [0], [0], [1], [0, 0, 1, 1], [], []>} : vector<8x32xf32>, vector<32x128xf32>, vector<8x128xf32> -> vector<8x128xf32>
    %44 = arith.addf %42, %43 : vector<8x128xf32>
    %45 = arith.mulf %44, %9 : vector<8x128xf32>
    %46 = arith.negf %45 : vector<8x128xf32>
    %47 = math.exp %46 : vector<8x128xf32>
    %cst_14 = arith.constant 1.000000e+00 : f32
    %48 = vector.broadcast %cst_14 : f32 to vector<8x128xf32>
    %49 = arith.addf %48, %47 : vector<8x128xf32>
    %50 = arith.divf %48, %49 : vector<8x128xf32>
    %51 = arith.mulf %50, %9 : vector<8x128xf32>
    %52 = arith.addf %51, %12 : vector<8x128xf32>
    %53 = vector.extract_strided_slice %52 {offsets = [0, 0], sizes = [8, 32], strides = [1, 1]} : vector<8x128xf32> to vector<8x32xf32>
    %54 = vector.extract_strided_slice %52 {offsets = [0, 32], sizes = [8, 32], strides = [1, 1]} : vector<8x128xf32> to vector<8x32xf32>
    %55 = vector.extract_strided_slice %52 {offsets = [0, 64], sizes = [8, 32], strides = [1, 1]} : vector<8x128xf32> to vector<8x32xf32>
    %56 = vector.extract_strided_slice %52 {offsets = [0, 96], sizes = [8, 32], strides = [1, 1]} : vector<8x128xf32> to vector<8x32xf32>
    %57 = arith.mulf %54, %33 : vector<8x32xf32>
    %58 = arith.mulf %53, %55 : vector<8x32xf32>
    %59 = arith.addf %57, %58 : vector<8x32xf32>
    %60 = math.tanh %59 : vector<8x32xf32>
    %61 = arith.mulf %56, %60 : vector<8x32xf32>
    %62 = arith.index_cast %c1_i32 : i32 to index
    %c0_15 = arith.constant 0 : index
    %c0_16 = arith.constant 0 : index
    %63 = vector.load %arg3[%62, %c0_15, %c0_16] : memref<16x8x32xf32, #tpu.memory_space<vmem>>, vector<1x8x32xf32>
    %64 = vector.shape_cast %63 : vector<1x8x32xf32> to vector<8x32xf32>
    %65 = vector.shape_cast %61 : vector<8x32xf32> to vector<1x8x32xf32>
    tpu.vector_store %arg3[%62, %c0_15, %c0_16], %65 {strides = array<i32>} : memref<16x8x32xf32, #tpu.memory_space<vmem>>, vector<1x8x32xf32>,
    %c2_i32 = arith.constant 2 : i32
    %66 = arith.index_cast %c2_i32 : i32 to index
    %c0_17 = arith.constant 0 : index
    %c0_18 = arith.constant 0 : index
    %67 = vector.load %arg1[%66, %c0_17, %c0_18] : memref<16x8x128xf32, #tpu.memory_space<vmem>>, vector<1x8x128xf32>
    %68 = vector.shape_cast %67 : vector<1x8x128xf32> to vector<8x128xf32>
    %cst_19 = arith.constant dense<0.000000e+00> : vector<8x128xf32>
    %69 = tpu.matmul %61, %0, %cst_19 {dimension_numbers = #tpu.dot_dimension_numbers<[1], [0], [0], [1], [0, 0, 1, 1], [], []>} : vector<8x32xf32>, vector<32x128xf32>, vector<8x128xf32> -> vector<8x128xf32>
    %70 = arith.addf %68, %69 : vector<8x128xf32>
    %71 = arith.mulf %70, %9 : vector<8x128xf32>
    %72 = arith.negf %71 : vector<8x128xf32>
    %73 = math.exp %72 : vector<8x128xf32>
    %cst_20 = arith.constant 1.000000e+00 : f32
    %74 = vector.broadcast %cst_20 : f32 to vector<8x128xf32>
    %75 = arith.addf %74, %73 : vector<8x128xf32>
    %76 = arith.divf %74, %75 : vector<8x128xf32>
    %77 = arith.mulf %76, %9 : vector<8x128xf32>
    %78 = arith.addf %77, %12 : vector<8x128xf32>
    %79 = vector.extract_strided_slice %78 {offsets = [0, 0], sizes = [8, 32], strides = [1, 1]} : vector<8x128xf32> to vector<8x32xf32>
    %80 = vector.extract_strided_slice %78 {offsets = [0, 32], sizes = [8, 32], strides = [1, 1]} : vector<8x128xf32> to vector<8x32xf32>
    %81 = vector.extract_strided_slice %78 {offsets = [0, 64], sizes = [8, 32], strides = [1, 1]} : vector<8x128xf32> to vector<8x32xf32>
    %82 = vector.extract_strided_slice %78 {offsets = [0, 96], sizes = [8, 32], strides = [1, 1]} : vector<8x128xf32> to vector<8x32xf32>
    %83 = arith.mulf %80, %59 : vector<8x32xf32>
    %84 = arith.mulf %79, %81 : vector<8x32xf32>
    %85 = arith.addf %83, %84 : vector<8x32xf32>
    %86 = math.tanh %85 : vector<8x32xf32>
    %87 = arith.mulf %82, %86 : vector<8x32xf32>
    %88 = arith.index_cast %c2_i32 : i32 to index
    %c0_21 = arith.constant 0 : index
    %c0_22 = arith.constant 0 : index
    %89 = vector.load %arg3[%88, %c0_21, %c0_22] : memref<16x8x32xf32, #tpu.memory_space<vmem>>, vector<1x8x32xf32>
    %90 = vector.shape_cast %89 : vector<1x8x32xf32> to vector<8x32xf32>
    %91 = vector.shape_cast %87 : vector<8x32xf32> to vector<1x8x32xf32>
    tpu.vector_store %arg3[%88, %c0_21, %c0_22], %91 {strides = array<i32>} : memref<16x8x32xf32, #tpu.memory_space<vmem>>, vector<1x8x32xf32>,
    %c3_i32 = arith.constant 3 : i32
    %92 = arith.index_cast %c3_i32 : i32 to index
    %c0_23 = arith.constant 0 : index
    %c0_24 = arith.constant 0 : index
    %93 = vector.load %arg1[%92, %c0_23, %c0_24] : memref<16x8x128xf32, #tpu.memory_space<vmem>>, vector<1x8x128xf32>
    %94 = vector.shape_cast %93 : vector<1x8x128xf32> to vector<8x128xf32>
    %cst_25 = arith.constant dense<0.000000e+00> : vector<8x128xf32>
    %95 = tpu.matmul %87, %0, %cst_25 {dimension_numbers = #tpu.dot_dimension_numbers<[1], [0], [0], [1], [0, 0, 1, 1], [], []>} : vector<8x32xf32>, vector<32x128xf32>, vector<8x128xf32> -> vector<8x128xf32>
    %96 = arith.addf %94, %95 : vector<8x128xf32>
    %97 = arith.mulf %96, %9 : vector<8x128xf32>
    %98 = arith.negf %97 : vector<8x128xf32>
    %99 = math.exp %98 : vector<8x128xf32>
    %cst_26 = arith.constant 1.000000e+00 : f32
    %100 = vector.broadcast %cst_26 : f32 to vector<8x128xf32>
    %101 = arith.addf %100, %99 : vector<8x128xf32>
    %102 = arith.divf %100, %101 : vector<8x128xf32>
    %103 = arith.mulf %102, %9 : vector<8x128xf32>
    %104 = arith.addf %103, %12 : vector<8x128xf32>
    %105 = vector.extract_strided_slice %104 {offsets = [0, 0], sizes = [8, 32], strides = [1, 1]} : vector<8x128xf32> to vector<8x32xf32>
    %106 = vector.extract_strided_slice %104 {offsets = [0, 32], sizes = [8, 32], strides = [1, 1]} : vector<8x128xf32> to vector<8x32xf32>
    %107 = vector.extract_strided_slice %104 {offsets = [0, 64], sizes = [8, 32], strides = [1, 1]} : vector<8x128xf32> to vector<8x32xf32>
    %108 = vector.extract_strided_slice %104 {offsets = [0, 96], sizes = [8, 32], strides = [1, 1]} : vector<8x128xf32> to vector<8x32xf32>
    %109 = arith.mulf %106, %85 : vector<8x32xf32>
    %110 = arith.mulf %105, %107 : vector<8x32xf32>
    %111 = arith.addf %109, %110 : vector<8x32xf32>
    %112 = math.tanh %111 : vector<8x32xf32>
    %113 = arith.mulf %108, %112 : vector<8x32xf32>
    %114 = arith.index_cast %c3_i32 : i32 to index
    %c0_27 = arith.constant 0 : index
    %c0_28 = arith.constant 0 : index
    %115 = vector.load %arg3[%114, %c0_27, %c0_28] : memref<16x8x32xf32, #tpu.memory_space<vmem>>, vector<1x8x32xf32>
    %116 = vector.shape_cast %115 : vector<1x8x32xf32> to vector<8x32xf32>
    %117 = vector.shape_cast %113 : vector<8x32xf32> to vector<1x8x32xf32>
    tpu.vector_store %arg3[%114, %c0_27, %c0_28], %117 {strides = array<i32>} : memref<16x8x32xf32, #tpu.memory_space<vmem>>, vector<1x8x32xf32>,
    %c4_i32 = arith.constant 4 : i32
    %118 = arith.index_cast %c4_i32 : i32 to index
    %c0_29 = arith.constant 0 : index
    %c0_30 = arith.constant 0 : index
    %119 = vector.load %arg1[%118, %c0_29, %c0_30] : memref<16x8x128xf32, #tpu.memory_space<vmem>>, vector<1x8x128xf32>
    %120 = vector.shape_cast %119 : vector<1x8x128xf32> to vector<8x128xf32>
    %cst_31 = arith.constant dense<0.000000e+00> : vector<8x128xf32>
    %121 = tpu.matmul %113, %0, %cst_31 {dimension_numbers = #tpu.dot_dimension_numbers<[1], [0], [0], [1], [0, 0, 1, 1], [], []>} : vector<8x32xf32>, vector<32x128xf32>, vector<8x128xf32> -> vector<8x128xf32>
    %122 = arith.addf %120, %121 : vector<8x128xf32>
    %123 = arith.mulf %122, %9 : vector<8x128xf32>
    %124 = arith.negf %123 : vector<8x128xf32>
    %125 = math.exp %124 : vector<8x128xf32>
    %cst_32 = arith.constant 1.000000e+00 : f32
    %126 = vector.broadcast %cst_32 : f32 to vector<8x128xf32>
    %127 = arith.addf %126, %125 : vector<8x128xf32>
    %128 = arith.divf %126, %127 : vector<8x128xf32>
    %129 = arith.mulf %128, %9 : vector<8x128xf32>
    %130 = arith.addf %129, %12 : vector<8x128xf32>
    %131 = vector.extract_strided_slice %130 {offsets = [0, 0], sizes = [8, 32], strides = [1, 1]} : vector<8x128xf32> to vector<8x32xf32>
    %132 = vector.extract_strided_slice %130 {offsets = [0, 32], sizes = [8, 32], strides = [1, 1]} : vector<8x128xf32> to vector<8x32xf32>
    %133 = vector.extract_strided_slice %130 {offsets = [0, 64], sizes = [8, 32], strides = [1, 1]} : vector<8x128xf32> to vector<8x32xf32>
    %134 = vector.extract_strided_slice %130 {offsets = [0, 96], sizes = [8, 32], strides = [1, 1]} : vector<8x128xf32> to vector<8x32xf32>
    %135 = arith.mulf %132, %111 : vector<8x32xf32>
    %136 = arith.mulf %131, %133 : vector<8x32xf32>
    %137 = arith.addf %135, %136 : vector<8x32xf32>
    %138 = math.tanh %137 : vector<8x32xf32>
    %139 = arith.mulf %134, %138 : vector<8x32xf32>
    %140 = arith.index_cast %c4_i32 : i32 to index
    %c0_33 = arith.constant 0 : index
    %c0_34 = arith.constant 0 : index
    %141 = vector.load %arg3[%140, %c0_33, %c0_34] : memref<16x8x32xf32, #tpu.memory_space<vmem>>, vector<1x8x32xf32>
    %142 = vector.shape_cast %141 : vector<1x8x32xf32> to vector<8x32xf32>
    %143 = vector.shape_cast %139 : vector<8x32xf32> to vector<1x8x32xf32>
    tpu.vector_store %arg3[%140, %c0_33, %c0_34], %143 {strides = array<i32>} : memref<16x8x32xf32, #tpu.memory_space<vmem>>, vector<1x8x32xf32>,
    %c5_i32 = arith.constant 5 : i32
    %144 = arith.index_cast %c5_i32 : i32 to index
    %c0_35 = arith.constant 0 : index
    %c0_36 = arith.constant 0 : index
    %145 = vector.load %arg1[%144, %c0_35, %c0_36] : memref<16x8x128xf32, #tpu.memory_space<vmem>>, vector<1x8x128xf32>
    %146 = vector.shape_cast %145 : vector<1x8x128xf32> to vector<8x128xf32>
    %cst_37 = arith.constant dense<0.000000e+00> : vector<8x128xf32>
    %147 = tpu.matmul %139, %0, %cst_37 {dimension_numbers = #tpu.dot_dimension_numbers<[1], [0], [0], [1], [0, 0, 1, 1], [], []>} : vector<8x32xf32>, vector<32x128xf32>, vector<8x128xf32> -> vector<8x128xf32>
    %148 = arith.addf %146, %147 : vector<8x128xf32>
    %149 = arith.mulf %148, %9 : vector<8x128xf32>
    %150 = arith.negf %149 : vector<8x128xf32>
    %151 = math.exp %150 : vector<8x128xf32>
    %cst_38 = arith.constant 1.000000e+00 : f32
    %152 = vector.broadcast %cst_38 : f32 to vector<8x128xf32>
    %153 = arith.addf %152, %151 : vector<8x128xf32>
    %154 = arith.divf %152, %153 : vector<8x128xf32>
    %155 = arith.mulf %154, %9 : vector<8x128xf32>
    %156 = arith.addf %155, %12 : vector<8x128xf32>
    %157 = vector.extract_strided_slice %156 {offsets = [0, 0], sizes = [8, 32], strides = [1, 1]} : vector<8x128xf32> to vector<8x32xf32>
    %158 = vector.extract_strided_slice %156 {offsets = [0, 32], sizes = [8, 32], strides = [1, 1]} : vector<8x128xf32> to vector<8x32xf32>
    %159 = vector.extract_strided_slice %156 {offsets = [0, 64], sizes = [8, 32], strides = [1, 1]} : vector<8x128xf32> to vector<8x32xf32>
    %160 = vector.extract_strided_slice %156 {offsets = [0, 96], sizes = [8, 32], strides = [1, 1]} : vector<8x128xf32> to vector<8x32xf32>
    %161 = arith.mulf %158, %137 : vector<8x32xf32>
    %162 = arith.mulf %157, %159 : vector<8x32xf32>
    %163 = arith.addf %161, %162 : vector<8x32xf32>
    %164 = math.tanh %163 : vector<8x32xf32>
    %165 = arith.mulf %160, %164 : vector<8x32xf32>
    %166 = arith.index_cast %c5_i32 : i32 to index
    %c0_39 = arith.constant 0 : index
    %c0_40 = arith.constant 0 : index
    %167 = vector.load %arg3[%166, %c0_39, %c0_40] : memref<16x8x32xf32, #tpu.memory_space<vmem>>, vector<1x8x32xf32>
    %168 = vector.shape_cast %167 : vector<1x8x32xf32> to vector<8x32xf32>
    %169 = vector.shape_cast %165 : vector<8x32xf32> to vector<1x8x32xf32>
    tpu.vector_store %arg3[%166, %c0_39, %c0_40], %169 {strides = array<i32>} : memref<16x8x32xf32, #tpu.memory_space<vmem>>, vector<1x8x32xf32>,
    %c6_i32 = arith.constant 6 : i32
    %170 = arith.index_cast %c6_i32 : i32 to index
    %c0_41 = arith.constant 0 : index
    %c0_42 = arith.constant 0 : index
    %171 = vector.load %arg1[%170, %c0_41, %c0_42] : memref<16x8x128xf32, #tpu.memory_space<vmem>>, vector<1x8x128xf32>
    %172 = vector.shape_cast %171 : vector<1x8x128xf32> to vector<8x128xf32>
    %cst_43 = arith.constant dense<0.000000e+00> : vector<8x128xf32>
    %173 = tpu.matmul %165, %0, %cst_43 {dimension_numbers = #tpu.dot_dimension_numbers<[1], [0], [0], [1], [0, 0, 1, 1], [], []>} : vector<8x32xf32>, vector<32x128xf32>, vector<8x128xf32> -> vector<8x128xf32>
    %174 = arith.addf %172, %173 : vector<8x128xf32>
    %175 = arith.mulf %174, %9 : vector<8x128xf32>
    %176 = arith.negf %175 : vector<8x128xf32>
    %177 = math.exp %176 : vector<8x128xf32>
    %cst_44 = arith.constant 1.000000e+00 : f32
    %178 = vector.broadcast %cst_44 : f32 to vector<8x128xf32>
    %179 = arith.addf %178, %177 : vector<8x128xf32>
    %180 = arith.divf %178, %179 : vector<8x128xf32>
    %181 = arith.mulf %180, %9 : vector<8x128xf32>
    %182 = arith.addf %181, %12 : vector<8x128xf32>
    %183 = vector.extract_strided_slice %182 {offsets = [0, 0], sizes = [8, 32], strides = [1, 1]} : vector<8x128xf32> to vector<8x32xf32>
    %184 = vector.extract_strided_slice %182 {offsets = [0, 32], sizes = [8, 32], strides = [1, 1]} : vector<8x128xf32> to vector<8x32xf32>
    %185 = vector.extract_strided_slice %182 {offsets = [0, 64], sizes = [8, 32], strides = [1, 1]} : vector<8x128xf32> to vector<8x32xf32>
    %186 = vector.extract_strided_slice %182 {offsets = [0, 96], sizes = [8, 32], strides = [1, 1]} : vector<8x128xf32> to vector<8x32xf32>
    %187 = arith.mulf %184, %163 : vector<8x32xf32>
    %188 = arith.mulf %183, %185 : vector<8x32xf32>
    %189 = arith.addf %187, %188 : vector<8x32xf32>
    %190 = math.tanh %189 : vector<8x32xf32>
    %191 = arith.mulf %186, %190 : vector<8x32xf32>
    %192 = arith.index_cast %c6_i32 : i32 to index
    %c0_45 = arith.constant 0 : index
    %c0_46 = arith.constant 0 : index
    %193 = vector.load %arg3[%192, %c0_45, %c0_46] : memref<16x8x32xf32, #tpu.memory_space<vmem>>, vector<1x8x32xf32>
    %194 = vector.shape_cast %193 : vector<1x8x32xf32> to vector<8x32xf32>
    %195 = vector.shape_cast %191 : vector<8x32xf32> to vector<1x8x32xf32>
    tpu.vector_store %arg3[%192, %c0_45, %c0_46], %195 {strides = array<i32>} : memref<16x8x32xf32, #tpu.memory_space<vmem>>, vector<1x8x32xf32>,
    %c7_i32 = arith.constant 7 : i32
    %196 = arith.index_cast %c7_i32 : i32 to index
    %c0_47 = arith.constant 0 : index
    %c0_48 = arith.constant 0 : index
    %197 = vector.load %arg1[%196, %c0_47, %c0_48] : memref<16x8x128xf32, #tpu.memory_space<vmem>>, vector<1x8x128xf32>
    %198 = vector.shape_cast %197 : vector<1x8x128xf32> to vector<8x128xf32>
    %cst_49 = arith.constant dense<0.000000e+00> : vector<8x128xf32>
    %199 = tpu.matmul %191, %0, %cst_49 {dimension_numbers = #tpu.dot_dimension_numbers<[1], [0], [0], [1], [0, 0, 1, 1], [], []>} : vector<8x32xf32>, vector<32x128xf32>, vector<8x128xf32> -> vector<8x128xf32>
    %200 = arith.addf %198, %199 : vector<8x128xf32>
    %201 = arith.mulf %200, %9 : vector<8x128xf32>
    %202 = arith.negf %201 : vector<8x128xf32>
    %203 = math.exp %202 : vector<8x128xf32>
    %cst_50 = arith.constant 1.000000e+00 : f32
    %204 = vector.broadcast %cst_50 : f32 to vector<8x128xf32>
    %205 = arith.addf %204, %203 : vector<8x128xf32>
    %206 = arith.divf %204, %205 : vector<8x128xf32>
    %207 = arith.mulf %206, %9 : vector<8x128xf32>
    %208 = arith.addf %207, %12 : vector<8x128xf32>
    %209 = vector.extract_strided_slice %208 {offsets = [0, 0], sizes = [8, 32], strides = [1, 1]} : vector<8x128xf32> to vector<8x32xf32>
    %210 = vector.extract_strided_slice %208 {offsets = [0, 32], sizes = [8, 32], strides = [1, 1]} : vector<8x128xf32> to vector<8x32xf32>
    %211 = vector.extract_strided_slice %208 {offsets = [0, 64], sizes = [8, 32], strides = [1, 1]} : vector<8x128xf32> to vector<8x32xf32>
    %212 = vector.extract_strided_slice %208 {offsets = [0, 96], sizes = [8, 32], strides = [1, 1]} : vector<8x128xf32> to vector<8x32xf32>
    %213 = arith.mulf %210, %189 : vector<8x32xf32>
    %214 = arith.mulf %209, %211 : vector<8x32xf32>
    %215 = arith.addf %213, %214 : vector<8x32xf32>
    %216 = math.tanh %215 : vector<8x32xf32>
    %217 = arith.mulf %212, %216 : vector<8x32xf32>
    %218 = arith.index_cast %c7_i32 : i32 to index
    %c0_51 = arith.constant 0 : index
    %c0_52 = arith.constant 0 : index
    %219 = vector.load %arg3[%218, %c0_51, %c0_52] : memref<16x8x32xf32, #tpu.memory_space<vmem>>, vector<1x8x32xf32>
    %220 = vector.shape_cast %219 : vector<1x8x32xf32> to vector<8x32xf32>
    %221 = vector.shape_cast %217 : vector<8x32xf32> to vector<1x8x32xf32>
    tpu.vector_store %arg3[%218, %c0_51, %c0_52], %221 {strides = array<i32>} : memref<16x8x32xf32, #tpu.memory_space<vmem>>, vector<1x8x32xf32>,
    %c8_i32 = arith.constant 8 : i32
    %222 = arith.index_cast %c8_i32 : i32 to index
    %c0_53 = arith.constant 0 : index
    %c0_54 = arith.constant 0 : index
    %223 = vector.load %arg1[%222, %c0_53, %c0_54] : memref<16x8x128xf32, #tpu.memory_space<vmem>>, vector<1x8x128xf32>
    %224 = vector.shape_cast %223 : vector<1x8x128xf32> to vector<8x128xf32>
    %cst_55 = arith.constant dense<0.000000e+00> : vector<8x128xf32>
    %225 = tpu.matmul %217, %0, %cst_55 {dimension_numbers = #tpu.dot_dimension_numbers<[1], [0], [0], [1], [0, 0, 1, 1], [], []>} : vector<8x32xf32>, vector<32x128xf32>, vector<8x128xf32> -> vector<8x128xf32>
    %226 = arith.addf %224, %225 : vector<8x128xf32>
    %227 = arith.mulf %226, %9 : vector<8x128xf32>
    %228 = arith.negf %227 : vector<8x128xf32>
    %229 = math.exp %228 : vector<8x128xf32>
    %cst_56 = arith.constant 1.000000e+00 : f32
    %230 = vector.broadcast %cst_56 : f32 to vector<8x128xf32>
    %231 = arith.addf %230, %229 : vector<8x128xf32>
    %232 = arith.divf %230, %231 : vector<8x128xf32>
    %233 = arith.mulf %232, %9 : vector<8x128xf32>
    %234 = arith.addf %233, %12 : vector<8x128xf32>
    %235 = vector.extract_strided_slice %234 {offsets = [0, 0], sizes = [8, 32], strides = [1, 1]} : vector<8x128xf32> to vector<8x32xf32>
    %236 = vector.extract_strided_slice %234 {offsets = [0, 32], sizes = [8, 32], strides = [1, 1]} : vector<8x128xf32> to vector<8x32xf32>
    %237 = vector.extract_strided_slice %234 {offsets = [0, 64], sizes = [8, 32], strides = [1, 1]} : vector<8x128xf32> to vector<8x32xf32>
    %238 = vector.extract_strided_slice %234 {offsets = [0, 96], sizes = [8, 32], strides = [1, 1]} : vector<8x128xf32> to vector<8x32xf32>
    %239 = arith.mulf %236, %215 : vector<8x32xf32>
    %240 = arith.mulf %235, %237 : vector<8x32xf32>
    %241 = arith.addf %239, %240 : vector<8x32xf32>
    %242 = math.tanh %241 : vector<8x32xf32>
    %243 = arith.mulf %238, %242 : vector<8x32xf32>
    %244 = arith.index_cast %c8_i32 : i32 to index
    %c0_57 = arith.constant 0 : index
    %c0_58 = arith.constant 0 : index
    %245 = vector.load %arg3[%244, %c0_57, %c0_58] : memref<16x8x32xf32, #tpu.memory_space<vmem>>, vector<1x8x32xf32>
    %246 = vector.shape_cast %245 : vector<1x8x32xf32> to vector<8x32xf32>
    %247 = vector.shape_cast %243 : vector<8x32xf32> to vector<1x8x32xf32>
    tpu.vector_store %arg3[%244, %c0_57, %c0_58], %247 {strides = array<i32>} : memref<16x8x32xf32, #tpu.memory_space<vmem>>, vector<1x8x32xf32>,
    %c9_i32 = arith.constant 9 : i32
    %248 = arith.index_cast %c9_i32 : i32 to index
    %c0_59 = arith.constant 0 : index
    %c0_60 = arith.constant 0 : index
    %249 = vector.load %arg1[%248, %c0_59, %c0_60] : memref<16x8x128xf32, #tpu.memory_space<vmem>>, vector<1x8x128xf32>
    %250 = vector.shape_cast %249 : vector<1x8x128xf32> to vector<8x128xf32>
    %cst_61 = arith.constant dense<0.000000e+00> : vector<8x128xf32>
    %251 = tpu.matmul %243, %0, %cst_61 {dimension_numbers = #tpu.dot_dimension_numbers<[1], [0], [0], [1], [0, 0, 1, 1], [], []>} : vector<8x32xf32>, vector<32x128xf32>, vector<8x128xf32> -> vector<8x128xf32>
    %252 = arith.addf %250, %251 : vector<8x128xf32>
    %253 = arith.mulf %252, %9 : vector<8x128xf32>
    %254 = arith.negf %253 : vector<8x128xf32>
    %255 = math.exp %254 : vector<8x128xf32>
    %cst_62 = arith.constant 1.000000e+00 : f32
    %256 = vector.broadcast %cst_62 : f32 to vector<8x128xf32>
    %257 = arith.addf %256, %255 : vector<8x128xf32>
    %258 = arith.divf %256, %257 : vector<8x128xf32>
    %259 = arith.mulf %258, %9 : vector<8x128xf32>
    %260 = arith.addf %259, %12 : vector<8x128xf32>
    %261 = vector.extract_strided_slice %260 {offsets = [0, 0], sizes = [8, 32], strides = [1, 1]} : vector<8x128xf32> to vector<8x32xf32>
    %262 = vector.extract_strided_slice %260 {offsets = [0, 32], sizes = [8, 32], strides = [1, 1]} : vector<8x128xf32> to vector<8x32xf32>
    %263 = vector.extract_strided_slice %260 {offsets = [0, 64], sizes = [8, 32], strides = [1, 1]} : vector<8x128xf32> to vector<8x32xf32>
    %264 = vector.extract_strided_slice %260 {offsets = [0, 96], sizes = [8, 32], strides = [1, 1]} : vector<8x128xf32> to vector<8x32xf32>
    %265 = arith.mulf %262, %241 : vector<8x32xf32>
    %266 = arith.mulf %261, %263 : vector<8x32xf32>
    %267 = arith.addf %265, %266 : vector<8x32xf32>
    %268 = math.tanh %267 : vector<8x32xf32>
    %269 = arith.mulf %264, %268 : vector<8x32xf32>
    %270 = arith.index_cast %c9_i32 : i32 to index
    %c0_63 = arith.constant 0 : index
    %c0_64 = arith.constant 0 : index
    %271 = vector.load %arg3[%270, %c0_63, %c0_64] : memref<16x8x32xf32, #tpu.memory_space<vmem>>, vector<1x8x32xf32>
    %272 = vector.shape_cast %271 : vector<1x8x32xf32> to vector<8x32xf32>
    %273 = vector.shape_cast %269 : vector<8x32xf32> to vector<1x8x32xf32>
    tpu.vector_store %arg3[%270, %c0_63, %c0_64], %273 {strides = array<i32>} : memref<16x8x32xf32, #tpu.memory_space<vmem>>, vector<1x8x32xf32>,
    %c10_i32 = arith.constant 10 : i32
    %274 = arith.index_cast %c10_i32 : i32 to index
    %c0_65 = arith.constant 0 : index
    %c0_66 = arith.constant 0 : index
    %275 = vector.load %arg1[%274, %c0_65, %c0_66] : memref<16x8x128xf32, #tpu.memory_space<vmem>>, vector<1x8x128xf32>
    %276 = vector.shape_cast %275 : vector<1x8x128xf32> to vector<8x128xf32>
    %cst_67 = arith.constant dense<0.000000e+00> : vector<8x128xf32>
    %277 = tpu.matmul %269, %0, %cst_67 {dimension_numbers = #tpu.dot_dimension_numbers<[1], [0], [0], [1], [0, 0, 1, 1], [], []>} : vector<8x32xf32>, vector<32x128xf32>, vector<8x128xf32> -> vector<8x128xf32>
    %278 = arith.addf %276, %277 : vector<8x128xf32>
    %279 = arith.mulf %278, %9 : vector<8x128xf32>
    %280 = arith.negf %279 : vector<8x128xf32>
    %281 = math.exp %280 : vector<8x128xf32>
    %cst_68 = arith.constant 1.000000e+00 : f32
    %282 = vector.broadcast %cst_68 : f32 to vector<8x128xf32>
    %283 = arith.addf %282, %281 : vector<8x128xf32>
    %284 = arith.divf %282, %283 : vector<8x128xf32>
    %285 = arith.mulf %284, %9 : vector<8x128xf32>
    %286 = arith.addf %285, %12 : vector<8x128xf32>
    %287 = vector.extract_strided_slice %286 {offsets = [0, 0], sizes = [8, 32], strides = [1, 1]} : vector<8x128xf32> to vector<8x32xf32>
    %288 = vector.extract_strided_slice %286 {offsets = [0, 32], sizes = [8, 32], strides = [1, 1]} : vector<8x128xf32> to vector<8x32xf32>
    %289 = vector.extract_strided_slice %286 {offsets = [0, 64], sizes = [8, 32], strides = [1, 1]} : vector<8x128xf32> to vector<8x32xf32>
    %290 = vector.extract_strided_slice %286 {offsets = [0, 96], sizes = [8, 32], strides = [1, 1]} : vector<8x128xf32> to vector<8x32xf32>
    %291 = arith.mulf %288, %267 : vector<8x32xf32>
    %292 = arith.mulf %287, %289 : vector<8x32xf32>
    %293 = arith.addf %291, %292 : vector<8x32xf32>
    %294 = math.tanh %293 : vector<8x32xf32>
    %295 = arith.mulf %290, %294 : vector<8x32xf32>
    %296 = arith.index_cast %c10_i32 : i32 to index
    %c0_69 = arith.constant 0 : index
    %c0_70 = arith.constant 0 : index
    %297 = vector.load %arg3[%296, %c0_69, %c0_70] : memref<16x8x32xf32, #tpu.memory_space<vmem>>, vector<1x8x32xf32>
    %298 = vector.shape_cast %297 : vector<1x8x32xf32> to vector<8x32xf32>
    %299 = vector.shape_cast %295 : vector<8x32xf32> to vector<1x8x32xf32>
    tpu.vector_store %arg3[%296, %c0_69, %c0_70], %299 {strides = array<i32>} : memref<16x8x32xf32, #tpu.memory_space<vmem>>, vector<1x8x32xf32>,
    %c11_i32 = arith.constant 11 : i32
    %300 = arith.index_cast %c11_i32 : i32 to index
    %c0_71 = arith.constant 0 : index
    %c0_72 = arith.constant 0 : index
    %301 = vector.load %arg1[%300, %c0_71, %c0_72] : memref<16x8x128xf32, #tpu.memory_space<vmem>>, vector<1x8x128xf32>
    %302 = vector.shape_cast %301 : vector<1x8x128xf32> to vector<8x128xf32>
    %cst_73 = arith.constant dense<0.000000e+00> : vector<8x128xf32>
    %303 = tpu.matmul %295, %0, %cst_73 {dimension_numbers = #tpu.dot_dimension_numbers<[1], [0], [0], [1], [0, 0, 1, 1], [], []>} : vector<8x32xf32>, vector<32x128xf32>, vector<8x128xf32> -> vector<8x128xf32>
    %304 = arith.addf %302, %303 : vector<8x128xf32>
    %305 = arith.mulf %304, %9 : vector<8x128xf32>
    %306 = arith.negf %305 : vector<8x128xf32>
    %307 = math.exp %306 : vector<8x128xf32>
    %cst_74 = arith.constant 1.000000e+00 : f32
    %308 = vector.broadcast %cst_74 : f32 to vector<8x128xf32>
    %309 = arith.addf %308, %307 : vector<8x128xf32>
    %310 = arith.divf %308, %309 : vector<8x128xf32>
    %311 = arith.mulf %310, %9 : vector<8x128xf32>
    %312 = arith.addf %311, %12 : vector<8x128xf32>
    %313 = vector.extract_strided_slice %312 {offsets = [0, 0], sizes = [8, 32], strides = [1, 1]} : vector<8x128xf32> to vector<8x32xf32>
    %314 = vector.extract_strided_slice %312 {offsets = [0, 32], sizes = [8, 32], strides = [1, 1]} : vector<8x128xf32> to vector<8x32xf32>
    %315 = vector.extract_strided_slice %312 {offsets = [0, 64], sizes = [8, 32], strides = [1, 1]} : vector<8x128xf32> to vector<8x32xf32>
    %316 = vector.extract_strided_slice %312 {offsets = [0, 96], sizes = [8, 32], strides = [1, 1]} : vector<8x128xf32> to vector<8x32xf32>
    %317 = arith.mulf %314, %293 : vector<8x32xf32>
    %318 = arith.mulf %313, %315 : vector<8x32xf32>
    %319 = arith.addf %317, %318 : vector<8x32xf32>
    %320 = math.tanh %319 : vector<8x32xf32>
    %321 = arith.mulf %316, %320 : vector<8x32xf32>
    %322 = arith.index_cast %c11_i32 : i32 to index
    %c0_75 = arith.constant 0 : index
    %c0_76 = arith.constant 0 : index
    %323 = vector.load %arg3[%322, %c0_75, %c0_76] : memref<16x8x32xf32, #tpu.memory_space<vmem>>, vector<1x8x32xf32>
    %324 = vector.shape_cast %323 : vector<1x8x32xf32> to vector<8x32xf32>
    %325 = vector.shape_cast %321 : vector<8x32xf32> to vector<1x8x32xf32>
    tpu.vector_store %arg3[%322, %c0_75, %c0_76], %325 {strides = array<i32>} : memref<16x8x32xf32, #tpu.memory_space<vmem>>, vector<1x8x32xf32>,
    %c12_i32 = arith.constant 12 : i32
    %326 = arith.index_cast %c12_i32 : i32 to index
    %c0_77 = arith.constant 0 : index
    %c0_78 = arith.constant 0 : index
    %327 = vector.load %arg1[%326, %c0_77, %c0_78] : memref<16x8x128xf32, #tpu.memory_space<vmem>>, vector<1x8x128xf32>
    %328 = vector.shape_cast %327 : vector<1x8x128xf32> to vector<8x128xf32>
    %cst_79 = arith.constant dense<0.000000e+00> : vector<8x128xf32>
    %329 = tpu.matmul %321, %0, %cst_79 {dimension_numbers = #tpu.dot_dimension_numbers<[1], [0], [0], [1], [0, 0, 1, 1], [], []>} : vector<8x32xf32>, vector<32x128xf32>, vector<8x128xf32> -> vector<8x128xf32>
    %330 = arith.addf %328, %329 : vector<8x128xf32>
    %331 = arith.mulf %330, %9 : vector<8x128xf32>
    %332 = arith.negf %331 : vector<8x128xf32>
    %333 = math.exp %332 : vector<8x128xf32>
    %cst_80 = arith.constant 1.000000e+00 : f32
    %334 = vector.broadcast %cst_80 : f32 to vector<8x128xf32>
    %335 = arith.addf %334, %333 : vector<8x128xf32>
    %336 = arith.divf %334, %335 : vector<8x128xf32>
    %337 = arith.mulf %336, %9 : vector<8x128xf32>
    %338 = arith.addf %337, %12 : vector<8x128xf32>
    %339 = vector.extract_strided_slice %338 {offsets = [0, 0], sizes = [8, 32], strides = [1, 1]} : vector<8x128xf32> to vector<8x32xf32>
    %340 = vector.extract_strided_slice %338 {offsets = [0, 32], sizes = [8, 32], strides = [1, 1]} : vector<8x128xf32> to vector<8x32xf32>
    %341 = vector.extract_strided_slice %338 {offsets = [0, 64], sizes = [8, 32], strides = [1, 1]} : vector<8x128xf32> to vector<8x32xf32>
    %342 = vector.extract_strided_slice %338 {offsets = [0, 96], sizes = [8, 32], strides = [1, 1]} : vector<8x128xf32> to vector<8x32xf32>
    %343 = arith.mulf %340, %319 : vector<8x32xf32>
    %344 = arith.mulf %339, %341 : vector<8x32xf32>
    %345 = arith.addf %343, %344 : vector<8x32xf32>
    %346 = math.tanh %345 : vector<8x32xf32>
    %347 = arith.mulf %342, %346 : vector<8x32xf32>
    %348 = arith.index_cast %c12_i32 : i32 to index
    %c0_81 = arith.constant 0 : index
    %c0_82 = arith.constant 0 : index
    %349 = vector.load %arg3[%348, %c0_81, %c0_82] : memref<16x8x32xf32, #tpu.memory_space<vmem>>, vector<1x8x32xf32>
    %350 = vector.shape_cast %349 : vector<1x8x32xf32> to vector<8x32xf32>
    %351 = vector.shape_cast %347 : vector<8x32xf32> to vector<1x8x32xf32>
    tpu.vector_store %arg3[%348, %c0_81, %c0_82], %351 {strides = array<i32>} : memref<16x8x32xf32, #tpu.memory_space<vmem>>, vector<1x8x32xf32>,
    %c13_i32 = arith.constant 13 : i32
    %352 = arith.index_cast %c13_i32 : i32 to index
    %c0_83 = arith.constant 0 : index
    %c0_84 = arith.constant 0 : index
    %353 = vector.load %arg1[%352, %c0_83, %c0_84] : memref<16x8x128xf32, #tpu.memory_space<vmem>>, vector<1x8x128xf32>
    %354 = vector.shape_cast %353 : vector<1x8x128xf32> to vector<8x128xf32>
    %cst_85 = arith.constant dense<0.000000e+00> : vector<8x128xf32>
    %355 = tpu.matmul %347, %0, %cst_85 {dimension_numbers = #tpu.dot_dimension_numbers<[1], [0], [0], [1], [0, 0, 1, 1], [], []>} : vector<8x32xf32>, vector<32x128xf32>, vector<8x128xf32> -> vector<8x128xf32>
    %356 = arith.addf %354, %355 : vector<8x128xf32>
    %357 = arith.mulf %356, %9 : vector<8x128xf32>
    %358 = arith.negf %357 : vector<8x128xf32>
    %359 = math.exp %358 : vector<8x128xf32>
    %cst_86 = arith.constant 1.000000e+00 : f32
    %360 = vector.broadcast %cst_86 : f32 to vector<8x128xf32>
    %361 = arith.addf %360, %359 : vector<8x128xf32>
    %362 = arith.divf %360, %361 : vector<8x128xf32>
    %363 = arith.mulf %362, %9 : vector<8x128xf32>
    %364 = arith.addf %363, %12 : vector<8x128xf32>
    %365 = vector.extract_strided_slice %364 {offsets = [0, 0], sizes = [8, 32], strides = [1, 1]} : vector<8x128xf32> to vector<8x32xf32>
    %366 = vector.extract_strided_slice %364 {offsets = [0, 32], sizes = [8, 32], strides = [1, 1]} : vector<8x128xf32> to vector<8x32xf32>
    %367 = vector.extract_strided_slice %364 {offsets = [0, 64], sizes = [8, 32], strides = [1, 1]} : vector<8x128xf32> to vector<8x32xf32>
    %368 = vector.extract_strided_slice %364 {offsets = [0, 96], sizes = [8, 32], strides = [1, 1]} : vector<8x128xf32> to vector<8x32xf32>
    %369 = arith.mulf %366, %345 : vector<8x32xf32>
    %370 = arith.mulf %365, %367 : vector<8x32xf32>
    %371 = arith.addf %369, %370 : vector<8x32xf32>
    %372 = math.tanh %371 : vector<8x32xf32>
    %373 = arith.mulf %368, %372 : vector<8x32xf32>
    %374 = arith.index_cast %c13_i32 : i32 to index
    %c0_87 = arith.constant 0 : index
    %c0_88 = arith.constant 0 : index
    %375 = vector.load %arg3[%374, %c0_87, %c0_88] : memref<16x8x32xf32, #tpu.memory_space<vmem>>, vector<1x8x32xf32>
    %376 = vector.shape_cast %375 : vector<1x8x32xf32> to vector<8x32xf32>
    %377 = vector.shape_cast %373 : vector<8x32xf32> to vector<1x8x32xf32>
    tpu.vector_store %arg3[%374, %c0_87, %c0_88], %377 {strides = array<i32>} : memref<16x8x32xf32, #tpu.memory_space<vmem>>, vector<1x8x32xf32>,
    %c14_i32 = arith.constant 14 : i32
    %378 = arith.index_cast %c14_i32 : i32 to index
    %c0_89 = arith.constant 0 : index
    %c0_90 = arith.constant 0 : index
    %379 = vector.load %arg1[%378, %c0_89, %c0_90] : memref<16x8x128xf32, #tpu.memory_space<vmem>>, vector<1x8x128xf32>
    %380 = vector.shape_cast %379 : vector<1x8x128xf32> to vector<8x128xf32>
    %cst_91 = arith.constant dense<0.000000e+00> : vector<8x128xf32>
    %381 = tpu.matmul %373, %0, %cst_91 {dimension_numbers = #tpu.dot_dimension_numbers<[1], [0], [0], [1], [0, 0, 1, 1], [], []>} : vector<8x32xf32>, vector<32x128xf32>, vector<8x128xf32> -> vector<8x128xf32>
    %382 = arith.addf %380, %381 : vector<8x128xf32>
    %383 = arith.mulf %382, %9 : vector<8x128xf32>
    %384 = arith.negf %383 : vector<8x128xf32>
    %385 = math.exp %384 : vector<8x128xf32>
    %cst_92 = arith.constant 1.000000e+00 : f32
    %386 = vector.broadcast %cst_92 : f32 to vector<8x128xf32>
    %387 = arith.addf %386, %385 : vector<8x128xf32>
    %388 = arith.divf %386, %387 : vector<8x128xf32>
    %389 = arith.mulf %388, %9 : vector<8x128xf32>
    %390 = arith.addf %389, %12 : vector<8x128xf32>
    %391 = vector.extract_strided_slice %390 {offsets = [0, 0], sizes = [8, 32], strides = [1, 1]} : vector<8x128xf32> to vector<8x32xf32>
    %392 = vector.extract_strided_slice %390 {offsets = [0, 32], sizes = [8, 32], strides = [1, 1]} : vector<8x128xf32> to vector<8x32xf32>
    %393 = vector.extract_strided_slice %390 {offsets = [0, 64], sizes = [8, 32], strides = [1, 1]} : vector<8x128xf32> to vector<8x32xf32>
    %394 = vector.extract_strided_slice %390 {offsets = [0, 96], sizes = [8, 32], strides = [1, 1]} : vector<8x128xf32> to vector<8x32xf32>
    %395 = arith.mulf %392, %371 : vector<8x32xf32>
    %396 = arith.mulf %391, %393 : vector<8x32xf32>
    %397 = arith.addf %395, %396 : vector<8x32xf32>
    %398 = math.tanh %397 : vector<8x32xf32>
    %399 = arith.mulf %394, %398 : vector<8x32xf32>
    %400 = arith.index_cast %c14_i32 : i32 to index
    %c0_93 = arith.constant 0 : index
    %c0_94 = arith.constant 0 : index
    %401 = vector.load %arg3[%400, %c0_93, %c0_94] : memref<16x8x32xf32, #tpu.memory_space<vmem>>, vector<1x8x32xf32>
    %402 = vector.shape_cast %401 : vector<1x8x32xf32> to vector<8x32xf32>
    %403 = vector.shape_cast %399 : vector<8x32xf32> to vector<1x8x32xf32>
    tpu.vector_store %arg3[%400, %c0_93, %c0_94], %403 {strides = array<i32>} : memref<16x8x32xf32, #tpu.memory_space<vmem>>, vector<1x8x32xf32>,
    %c15_i32 = arith.constant 15 : i32
    %404 = arith.index_cast %c15_i32 : i32 to index
    %c0_95 = arith.constant 0 : index
    %c0_96 = arith.constant 0 : index
    %405 = vector.load %arg1[%404, %c0_95, %c0_96] : memref<16x8x128xf32, #tpu.memory_space<vmem>>, vector<1x8x128xf32>
    %406 = vector.shape_cast %405 : vector<1x8x128xf32> to vector<8x128xf32>
    %cst_97 = arith.constant dense<0.000000e+00> : vector<8x128xf32>
    %407 = tpu.matmul %399, %0, %cst_97 {dimension_numbers = #tpu.dot_dimension_numbers<[1], [0], [0], [1], [0, 0, 1, 1], [], []>} : vector<8x32xf32>, vector<32x128xf32>, vector<8x128xf32> -> vector<8x128xf32>
    %408 = arith.addf %406, %407 : vector<8x128xf32>
    %409 = arith.mulf %408, %9 : vector<8x128xf32>
    %410 = arith.negf %409 : vector<8x128xf32>
    %411 = math.exp %410 : vector<8x128xf32>
    %cst_98 = arith.constant 1.000000e+00 : f32
    %412 = vector.broadcast %cst_98 : f32 to vector<8x128xf32>
    %413 = arith.addf %412, %411 : vector<8x128xf32>
    %414 = arith.divf %412, %413 : vector<8x128xf32>
    %415 = arith.mulf %414, %9 : vector<8x128xf32>
    %416 = arith.addf %415, %12 : vector<8x128xf32>
    %417 = vector.extract_strided_slice %416 {offsets = [0, 0], sizes = [8, 32], strides = [1, 1]} : vector<8x128xf32> to vector<8x32xf32>
    %418 = vector.extract_strided_slice %416 {offsets = [0, 32], sizes = [8, 32], strides = [1, 1]} : vector<8x128xf32> to vector<8x32xf32>
    %419 = vector.extract_strided_slice %416 {offsets = [0, 64], sizes = [8, 32], strides = [1, 1]} : vector<8x128xf32> to vector<8x32xf32>
    %420 = vector.extract_strided_slice %416 {offsets = [0, 96], sizes = [8, 32], strides = [1, 1]} : vector<8x128xf32> to vector<8x32xf32>
    %421 = arith.mulf %418, %397 : vector<8x32xf32>
    %422 = arith.mulf %417, %419 : vector<8x32xf32>
    %423 = arith.addf %421, %422 : vector<8x32xf32>
    %424 = math.tanh %423 : vector<8x32xf32>
    %425 = arith.mulf %420, %424 : vector<8x32xf32>
    %426 = arith.index_cast %c15_i32 : i32 to index
    %c0_99 = arith.constant 0 : index
    %c0_100 = arith.constant 0 : index
    %427 = vector.load %arg3[%426, %c0_99, %c0_100] : memref<16x8x32xf32, #tpu.memory_space<vmem>>, vector<1x8x32xf32>
    %428 = vector.shape_cast %427 : vector<1x8x32xf32> to vector<8x32xf32>
    %429 = vector.shape_cast %425 : vector<8x32xf32> to vector<1x8x32xf32>
    tpu.vector_store %arg3[%426, %c0_99, %c0_100], %429 {strides = array<i32>} : memref<16x8x32xf32, #tpu.memory_space<vmem>>, vector<1x8x32xf32>,
    %c16_i32 = arith.constant 16 : i32
    %c0_101 = arith.constant 0 : index
    %c0_102 = arith.constant 0 : index
    %c0_103 = arith.constant 0 : index
    %430 = vector.load %arg3[%c0_101, %c0_102, %c0_103] : memref<16x8x32xf32, #tpu.memory_space<vmem>>, vector<1x8x32xf32>
    %431 = vector.shape_cast %430 : vector<1x8x32xf32> to vector<8x32xf32>
    %c15 = arith.constant 15 : index
    %c0_104 = arith.constant 0 : index
    %c0_105 = arith.constant 0 : index
    %432 = vector.load %arg3[%c15, %c0_104, %c0_105] : memref<16x8x32xf32, #tpu.memory_space<vmem>>, vector<1x8x32xf32>
    %433 = vector.shape_cast %432 : vector<1x8x32xf32> to vector<8x32xf32>
    %434 = vector.extract_strided_slice %431 {offsets = [0, 0], sizes = [8, 16], strides = [1, 1]} : vector<8x32xf32> to vector<8x16xf32>
    %435 = vector.extract_strided_slice %433 {offsets = [0, 16], sizes = [8, 16], strides = [1, 1]} : vector<8x32xf32> to vector<8x16xf32>
    %436 = tpu.concatenate %434, %435 in 1 : vector<8x16xf32>, vector<8x16xf32> -> vector<8x32xf32>
    %c0_106 = arith.constant 0 : index
    %c0_107 = arith.constant 0 : index
    %c0_108 = arith.constant 0 : index
    %437 = vector.load %arg3[%c0_106, %c0_107, %c0_108] : memref<16x8x32xf32, #tpu.memory_space<vmem>>, vector<1x8x32xf32>
    %438 = vector.shape_cast %437 : vector<1x8x32xf32> to vector<8x32xf32>
    %439 = vector.shape_cast %436 : vector<8x32xf32> to vector<1x8x32xf32>
    tpu.vector_store %arg3[%c0_106, %c0_107, %c0_108], %439 {strides = array<i32>} : memref<16x8x32xf32, #tpu.memory_space<vmem>>, vector<1x8x32xf32>,
    %440 = vector.extract_strided_slice %433 {offsets = [0, 0], sizes = [8, 16], strides = [1, 1]} : vector<8x32xf32> to vector<8x16xf32>
    %441 = vector.extract_strided_slice %431 {offsets = [0, 16], sizes = [8, 16], strides = [1, 1]} : vector<8x32xf32> to vector<8x16xf32>
    %442 = tpu.concatenate %440, %441 in 1 : vector<8x16xf32>, vector<8x16xf32> -> vector<8x32xf32>
    %c15_109 = arith.constant 15 : index
    %c0_110 = arith.constant 0 : index
    %c0_111 = arith.constant 0 : index
    %443 = vector.load %arg3[%c15_109, %c0_110, %c0_111] : memref<16x8x32xf32, #tpu.memory_space<vmem>>, vector<1x8x32xf32>
    %444 = vector.shape_cast %443 : vector<1x8x32xf32> to vector<8x32xf32>
    %445 = vector.shape_cast %442 : vector<8x32xf32> to vector<1x8x32xf32>
    tpu.vector_store %arg3[%c15_109, %c0_110, %c0_111], %445 {strides = array<i32>} : memref<16x8x32xf32, #tpu.memory_space<vmem>>, vector<1x8x32xf32>,
    %c1 = arith.constant 1 : index
    %c0_112 = arith.constant 0 : index
    %c0_113 = arith.constant 0 : index
    %446 = vector.load %arg3[%c1, %c0_112, %c0_113] : memref<16x8x32xf32, #tpu.memory_space<vmem>>, vector<1x8x32xf32>
    %447 = vector.shape_cast %446 : vector<1x8x32xf32> to vector<8x32xf32>
    %c14 = arith.constant 14 : index
    %c0_114 = arith.constant 0 : index
    %c0_115 = arith.constant 0 : index
    %448 = vector.load %arg3[%c14, %c0_114, %c0_115] : memref<16x8x32xf32, #tpu.memory_space<vmem>>, vector<1x8x32xf32>
    %449 = vector.shape_cast %448 : vector<1x8x32xf32> to vector<8x32xf32>
    %450 = vector.extract_strided_slice %447 {offsets = [0, 0], sizes = [8, 16], strides = [1, 1]} : vector<8x32xf32> to vector<8x16xf32>
    %451 = vector.extract_strided_slice %449 {offsets = [0, 16], sizes = [8, 16], strides = [1, 1]} : vector<8x32xf32> to vector<8x16xf32>
    %452 = tpu.concatenate %450, %451 in 1 : vector<8x16xf32>, vector<8x16xf32> -> vector<8x32xf32>
    %c1_116 = arith.constant 1 : index
    %c0_117 = arith.constant 0 : index
    %c0_118 = arith.constant 0 : index
    %453 = vector.load %arg3[%c1_116, %c0_117, %c0_118] : memref<16x8x32xf32, #tpu.memory_space<vmem>>, vector<1x8x32xf32>
    %454 = vector.shape_cast %453 : vector<1x8x32xf32> to vector<8x32xf32>
    %455 = vector.shape_cast %452 : vector<8x32xf32> to vector<1x8x32xf32>
    tpu.vector_store %arg3[%c1_116, %c0_117, %c0_118], %455 {strides = array<i32>} : memref<16x8x32xf32, #tpu.memory_space<vmem>>, vector<1x8x32xf32>,
    %456 = vector.extract_strided_slice %449 {offsets = [0, 0], sizes = [8, 16], strides = [1, 1]} : vector<8x32xf32> to vector<8x16xf32>
    %457 = vector.extract_strided_slice %447 {offsets = [0, 16], sizes = [8, 16], strides = [1, 1]} : vector<8x32xf32> to vector<8x16xf32>
    %458 = tpu.concatenate %456, %457 in 1 : vector<8x16xf32>, vector<8x16xf32> -> vector<8x32xf32>
    %c14_119 = arith.constant 14 : index
    %c0_120 = arith.constant 0 : index
    %c0_121 = arith.constant 0 : index
    %459 = vector.load %arg3[%c14_119, %c0_120, %c0_121] : memref<16x8x32xf32, #tpu.memory_space<vmem>>, vector<1x8x32xf32>
    %460 = vector.shape_cast %459 : vector<1x8x32xf32> to vector<8x32xf32>
    %461 = vector.shape_cast %458 : vector<8x32xf32> to vector<1x8x32xf32>
    tpu.vector_store %arg3[%c14_119, %c0_120, %c0_121], %461 {strides = array<i32>} : memref<16x8x32xf32, #tpu.memory_space<vmem>>, vector<1x8x32xf32>,
    %c2 = arith.constant 2 : index
    %c0_122 = arith.constant 0 : index
    %c0_123 = arith.constant 0 : index
    %462 = vector.load %arg3[%c2, %c0_122, %c0_123] : memref<16x8x32xf32, #tpu.memory_space<vmem>>, vector<1x8x32xf32>
    %463 = vector.shape_cast %462 : vector<1x8x32xf32> to vector<8x32xf32>
    %c13 = arith.constant 13 : index
    %c0_124 = arith.constant 0 : index
    %c0_125 = arith.constant 0 : index
    %464 = vector.load %arg3[%c13, %c0_124, %c0_125] : memref<16x8x32xf32, #tpu.memory_space<vmem>>, vector<1x8x32xf32>
    %465 = vector.shape_cast %464 : vector<1x8x32xf32> to vector<8x32xf32>
    %466 = vector.extract_strided_slice %463 {offsets = [0, 0], sizes = [8, 16], strides = [1, 1]} : vector<8x32xf32> to vector<8x16xf32>
    %467 = vector.extract_strided_slice %465 {offsets = [0, 16], sizes = [8, 16], strides = [1, 1]} : vector<8x32xf32> to vector<8x16xf32>
    %468 = tpu.concatenate %466, %467 in 1 : vector<8x16xf32>, vector<8x16xf32> -> vector<8x32xf32>
    %c2_126 = arith.constant 2 : index
    %c0_127 = arith.constant 0 : index
    %c0_128 = arith.constant 0 : index
    %469 = vector.load %arg3[%c2_126, %c0_127, %c0_128] : memref<16x8x32xf32, #tpu.memory_space<vmem>>, vector<1x8x32xf32>
    %470 = vector.shape_cast %469 : vector<1x8x32xf32> to vector<8x32xf32>
    %471 = vector.shape_cast %468 : vector<8x32xf32> to vector<1x8x32xf32>
    tpu.vector_store %arg3[%c2_126, %c0_127, %c0_128], %471 {strides = array<i32>} : memref<16x8x32xf32, #tpu.memory_space<vmem>>, vector<1x8x32xf32>,
    %472 = vector.extract_strided_slice %465 {offsets = [0, 0], sizes = [8, 16], strides = [1, 1]} : vector<8x32xf32> to vector<8x16xf32>
    %473 = vector.extract_strided_slice %463 {offsets = [0, 16], sizes = [8, 16], strides = [1, 1]} : vector<8x32xf32> to vector<8x16xf32>
    %474 = tpu.concatenate %472, %473 in 1 : vector<8x16xf32>, vector<8x16xf32> -> vector<8x32xf32>
    %c13_129 = arith.constant 13 : index
    %c0_130 = arith.constant 0 : index
    %c0_131 = arith.constant 0 : index
    %475 = vector.load %arg3[%c13_129, %c0_130, %c0_131] : memref<16x8x32xf32, #tpu.memory_space<vmem>>, vector<1x8x32xf32>
    %476 = vector.shape_cast %475 : vector<1x8x32xf32> to vector<8x32xf32>
    %477 = vector.shape_cast %474 : vector<8x32xf32> to vector<1x8x32xf32>
    tpu.vector_store %arg3[%c13_129, %c0_130, %c0_131], %477 {strides = array<i32>} : memref<16x8x32xf32, #tpu.memory_space<vmem>>, vector<1x8x32xf32>,
    %c3 = arith.constant 3 : index
    %c0_132 = arith.constant 0 : index
    %c0_133 = arith.constant 0 : index
    %478 = vector.load %arg3[%c3, %c0_132, %c0_133] : memref<16x8x32xf32, #tpu.memory_space<vmem>>, vector<1x8x32xf32>
    %479 = vector.shape_cast %478 : vector<1x8x32xf32> to vector<8x32xf32>
    %c12 = arith.constant 12 : index
    %c0_134 = arith.constant 0 : index
    %c0_135 = arith.constant 0 : index
    %480 = vector.load %arg3[%c12, %c0_134, %c0_135] : memref<16x8x32xf32, #tpu.memory_space<vmem>>, vector<1x8x32xf32>
    %481 = vector.shape_cast %480 : vector<1x8x32xf32> to vector<8x32xf32>
    %482 = vector.extract_strided_slice %479 {offsets = [0, 0], sizes = [8, 16], strides = [1, 1]} : vector<8x32xf32> to vector<8x16xf32>
    %483 = vector.extract_strided_slice %481 {offsets = [0, 16], sizes = [8, 16], strides = [1, 1]} : vector<8x32xf32> to vector<8x16xf32>
    %484 = tpu.concatenate %482, %483 in 1 : vector<8x16xf32>, vector<8x16xf32> -> vector<8x32xf32>
    %c3_136 = arith.constant 3 : index
    %c0_137 = arith.constant 0 : index
    %c0_138 = arith.constant 0 : index
    %485 = vector.load %arg3[%c3_136, %c0_137, %c0_138] : memref<16x8x32xf32, #tpu.memory_space<vmem>>, vector<1x8x32xf32>
    %486 = vector.shape_cast %485 : vector<1x8x32xf32> to vector<8x32xf32>
    %487 = vector.shape_cast %484 : vector<8x32xf32> to vector<1x8x32xf32>
    tpu.vector_store %arg3[%c3_136, %c0_137, %c0_138], %487 {strides = array<i32>} : memref<16x8x32xf32, #tpu.memory_space<vmem>>, vector<1x8x32xf32>,
    %488 = vector.extract_strided_slice %481 {offsets = [0, 0], sizes = [8, 16], strides = [1, 1]} : vector<8x32xf32> to vector<8x16xf32>
    %489 = vector.extract_strided_slice %479 {offsets = [0, 16], sizes = [8, 16], strides = [1, 1]} : vector<8x32xf32> to vector<8x16xf32>
    %490 = tpu.concatenate %488, %489 in 1 : vector<8x16xf32>, vector<8x16xf32> -> vector<8x32xf32>
    %c12_139 = arith.constant 12 : index
    %c0_140 = arith.constant 0 : index
    %c0_141 = arith.constant 0 : index
    %491 = vector.load %arg3[%c12_139, %c0_140, %c0_141] : memref<16x8x32xf32, #tpu.memory_space<vmem>>, vector<1x8x32xf32>
    %492 = vector.shape_cast %491 : vector<1x8x32xf32> to vector<8x32xf32>
    %493 = vector.shape_cast %490 : vector<8x32xf32> to vector<1x8x32xf32>
    tpu.vector_store %arg3[%c12_139, %c0_140, %c0_141], %493 {strides = array<i32>} : memref<16x8x32xf32, #tpu.memory_space<vmem>>, vector<1x8x32xf32>,
    %c4 = arith.constant 4 : index
    %c0_142 = arith.constant 0 : index
    %c0_143 = arith.constant 0 : index
    %494 = vector.load %arg3[%c4, %c0_142, %c0_143] : memref<16x8x32xf32, #tpu.memory_space<vmem>>, vector<1x8x32xf32>
    %495 = vector.shape_cast %494 : vector<1x8x32xf32> to vector<8x32xf32>
    %c11 = arith.constant 11 : index
    %c0_144 = arith.constant 0 : index
    %c0_145 = arith.constant 0 : index
    %496 = vector.load %arg3[%c11, %c0_144, %c0_145] : memref<16x8x32xf32, #tpu.memory_space<vmem>>, vector<1x8x32xf32>
    %497 = vector.shape_cast %496 : vector<1x8x32xf32> to vector<8x32xf32>
    %498 = vector.extract_strided_slice %495 {offsets = [0, 0], sizes = [8, 16], strides = [1, 1]} : vector<8x32xf32> to vector<8x16xf32>
    %499 = vector.extract_strided_slice %497 {offsets = [0, 16], sizes = [8, 16], strides = [1, 1]} : vector<8x32xf32> to vector<8x16xf32>
    %500 = tpu.concatenate %498, %499 in 1 : vector<8x16xf32>, vector<8x16xf32> -> vector<8x32xf32>
    %c4_146 = arith.constant 4 : index
    %c0_147 = arith.constant 0 : index
    %c0_148 = arith.constant 0 : index
    %501 = vector.load %arg3[%c4_146, %c0_147, %c0_148] : memref<16x8x32xf32, #tpu.memory_space<vmem>>, vector<1x8x32xf32>
    %502 = vector.shape_cast %501 : vector<1x8x32xf32> to vector<8x32xf32>
    %503 = vector.shape_cast %500 : vector<8x32xf32> to vector<1x8x32xf32>
    tpu.vector_store %arg3[%c4_146, %c0_147, %c0_148], %503 {strides = array<i32>} : memref<16x8x32xf32, #tpu.memory_space<vmem>>, vector<1x8x32xf32>,
    %504 = vector.extract_strided_slice %497 {offsets = [0, 0], sizes = [8, 16], strides = [1, 1]} : vector<8x32xf32> to vector<8x16xf32>
    %505 = vector.extract_strided_slice %495 {offsets = [0, 16], sizes = [8, 16], strides = [1, 1]} : vector<8x32xf32> to vector<8x16xf32>
    %506 = tpu.concatenate %504, %505 in 1 : vector<8x16xf32>, vector<8x16xf32> -> vector<8x32xf32>
    %c11_149 = arith.constant 11 : index
    %c0_150 = arith.constant 0 : index
    %c0_151 = arith.constant 0 : index
    %507 = vector.load %arg3[%c11_149, %c0_150, %c0_151] : memref<16x8x32xf32, #tpu.memory_space<vmem>>, vector<1x8x32xf32>
    %508 = vector.shape_cast %507 : vector<1x8x32xf32> to vector<8x32xf32>
    %509 = vector.shape_cast %506 : vector<8x32xf32> to vector<1x8x32xf32>
    tpu.vector_store %arg3[%c11_149, %c0_150, %c0_151], %509 {strides = array<i32>} : memref<16x8x32xf32, #tpu.memory_space<vmem>>, vector<1x8x32xf32>,
    %c5 = arith.constant 5 : index
    %c0_152 = arith.constant 0 : index
    %c0_153 = arith.constant 0 : index
    %510 = vector.load %arg3[%c5, %c0_152, %c0_153] : memref<16x8x32xf32, #tpu.memory_space<vmem>>, vector<1x8x32xf32>
    %511 = vector.shape_cast %510 : vector<1x8x32xf32> to vector<8x32xf32>
    %c10 = arith.constant 10 : index
    %c0_154 = arith.constant 0 : index
    %c0_155 = arith.constant 0 : index
    %512 = vector.load %arg3[%c10, %c0_154, %c0_155] : memref<16x8x32xf32, #tpu.memory_space<vmem>>, vector<1x8x32xf32>
    %513 = vector.shape_cast %512 : vector<1x8x32xf32> to vector<8x32xf32>
    %514 = vector.extract_strided_slice %511 {offsets = [0, 0], sizes = [8, 16], strides = [1, 1]} : vector<8x32xf32> to vector<8x16xf32>
    %515 = vector.extract_strided_slice %513 {offsets = [0, 16], sizes = [8, 16], strides = [1, 1]} : vector<8x32xf32> to vector<8x16xf32>
    %516 = tpu.concatenate %514, %515 in 1 : vector<8x16xf32>, vector<8x16xf32> -> vector<8x32xf32>
    %c5_156 = arith.constant 5 : index
    %c0_157 = arith.constant 0 : index
    %c0_158 = arith.constant 0 : index
    %517 = vector.load %arg3[%c5_156, %c0_157, %c0_158] : memref<16x8x32xf32, #tpu.memory_space<vmem>>, vector<1x8x32xf32>
    %518 = vector.shape_cast %517 : vector<1x8x32xf32> to vector<8x32xf32>
    %519 = vector.shape_cast %516 : vector<8x32xf32> to vector<1x8x32xf32>
    tpu.vector_store %arg3[%c5_156, %c0_157, %c0_158], %519 {strides = array<i32>} : memref<16x8x32xf32, #tpu.memory_space<vmem>>, vector<1x8x32xf32>,
    %520 = vector.extract_strided_slice %513 {offsets = [0, 0], sizes = [8, 16], strides = [1, 1]} : vector<8x32xf32> to vector<8x16xf32>
    %521 = vector.extract_strided_slice %511 {offsets = [0, 16], sizes = [8, 16], strides = [1, 1]} : vector<8x32xf32> to vector<8x16xf32>
    %522 = tpu.concatenate %520, %521 in 1 : vector<8x16xf32>, vector<8x16xf32> -> vector<8x32xf32>
    %c10_159 = arith.constant 10 : index
    %c0_160 = arith.constant 0 : index
    %c0_161 = arith.constant 0 : index
    %523 = vector.load %arg3[%c10_159, %c0_160, %c0_161] : memref<16x8x32xf32, #tpu.memory_space<vmem>>, vector<1x8x32xf32>
    %524 = vector.shape_cast %523 : vector<1x8x32xf32> to vector<8x32xf32>
    %525 = vector.shape_cast %522 : vector<8x32xf32> to vector<1x8x32xf32>
    tpu.vector_store %arg3[%c10_159, %c0_160, %c0_161], %525 {strides = array<i32>} : memref<16x8x32xf32, #tpu.memory_space<vmem>>, vector<1x8x32xf32>,
    %c6 = arith.constant 6 : index
    %c0_162 = arith.constant 0 : index
    %c0_163 = arith.constant 0 : index
    %526 = vector.load %arg3[%c6, %c0_162, %c0_163] : memref<16x8x32xf32, #tpu.memory_space<vmem>>, vector<1x8x32xf32>
    %527 = vector.shape_cast %526 : vector<1x8x32xf32> to vector<8x32xf32>
    %c9 = arith.constant 9 : index
    %c0_164 = arith.constant 0 : index
    %c0_165 = arith.constant 0 : index
    %528 = vector.load %arg3[%c9, %c0_164, %c0_165] : memref<16x8x32xf32, #tpu.memory_space<vmem>>, vector<1x8x32xf32>
    %529 = vector.shape_cast %528 : vector<1x8x32xf32> to vector<8x32xf32>
    %530 = vector.extract_strided_slice %527 {offsets = [0, 0], sizes = [8, 16], strides = [1, 1]} : vector<8x32xf32> to vector<8x16xf32>
    %531 = vector.extract_strided_slice %529 {offsets = [0, 16], sizes = [8, 16], strides = [1, 1]} : vector<8x32xf32> to vector<8x16xf32>
    %532 = tpu.concatenate %530, %531 in 1 : vector<8x16xf32>, vector<8x16xf32> -> vector<8x32xf32>
    %c6_166 = arith.constant 6 : index
    %c0_167 = arith.constant 0 : index
    %c0_168 = arith.constant 0 : index
    %533 = vector.load %arg3[%c6_166, %c0_167, %c0_168] : memref<16x8x32xf32, #tpu.memory_space<vmem>>, vector<1x8x32xf32>
    %534 = vector.shape_cast %533 : vector<1x8x32xf32> to vector<8x32xf32>
    %535 = vector.shape_cast %532 : vector<8x32xf32> to vector<1x8x32xf32>
    tpu.vector_store %arg3[%c6_166, %c0_167, %c0_168], %535 {strides = array<i32>} : memref<16x8x32xf32, #tpu.memory_space<vmem>>, vector<1x8x32xf32>,
    %536 = vector.extract_strided_slice %529 {offsets = [0, 0], sizes = [8, 16], strides = [1, 1]} : vector<8x32xf32> to vector<8x16xf32>
    %537 = vector.extract_strided_slice %527 {offsets = [0, 16], sizes = [8, 16], strides = [1, 1]} : vector<8x32xf32> to vector<8x16xf32>
    %538 = tpu.concatenate %536, %537 in 1 : vector<8x16xf32>, vector<8x16xf32> -> vector<8x32xf32>
    %c9_169 = arith.constant 9 : index
    %c0_170 = arith.constant 0 : index
    %c0_171 = arith.constant 0 : index
    %539 = vector.load %arg3[%c9_169, %c0_170, %c0_171] : memref<16x8x32xf32, #tpu.memory_space<vmem>>, vector<1x8x32xf32>
    %540 = vector.shape_cast %539 : vector<1x8x32xf32> to vector<8x32xf32>
    %541 = vector.shape_cast %538 : vector<8x32xf32> to vector<1x8x32xf32>
    tpu.vector_store %arg3[%c9_169, %c0_170, %c0_171], %541 {strides = array<i32>} : memref<16x8x32xf32, #tpu.memory_space<vmem>>, vector<1x8x32xf32>,
    %c7 = arith.constant 7 : index
    %c0_172 = arith.constant 0 : index
    %c0_173 = arith.constant 0 : index
    %542 = vector.load %arg3[%c7, %c0_172, %c0_173] : memref<16x8x32xf32, #tpu.memory_space<vmem>>, vector<1x8x32xf32>
    %543 = vector.shape_cast %542 : vector<1x8x32xf32> to vector<8x32xf32>
    %c8 = arith.constant 8 : index
    %c0_174 = arith.constant 0 : index
    %c0_175 = arith.constant 0 : index
    %544 = vector.load %arg3[%c8, %c0_174, %c0_175] : memref<16x8x32xf32, #tpu.memory_space<vmem>>, vector<1x8x32xf32>
    %545 = vector.shape_cast %544 : vector<1x8x32xf32> to vector<8x32xf32>
    %546 = vector.extract_strided_slice %543 {offsets = [0, 0], sizes = [8, 16], strides = [1, 1]} : vector<8x32xf32> to vector<8x16xf32>
    %547 = vector.extract_strided_slice %545 {offsets = [0, 16], sizes = [8, 16], strides = [1, 1]} : vector<8x32xf32> to vector<8x16xf32>
    %548 = tpu.concatenate %546, %547 in 1 : vector<8x16xf32>, vector<8x16xf32> -> vector<8x32xf32>
    %c7_176 = arith.constant 7 : index
    %c0_177 = arith.constant 0 : index
    %c0_178 = arith.constant 0 : index
    %549 = vector.load %arg3[%c7_176, %c0_177, %c0_178] : memref<16x8x32xf32, #tpu.memory_space<vmem>>, vector<1x8x32xf32>
    %550 = vector.shape_cast %549 : vector<1x8x32xf32> to vector<8x32xf32>
    %551 = vector.shape_cast %548 : vector<8x32xf32> to vector<1x8x32xf32>
    tpu.vector_store %arg3[%c7_176, %c0_177, %c0_178], %551 {strides = array<i32>} : memref<16x8x32xf32, #tpu.memory_space<vmem>>, vector<1x8x32xf32>,
    %552 = vector.extract_strided_slice %545 {offsets = [0, 0], sizes = [8, 16], strides = [1, 1]} : vector<8x32xf32> to vector<8x16xf32>
    %553 = vector.extract_strided_slice %543 {offsets = [0, 16], sizes = [8, 16], strides = [1, 1]} : vector<8x32xf32> to vector<8x16xf32>
    %554 = tpu.concatenate %552, %553 in 1 : vector<8x16xf32>, vector<8x16xf32> -> vector<8x32xf32>
    %c8_179 = arith.constant 8 : index
    %c0_180 = arith.constant 0 : index
    %c0_181 = arith.constant 0 : index
    %555 = vector.load %arg3[%c8_179, %c0_180, %c0_181] : memref<16x8x32xf32, #tpu.memory_space<vmem>>, vector<1x8x32xf32>
    %556 = vector.shape_cast %555 : vector<1x8x32xf32> to vector<8x32xf32>
    %557 = vector.shape_cast %554 : vector<8x32xf32> to vector<1x8x32xf32>
    tpu.vector_store %arg3[%c8_179, %c0_180, %c0_181], %557 {strides = array<i32>} : memref<16x8x32xf32, #tpu.memory_space<vmem>>, vector<1x8x32xf32>,
    return
  }
  func.func @transform_0(%arg0: i32) -> (i32, i32, i32) {
    %c0_i32 = arith.constant 0 : i32
    %c0_i32_0 = arith.constant 0 : i32
    %c0_i32_1 = arith.constant 0 : i32
    return %c0_i32, %arg0, %c0_i32_0 : i32, i32, i32
  }
  func.func @transform_1(%arg0: i32) -> (i32, i32) {
    %c0_i32 = arith.constant 0 : i32
    %c0_i32_0 = arith.constant 0 : i32
    %c0_i32_1 = arith.constant 0 : i32
    return %c0_i32, %c0_i32_0 : i32, i32
  }
  func.func @transform_2(%arg0: i32) -> (i32, i32, i32) {
    %c0_i32 = arith.constant 0 : i32
    %c0_i32_0 = arith.constant 0 : i32
    %c0_i32_1 = arith.constant 0 : i32
    return %c0_i32, %arg0, %c0_i32_0 : i32, i32, i32
  }
}

module attributes {stable_mosaic.version = 11 : i64} {
  func.func @bilstm_kernel(%arg0: i32, %arg1: memref<8x16x128xf32, #tpu.memory_space<vmem>>, %arg2: memref<32x128xf32, #tpu.memory_space<vmem>>, %arg3: memref<8x16x32xf32, #tpu.memory_space<vmem>>) attributes {dimension_semantics = [#tpu.dimension_semantics<parallel>], iteration_bounds = array<i64: 2>, scalar_prefetch = 0 : i64, scratch_operands = 0 : i64, tpu.core_type = #tpu.core_type<tc>, window_params = [{transform_indices = @transform_0, window_bounds = array<i64: 8, 16, 128>}, {pipeline_mode = #tpu.pipeline_mode<synchronous>, transform_indices = @transform_1, window_bounds = array<i64: 32, 128>}, {transform_indices = @transform_2, window_bounds = array<i64: 8, 16, 32>}]} {
    %c0 = arith.constant 0 : index
    %c0_0 = arith.constant 0 : index
    %0 = vector.load %arg2[%c0, %c0_0] : memref<32x128xf32, #tpu.memory_space<vmem>>, vector<32x128xf32>
    %1 = tpu.iota {dimensions = array<i32: 1>} : vector<16x128xi32>
    %c64_i32 = arith.constant 64 : i32
    %2 = vector.broadcast %c64_i32 : i32 to vector<16x128xi32>
    %3 = arith.cmpi sge, %1, %2 : vector<16x128xi32>
    %c96_i32 = arith.constant 96 : i32
    %4 = vector.broadcast %c96_i32 : i32 to vector<16x128xi32>
    %5 = arith.cmpi slt, %1, %4 : vector<16x128xi32>
    %6 = arith.andi %3, %5 : vector<16x128xi1>
    %cst = arith.constant 2.000000e+00 : f32
    %cst_1 = arith.constant 1.000000e+00 : f32
    %7 = vector.broadcast %cst : f32 to vector<16x128xf32>
    %8 = vector.broadcast %cst_1 : f32 to vector<16x128xf32>
    %9 = arith.select %6, %7, %8 : vector<16x128xi1>, vector<16x128xf32>
    %cst_2 = arith.constant -1.000000e+00 : f32
    %cst_3 = arith.constant 0.000000e+00 : f32
    %10 = vector.broadcast %cst_2 : f32 to vector<16x128xf32>
    %11 = vector.broadcast %cst_3 : f32 to vector<16x128xf32>
    %12 = arith.select %6, %10, %11 : vector<16x128xi1>, vector<16x128xf32>
    %cst_4 = arith.constant 0.000000e+00 : f32
    %13 = vector.broadcast %cst_4 : f32 to vector<16x32xf32>
    %c0_i32 = arith.constant 0 : i32
    %14 = arith.index_cast %c0_i32 : i32 to index
    %c0_5 = arith.constant 0 : index
    %c0_6 = arith.constant 0 : index
    %15 = vector.load %arg1[%14, %c0_5, %c0_6] : memref<8x16x128xf32, #tpu.memory_space<vmem>>, vector<1x16x128xf32>
    %16 = vector.shape_cast %15 : vector<1x16x128xf32> to vector<16x128xf32>
    %cst_7 = arith.constant dense<0.000000e+00> : vector<16x128xf32>
    %17 = tpu.matmul %13, %0, %cst_7 {dimension_numbers = #tpu.dot_dimension_numbers<[1], [0], [0], [1], [0, 0, 1, 1], [], []>} : vector<16x32xf32>, vector<32x128xf32>, vector<16x128xf32> -> vector<16x128xf32>
    %18 = arith.addf %16, %17 : vector<16x128xf32>
    %19 = arith.mulf %18, %9 : vector<16x128xf32>
    %20 = arith.negf %19 : vector<16x128xf32>
    %21 = math.exp %20 : vector<16x128xf32>
    %cst_8 = arith.constant 1.000000e+00 : f32
    %22 = vector.broadcast %cst_8 : f32 to vector<16x128xf32>
    %23 = arith.addf %22, %21 : vector<16x128xf32>
    %24 = arith.divf %22, %23 : vector<16x128xf32>
    %25 = arith.mulf %24, %9 : vector<16x128xf32>
    %26 = arith.addf %25, %12 : vector<16x128xf32>
    %27 = vector.extract_strided_slice %26 {offsets = [0, 0], sizes = [16, 32], strides = [1, 1]} : vector<16x128xf32> to vector<16x32xf32>
    %28 = vector.extract_strided_slice %26 {offsets = [0, 32], sizes = [16, 32], strides = [1, 1]} : vector<16x128xf32> to vector<16x32xf32>
    %29 = vector.extract_strided_slice %26 {offsets = [0, 64], sizes = [16, 32], strides = [1, 1]} : vector<16x128xf32> to vector<16x32xf32>
    %30 = vector.extract_strided_slice %26 {offsets = [0, 96], sizes = [16, 32], strides = [1, 1]} : vector<16x128xf32> to vector<16x32xf32>
    %31 = arith.mulf %28, %13 : vector<16x32xf32>
    %32 = arith.mulf %27, %29 : vector<16x32xf32>
    %33 = arith.addf %31, %32 : vector<16x32xf32>
    %34 = math.tanh %33 : vector<16x32xf32>
    %35 = arith.mulf %30, %34 : vector<16x32xf32>
    %36 = arith.index_cast %c0_i32 : i32 to index
    %c0_9 = arith.constant 0 : index
    %c0_10 = arith.constant 0 : index
    %37 = vector.load %arg3[%36, %c0_9, %c0_10] : memref<8x16x32xf32, #tpu.memory_space<vmem>>, vector<1x16x32xf32>
    %38 = vector.shape_cast %37 : vector<1x16x32xf32> to vector<16x32xf32>
    %39 = vector.shape_cast %35 : vector<16x32xf32> to vector<1x16x32xf32>
    tpu.vector_store %arg3[%36, %c0_9, %c0_10], %39 {strides = array<i32>} : memref<8x16x32xf32, #tpu.memory_space<vmem>>, vector<1x16x32xf32>,
    %c1_i32 = arith.constant 1 : i32
    %40 = arith.index_cast %c1_i32 : i32 to index
    %c0_11 = arith.constant 0 : index
    %c0_12 = arith.constant 0 : index
    %41 = vector.load %arg1[%40, %c0_11, %c0_12] : memref<8x16x128xf32, #tpu.memory_space<vmem>>, vector<1x16x128xf32>
    %42 = vector.shape_cast %41 : vector<1x16x128xf32> to vector<16x128xf32>
    %cst_13 = arith.constant dense<0.000000e+00> : vector<16x128xf32>
    %43 = tpu.matmul %35, %0, %cst_13 {dimension_numbers = #tpu.dot_dimension_numbers<[1], [0], [0], [1], [0, 0, 1, 1], [], []>} : vector<16x32xf32>, vector<32x128xf32>, vector<16x128xf32> -> vector<16x128xf32>
    %44 = arith.addf %42, %43 : vector<16x128xf32>
    %45 = arith.mulf %44, %9 : vector<16x128xf32>
    %46 = arith.negf %45 : vector<16x128xf32>
    %47 = math.exp %46 : vector<16x128xf32>
    %cst_14 = arith.constant 1.000000e+00 : f32
    %48 = vector.broadcast %cst_14 : f32 to vector<16x128xf32>
    %49 = arith.addf %48, %47 : vector<16x128xf32>
    %50 = arith.divf %48, %49 : vector<16x128xf32>
    %51 = arith.mulf %50, %9 : vector<16x128xf32>
    %52 = arith.addf %51, %12 : vector<16x128xf32>
    %53 = vector.extract_strided_slice %52 {offsets = [0, 0], sizes = [16, 32], strides = [1, 1]} : vector<16x128xf32> to vector<16x32xf32>
    %54 = vector.extract_strided_slice %52 {offsets = [0, 32], sizes = [16, 32], strides = [1, 1]} : vector<16x128xf32> to vector<16x32xf32>
    %55 = vector.extract_strided_slice %52 {offsets = [0, 64], sizes = [16, 32], strides = [1, 1]} : vector<16x128xf32> to vector<16x32xf32>
    %56 = vector.extract_strided_slice %52 {offsets = [0, 96], sizes = [16, 32], strides = [1, 1]} : vector<16x128xf32> to vector<16x32xf32>
    %57 = arith.mulf %54, %33 : vector<16x32xf32>
    %58 = arith.mulf %53, %55 : vector<16x32xf32>
    %59 = arith.addf %57, %58 : vector<16x32xf32>
    %60 = math.tanh %59 : vector<16x32xf32>
    %61 = arith.mulf %56, %60 : vector<16x32xf32>
    %62 = arith.index_cast %c1_i32 : i32 to index
    %c0_15 = arith.constant 0 : index
    %c0_16 = arith.constant 0 : index
    %63 = vector.load %arg3[%62, %c0_15, %c0_16] : memref<8x16x32xf32, #tpu.memory_space<vmem>>, vector<1x16x32xf32>
    %64 = vector.shape_cast %63 : vector<1x16x32xf32> to vector<16x32xf32>
    %65 = vector.shape_cast %61 : vector<16x32xf32> to vector<1x16x32xf32>
    tpu.vector_store %arg3[%62, %c0_15, %c0_16], %65 {strides = array<i32>} : memref<8x16x32xf32, #tpu.memory_space<vmem>>, vector<1x16x32xf32>,
    %c2_i32 = arith.constant 2 : i32
    %66 = arith.index_cast %c2_i32 : i32 to index
    %c0_17 = arith.constant 0 : index
    %c0_18 = arith.constant 0 : index
    %67 = vector.load %arg1[%66, %c0_17, %c0_18] : memref<8x16x128xf32, #tpu.memory_space<vmem>>, vector<1x16x128xf32>
    %68 = vector.shape_cast %67 : vector<1x16x128xf32> to vector<16x128xf32>
    %cst_19 = arith.constant dense<0.000000e+00> : vector<16x128xf32>
    %69 = tpu.matmul %61, %0, %cst_19 {dimension_numbers = #tpu.dot_dimension_numbers<[1], [0], [0], [1], [0, 0, 1, 1], [], []>} : vector<16x32xf32>, vector<32x128xf32>, vector<16x128xf32> -> vector<16x128xf32>
    %70 = arith.addf %68, %69 : vector<16x128xf32>
    %71 = arith.mulf %70, %9 : vector<16x128xf32>
    %72 = arith.negf %71 : vector<16x128xf32>
    %73 = math.exp %72 : vector<16x128xf32>
    %cst_20 = arith.constant 1.000000e+00 : f32
    %74 = vector.broadcast %cst_20 : f32 to vector<16x128xf32>
    %75 = arith.addf %74, %73 : vector<16x128xf32>
    %76 = arith.divf %74, %75 : vector<16x128xf32>
    %77 = arith.mulf %76, %9 : vector<16x128xf32>
    %78 = arith.addf %77, %12 : vector<16x128xf32>
    %79 = vector.extract_strided_slice %78 {offsets = [0, 0], sizes = [16, 32], strides = [1, 1]} : vector<16x128xf32> to vector<16x32xf32>
    %80 = vector.extract_strided_slice %78 {offsets = [0, 32], sizes = [16, 32], strides = [1, 1]} : vector<16x128xf32> to vector<16x32xf32>
    %81 = vector.extract_strided_slice %78 {offsets = [0, 64], sizes = [16, 32], strides = [1, 1]} : vector<16x128xf32> to vector<16x32xf32>
    %82 = vector.extract_strided_slice %78 {offsets = [0, 96], sizes = [16, 32], strides = [1, 1]} : vector<16x128xf32> to vector<16x32xf32>
    %83 = arith.mulf %80, %59 : vector<16x32xf32>
    %84 = arith.mulf %79, %81 : vector<16x32xf32>
    %85 = arith.addf %83, %84 : vector<16x32xf32>
    %86 = math.tanh %85 : vector<16x32xf32>
    %87 = arith.mulf %82, %86 : vector<16x32xf32>
    %88 = arith.index_cast %c2_i32 : i32 to index
    %c0_21 = arith.constant 0 : index
    %c0_22 = arith.constant 0 : index
    %89 = vector.load %arg3[%88, %c0_21, %c0_22] : memref<8x16x32xf32, #tpu.memory_space<vmem>>, vector<1x16x32xf32>
    %90 = vector.shape_cast %89 : vector<1x16x32xf32> to vector<16x32xf32>
    %91 = vector.shape_cast %87 : vector<16x32xf32> to vector<1x16x32xf32>
    tpu.vector_store %arg3[%88, %c0_21, %c0_22], %91 {strides = array<i32>} : memref<8x16x32xf32, #tpu.memory_space<vmem>>, vector<1x16x32xf32>,
    %c3_i32 = arith.constant 3 : i32
    %92 = arith.index_cast %c3_i32 : i32 to index
    %c0_23 = arith.constant 0 : index
    %c0_24 = arith.constant 0 : index
    %93 = vector.load %arg1[%92, %c0_23, %c0_24] : memref<8x16x128xf32, #tpu.memory_space<vmem>>, vector<1x16x128xf32>
    %94 = vector.shape_cast %93 : vector<1x16x128xf32> to vector<16x128xf32>
    %cst_25 = arith.constant dense<0.000000e+00> : vector<16x128xf32>
    %95 = tpu.matmul %87, %0, %cst_25 {dimension_numbers = #tpu.dot_dimension_numbers<[1], [0], [0], [1], [0, 0, 1, 1], [], []>} : vector<16x32xf32>, vector<32x128xf32>, vector<16x128xf32> -> vector<16x128xf32>
    %96 = arith.addf %94, %95 : vector<16x128xf32>
    %97 = arith.mulf %96, %9 : vector<16x128xf32>
    %98 = arith.negf %97 : vector<16x128xf32>
    %99 = math.exp %98 : vector<16x128xf32>
    %cst_26 = arith.constant 1.000000e+00 : f32
    %100 = vector.broadcast %cst_26 : f32 to vector<16x128xf32>
    %101 = arith.addf %100, %99 : vector<16x128xf32>
    %102 = arith.divf %100, %101 : vector<16x128xf32>
    %103 = arith.mulf %102, %9 : vector<16x128xf32>
    %104 = arith.addf %103, %12 : vector<16x128xf32>
    %105 = vector.extract_strided_slice %104 {offsets = [0, 0], sizes = [16, 32], strides = [1, 1]} : vector<16x128xf32> to vector<16x32xf32>
    %106 = vector.extract_strided_slice %104 {offsets = [0, 32], sizes = [16, 32], strides = [1, 1]} : vector<16x128xf32> to vector<16x32xf32>
    %107 = vector.extract_strided_slice %104 {offsets = [0, 64], sizes = [16, 32], strides = [1, 1]} : vector<16x128xf32> to vector<16x32xf32>
    %108 = vector.extract_strided_slice %104 {offsets = [0, 96], sizes = [16, 32], strides = [1, 1]} : vector<16x128xf32> to vector<16x32xf32>
    %109 = arith.mulf %106, %85 : vector<16x32xf32>
    %110 = arith.mulf %105, %107 : vector<16x32xf32>
    %111 = arith.addf %109, %110 : vector<16x32xf32>
    %112 = math.tanh %111 : vector<16x32xf32>
    %113 = arith.mulf %108, %112 : vector<16x32xf32>
    %114 = arith.index_cast %c3_i32 : i32 to index
    %c0_27 = arith.constant 0 : index
    %c0_28 = arith.constant 0 : index
    %115 = vector.load %arg3[%114, %c0_27, %c0_28] : memref<8x16x32xf32, #tpu.memory_space<vmem>>, vector<1x16x32xf32>
    %116 = vector.shape_cast %115 : vector<1x16x32xf32> to vector<16x32xf32>
    %117 = vector.shape_cast %113 : vector<16x32xf32> to vector<1x16x32xf32>
    tpu.vector_store %arg3[%114, %c0_27, %c0_28], %117 {strides = array<i32>} : memref<8x16x32xf32, #tpu.memory_space<vmem>>, vector<1x16x32xf32>,
    %c4_i32 = arith.constant 4 : i32
    %118 = arith.index_cast %c4_i32 : i32 to index
    %c0_29 = arith.constant 0 : index
    %c0_30 = arith.constant 0 : index
    %119 = vector.load %arg1[%118, %c0_29, %c0_30] : memref<8x16x128xf32, #tpu.memory_space<vmem>>, vector<1x16x128xf32>
    %120 = vector.shape_cast %119 : vector<1x16x128xf32> to vector<16x128xf32>
    %cst_31 = arith.constant dense<0.000000e+00> : vector<16x128xf32>
    %121 = tpu.matmul %113, %0, %cst_31 {dimension_numbers = #tpu.dot_dimension_numbers<[1], [0], [0], [1], [0, 0, 1, 1], [], []>} : vector<16x32xf32>, vector<32x128xf32>, vector<16x128xf32> -> vector<16x128xf32>
    %122 = arith.addf %120, %121 : vector<16x128xf32>
    %123 = arith.mulf %122, %9 : vector<16x128xf32>
    %124 = arith.negf %123 : vector<16x128xf32>
    %125 = math.exp %124 : vector<16x128xf32>
    %cst_32 = arith.constant 1.000000e+00 : f32
    %126 = vector.broadcast %cst_32 : f32 to vector<16x128xf32>
    %127 = arith.addf %126, %125 : vector<16x128xf32>
    %128 = arith.divf %126, %127 : vector<16x128xf32>
    %129 = arith.mulf %128, %9 : vector<16x128xf32>
    %130 = arith.addf %129, %12 : vector<16x128xf32>
    %131 = vector.extract_strided_slice %130 {offsets = [0, 0], sizes = [16, 32], strides = [1, 1]} : vector<16x128xf32> to vector<16x32xf32>
    %132 = vector.extract_strided_slice %130 {offsets = [0, 32], sizes = [16, 32], strides = [1, 1]} : vector<16x128xf32> to vector<16x32xf32>
    %133 = vector.extract_strided_slice %130 {offsets = [0, 64], sizes = [16, 32], strides = [1, 1]} : vector<16x128xf32> to vector<16x32xf32>
    %134 = vector.extract_strided_slice %130 {offsets = [0, 96], sizes = [16, 32], strides = [1, 1]} : vector<16x128xf32> to vector<16x32xf32>
    %135 = arith.mulf %132, %111 : vector<16x32xf32>
    %136 = arith.mulf %131, %133 : vector<16x32xf32>
    %137 = arith.addf %135, %136 : vector<16x32xf32>
    %138 = math.tanh %137 : vector<16x32xf32>
    %139 = arith.mulf %134, %138 : vector<16x32xf32>
    %140 = arith.index_cast %c4_i32 : i32 to index
    %c0_33 = arith.constant 0 : index
    %c0_34 = arith.constant 0 : index
    %141 = vector.load %arg3[%140, %c0_33, %c0_34] : memref<8x16x32xf32, #tpu.memory_space<vmem>>, vector<1x16x32xf32>
    %142 = vector.shape_cast %141 : vector<1x16x32xf32> to vector<16x32xf32>
    %143 = vector.shape_cast %139 : vector<16x32xf32> to vector<1x16x32xf32>
    tpu.vector_store %arg3[%140, %c0_33, %c0_34], %143 {strides = array<i32>} : memref<8x16x32xf32, #tpu.memory_space<vmem>>, vector<1x16x32xf32>,
    %c5_i32 = arith.constant 5 : i32
    %144 = arith.index_cast %c5_i32 : i32 to index
    %c0_35 = arith.constant 0 : index
    %c0_36 = arith.constant 0 : index
    %145 = vector.load %arg1[%144, %c0_35, %c0_36] : memref<8x16x128xf32, #tpu.memory_space<vmem>>, vector<1x16x128xf32>
    %146 = vector.shape_cast %145 : vector<1x16x128xf32> to vector<16x128xf32>
    %cst_37 = arith.constant dense<0.000000e+00> : vector<16x128xf32>
    %147 = tpu.matmul %139, %0, %cst_37 {dimension_numbers = #tpu.dot_dimension_numbers<[1], [0], [0], [1], [0, 0, 1, 1], [], []>} : vector<16x32xf32>, vector<32x128xf32>, vector<16x128xf32> -> vector<16x128xf32>
    %148 = arith.addf %146, %147 : vector<16x128xf32>
    %149 = arith.mulf %148, %9 : vector<16x128xf32>
    %150 = arith.negf %149 : vector<16x128xf32>
    %151 = math.exp %150 : vector<16x128xf32>
    %cst_38 = arith.constant 1.000000e+00 : f32
    %152 = vector.broadcast %cst_38 : f32 to vector<16x128xf32>
    %153 = arith.addf %152, %151 : vector<16x128xf32>
    %154 = arith.divf %152, %153 : vector<16x128xf32>
    %155 = arith.mulf %154, %9 : vector<16x128xf32>
    %156 = arith.addf %155, %12 : vector<16x128xf32>
    %157 = vector.extract_strided_slice %156 {offsets = [0, 0], sizes = [16, 32], strides = [1, 1]} : vector<16x128xf32> to vector<16x32xf32>
    %158 = vector.extract_strided_slice %156 {offsets = [0, 32], sizes = [16, 32], strides = [1, 1]} : vector<16x128xf32> to vector<16x32xf32>
    %159 = vector.extract_strided_slice %156 {offsets = [0, 64], sizes = [16, 32], strides = [1, 1]} : vector<16x128xf32> to vector<16x32xf32>
    %160 = vector.extract_strided_slice %156 {offsets = [0, 96], sizes = [16, 32], strides = [1, 1]} : vector<16x128xf32> to vector<16x32xf32>
    %161 = arith.mulf %158, %137 : vector<16x32xf32>
    %162 = arith.mulf %157, %159 : vector<16x32xf32>
    %163 = arith.addf %161, %162 : vector<16x32xf32>
    %164 = math.tanh %163 : vector<16x32xf32>
    %165 = arith.mulf %160, %164 : vector<16x32xf32>
    %166 = arith.index_cast %c5_i32 : i32 to index
    %c0_39 = arith.constant 0 : index
    %c0_40 = arith.constant 0 : index
    %167 = vector.load %arg3[%166, %c0_39, %c0_40] : memref<8x16x32xf32, #tpu.memory_space<vmem>>, vector<1x16x32xf32>
    %168 = vector.shape_cast %167 : vector<1x16x32xf32> to vector<16x32xf32>
    %169 = vector.shape_cast %165 : vector<16x32xf32> to vector<1x16x32xf32>
    tpu.vector_store %arg3[%166, %c0_39, %c0_40], %169 {strides = array<i32>} : memref<8x16x32xf32, #tpu.memory_space<vmem>>, vector<1x16x32xf32>,
    %c6_i32 = arith.constant 6 : i32
    %170 = arith.index_cast %c6_i32 : i32 to index
    %c0_41 = arith.constant 0 : index
    %c0_42 = arith.constant 0 : index
    %171 = vector.load %arg1[%170, %c0_41, %c0_42] : memref<8x16x128xf32, #tpu.memory_space<vmem>>, vector<1x16x128xf32>
    %172 = vector.shape_cast %171 : vector<1x16x128xf32> to vector<16x128xf32>
    %cst_43 = arith.constant dense<0.000000e+00> : vector<16x128xf32>
    %173 = tpu.matmul %165, %0, %cst_43 {dimension_numbers = #tpu.dot_dimension_numbers<[1], [0], [0], [1], [0, 0, 1, 1], [], []>} : vector<16x32xf32>, vector<32x128xf32>, vector<16x128xf32> -> vector<16x128xf32>
    %174 = arith.addf %172, %173 : vector<16x128xf32>
    %175 = arith.mulf %174, %9 : vector<16x128xf32>
    %176 = arith.negf %175 : vector<16x128xf32>
    %177 = math.exp %176 : vector<16x128xf32>
    %cst_44 = arith.constant 1.000000e+00 : f32
    %178 = vector.broadcast %cst_44 : f32 to vector<16x128xf32>
    %179 = arith.addf %178, %177 : vector<16x128xf32>
    %180 = arith.divf %178, %179 : vector<16x128xf32>
    %181 = arith.mulf %180, %9 : vector<16x128xf32>
    %182 = arith.addf %181, %12 : vector<16x128xf32>
    %183 = vector.extract_strided_slice %182 {offsets = [0, 0], sizes = [16, 32], strides = [1, 1]} : vector<16x128xf32> to vector<16x32xf32>
    %184 = vector.extract_strided_slice %182 {offsets = [0, 32], sizes = [16, 32], strides = [1, 1]} : vector<16x128xf32> to vector<16x32xf32>
    %185 = vector.extract_strided_slice %182 {offsets = [0, 64], sizes = [16, 32], strides = [1, 1]} : vector<16x128xf32> to vector<16x32xf32>
    %186 = vector.extract_strided_slice %182 {offsets = [0, 96], sizes = [16, 32], strides = [1, 1]} : vector<16x128xf32> to vector<16x32xf32>
    %187 = arith.mulf %184, %163 : vector<16x32xf32>
    %188 = arith.mulf %183, %185 : vector<16x32xf32>
    %189 = arith.addf %187, %188 : vector<16x32xf32>
    %190 = math.tanh %189 : vector<16x32xf32>
    %191 = arith.mulf %186, %190 : vector<16x32xf32>
    %192 = arith.index_cast %c6_i32 : i32 to index
    %c0_45 = arith.constant 0 : index
    %c0_46 = arith.constant 0 : index
    %193 = vector.load %arg3[%192, %c0_45, %c0_46] : memref<8x16x32xf32, #tpu.memory_space<vmem>>, vector<1x16x32xf32>
    %194 = vector.shape_cast %193 : vector<1x16x32xf32> to vector<16x32xf32>
    %195 = vector.shape_cast %191 : vector<16x32xf32> to vector<1x16x32xf32>
    tpu.vector_store %arg3[%192, %c0_45, %c0_46], %195 {strides = array<i32>} : memref<8x16x32xf32, #tpu.memory_space<vmem>>, vector<1x16x32xf32>,
    %c7_i32 = arith.constant 7 : i32
    %196 = arith.index_cast %c7_i32 : i32 to index
    %c0_47 = arith.constant 0 : index
    %c0_48 = arith.constant 0 : index
    %197 = vector.load %arg1[%196, %c0_47, %c0_48] : memref<8x16x128xf32, #tpu.memory_space<vmem>>, vector<1x16x128xf32>
    %198 = vector.shape_cast %197 : vector<1x16x128xf32> to vector<16x128xf32>
    %cst_49 = arith.constant dense<0.000000e+00> : vector<16x128xf32>
    %199 = tpu.matmul %191, %0, %cst_49 {dimension_numbers = #tpu.dot_dimension_numbers<[1], [0], [0], [1], [0, 0, 1, 1], [], []>} : vector<16x32xf32>, vector<32x128xf32>, vector<16x128xf32> -> vector<16x128xf32>
    %200 = arith.addf %198, %199 : vector<16x128xf32>
    %201 = arith.mulf %200, %9 : vector<16x128xf32>
    %202 = arith.negf %201 : vector<16x128xf32>
    %203 = math.exp %202 : vector<16x128xf32>
    %cst_50 = arith.constant 1.000000e+00 : f32
    %204 = vector.broadcast %cst_50 : f32 to vector<16x128xf32>
    %205 = arith.addf %204, %203 : vector<16x128xf32>
    %206 = arith.divf %204, %205 : vector<16x128xf32>
    %207 = arith.mulf %206, %9 : vector<16x128xf32>
    %208 = arith.addf %207, %12 : vector<16x128xf32>
    %209 = vector.extract_strided_slice %208 {offsets = [0, 0], sizes = [16, 32], strides = [1, 1]} : vector<16x128xf32> to vector<16x32xf32>
    %210 = vector.extract_strided_slice %208 {offsets = [0, 32], sizes = [16, 32], strides = [1, 1]} : vector<16x128xf32> to vector<16x32xf32>
    %211 = vector.extract_strided_slice %208 {offsets = [0, 64], sizes = [16, 32], strides = [1, 1]} : vector<16x128xf32> to vector<16x32xf32>
    %212 = vector.extract_strided_slice %208 {offsets = [0, 96], sizes = [16, 32], strides = [1, 1]} : vector<16x128xf32> to vector<16x32xf32>
    %213 = arith.mulf %210, %189 : vector<16x32xf32>
    %214 = arith.mulf %209, %211 : vector<16x32xf32>
    %215 = arith.addf %213, %214 : vector<16x32xf32>
    %216 = math.tanh %215 : vector<16x32xf32>
    %217 = arith.mulf %212, %216 : vector<16x32xf32>
    %218 = arith.index_cast %c7_i32 : i32 to index
    %c0_51 = arith.constant 0 : index
    %c0_52 = arith.constant 0 : index
    %219 = vector.load %arg3[%218, %c0_51, %c0_52] : memref<8x16x32xf32, #tpu.memory_space<vmem>>, vector<1x16x32xf32>
    %220 = vector.shape_cast %219 : vector<1x16x32xf32> to vector<16x32xf32>
    %221 = vector.shape_cast %217 : vector<16x32xf32> to vector<1x16x32xf32>
    tpu.vector_store %arg3[%218, %c0_51, %c0_52], %221 {strides = array<i32>} : memref<8x16x32xf32, #tpu.memory_space<vmem>>, vector<1x16x32xf32>,
    %c8_i32 = arith.constant 8 : i32
    %c0_53 = arith.constant 0 : index
    %c0_54 = arith.constant 0 : index
    %c0_55 = arith.constant 0 : index
    %222 = vector.load %arg3[%c0_53, %c0_54, %c0_55] : memref<8x16x32xf32, #tpu.memory_space<vmem>>, vector<1x16x32xf32>
    %223 = vector.shape_cast %222 : vector<1x16x32xf32> to vector<16x32xf32>
    %c7 = arith.constant 7 : index
    %c0_56 = arith.constant 0 : index
    %c0_57 = arith.constant 0 : index
    %224 = vector.load %arg3[%c7, %c0_56, %c0_57] : memref<8x16x32xf32, #tpu.memory_space<vmem>>, vector<1x16x32xf32>
    %225 = vector.shape_cast %224 : vector<1x16x32xf32> to vector<16x32xf32>
    %226 = vector.extract_strided_slice %223 {offsets = [0, 0], sizes = [16, 16], strides = [1, 1]} : vector<16x32xf32> to vector<16x16xf32>
    %227 = vector.extract_strided_slice %225 {offsets = [0, 16], sizes = [16, 16], strides = [1, 1]} : vector<16x32xf32> to vector<16x16xf32>
    %228 = tpu.concatenate %226, %227 in 1 : vector<16x16xf32>, vector<16x16xf32> -> vector<16x32xf32>
    %c0_58 = arith.constant 0 : index
    %c0_59 = arith.constant 0 : index
    %c0_60 = arith.constant 0 : index
    %229 = vector.load %arg3[%c0_58, %c0_59, %c0_60] : memref<8x16x32xf32, #tpu.memory_space<vmem>>, vector<1x16x32xf32>
    %230 = vector.shape_cast %229 : vector<1x16x32xf32> to vector<16x32xf32>
    %231 = vector.shape_cast %228 : vector<16x32xf32> to vector<1x16x32xf32>
    tpu.vector_store %arg3[%c0_58, %c0_59, %c0_60], %231 {strides = array<i32>} : memref<8x16x32xf32, #tpu.memory_space<vmem>>, vector<1x16x32xf32>,
    %232 = vector.extract_strided_slice %225 {offsets = [0, 0], sizes = [16, 16], strides = [1, 1]} : vector<16x32xf32> to vector<16x16xf32>
    %233 = vector.extract_strided_slice %223 {offsets = [0, 16], sizes = [16, 16], strides = [1, 1]} : vector<16x32xf32> to vector<16x16xf32>
    %234 = tpu.concatenate %232, %233 in 1 : vector<16x16xf32>, vector<16x16xf32> -> vector<16x32xf32>
    %c7_61 = arith.constant 7 : index
    %c0_62 = arith.constant 0 : index
    %c0_63 = arith.constant 0 : index
    %235 = vector.load %arg3[%c7_61, %c0_62, %c0_63] : memref<8x16x32xf32, #tpu.memory_space<vmem>>, vector<1x16x32xf32>
    %236 = vector.shape_cast %235 : vector<1x16x32xf32> to vector<16x32xf32>
    %237 = vector.shape_cast %234 : vector<16x32xf32> to vector<1x16x32xf32>
    tpu.vector_store %arg3[%c7_61, %c0_62, %c0_63], %237 {strides = array<i32>} : memref<8x16x32xf32, #tpu.memory_space<vmem>>, vector<1x16x32xf32>,
    %c1 = arith.constant 1 : index
    %c0_64 = arith.constant 0 : index
    %c0_65 = arith.constant 0 : index
    %238 = vector.load %arg3[%c1, %c0_64, %c0_65] : memref<8x16x32xf32, #tpu.memory_space<vmem>>, vector<1x16x32xf32>
    %239 = vector.shape_cast %238 : vector<1x16x32xf32> to vector<16x32xf32>
    %c6 = arith.constant 6 : index
    %c0_66 = arith.constant 0 : index
    %c0_67 = arith.constant 0 : index
    %240 = vector.load %arg3[%c6, %c0_66, %c0_67] : memref<8x16x32xf32, #tpu.memory_space<vmem>>, vector<1x16x32xf32>
    %241 = vector.shape_cast %240 : vector<1x16x32xf32> to vector<16x32xf32>
    %242 = vector.extract_strided_slice %239 {offsets = [0, 0], sizes = [16, 16], strides = [1, 1]} : vector<16x32xf32> to vector<16x16xf32>
    %243 = vector.extract_strided_slice %241 {offsets = [0, 16], sizes = [16, 16], strides = [1, 1]} : vector<16x32xf32> to vector<16x16xf32>
    %244 = tpu.concatenate %242, %243 in 1 : vector<16x16xf32>, vector<16x16xf32> -> vector<16x32xf32>
    %c1_68 = arith.constant 1 : index
    %c0_69 = arith.constant 0 : index
    %c0_70 = arith.constant 0 : index
    %245 = vector.load %arg3[%c1_68, %c0_69, %c0_70] : memref<8x16x32xf32, #tpu.memory_space<vmem>>, vector<1x16x32xf32>
    %246 = vector.shape_cast %245 : vector<1x16x32xf32> to vector<16x32xf32>
    %247 = vector.shape_cast %244 : vector<16x32xf32> to vector<1x16x32xf32>
    tpu.vector_store %arg3[%c1_68, %c0_69, %c0_70], %247 {strides = array<i32>} : memref<8x16x32xf32, #tpu.memory_space<vmem>>, vector<1x16x32xf32>,
    %248 = vector.extract_strided_slice %241 {offsets = [0, 0], sizes = [16, 16], strides = [1, 1]} : vector<16x32xf32> to vector<16x16xf32>
    %249 = vector.extract_strided_slice %239 {offsets = [0, 16], sizes = [16, 16], strides = [1, 1]} : vector<16x32xf32> to vector<16x16xf32>
    %250 = tpu.concatenate %248, %249 in 1 : vector<16x16xf32>, vector<16x16xf32> -> vector<16x32xf32>
    %c6_71 = arith.constant 6 : index
    %c0_72 = arith.constant 0 : index
    %c0_73 = arith.constant 0 : index
    %251 = vector.load %arg3[%c6_71, %c0_72, %c0_73] : memref<8x16x32xf32, #tpu.memory_space<vmem>>, vector<1x16x32xf32>
    %252 = vector.shape_cast %251 : vector<1x16x32xf32> to vector<16x32xf32>
    %253 = vector.shape_cast %250 : vector<16x32xf32> to vector<1x16x32xf32>
    tpu.vector_store %arg3[%c6_71, %c0_72, %c0_73], %253 {strides = array<i32>} : memref<8x16x32xf32, #tpu.memory_space<vmem>>, vector<1x16x32xf32>,
    %c2 = arith.constant 2 : index
    %c0_74 = arith.constant 0 : index
    %c0_75 = arith.constant 0 : index
    %254 = vector.load %arg3[%c2, %c0_74, %c0_75] : memref<8x16x32xf32, #tpu.memory_space<vmem>>, vector<1x16x32xf32>
    %255 = vector.shape_cast %254 : vector<1x16x32xf32> to vector<16x32xf32>
    %c5 = arith.constant 5 : index
    %c0_76 = arith.constant 0 : index
    %c0_77 = arith.constant 0 : index
    %256 = vector.load %arg3[%c5, %c0_76, %c0_77] : memref<8x16x32xf32, #tpu.memory_space<vmem>>, vector<1x16x32xf32>
    %257 = vector.shape_cast %256 : vector<1x16x32xf32> to vector<16x32xf32>
    %258 = vector.extract_strided_slice %255 {offsets = [0, 0], sizes = [16, 16], strides = [1, 1]} : vector<16x32xf32> to vector<16x16xf32>
    %259 = vector.extract_strided_slice %257 {offsets = [0, 16], sizes = [16, 16], strides = [1, 1]} : vector<16x32xf32> to vector<16x16xf32>
    %260 = tpu.concatenate %258, %259 in 1 : vector<16x16xf32>, vector<16x16xf32> -> vector<16x32xf32>
    %c2_78 = arith.constant 2 : index
    %c0_79 = arith.constant 0 : index
    %c0_80 = arith.constant 0 : index
    %261 = vector.load %arg3[%c2_78, %c0_79, %c0_80] : memref<8x16x32xf32, #tpu.memory_space<vmem>>, vector<1x16x32xf32>
    %262 = vector.shape_cast %261 : vector<1x16x32xf32> to vector<16x32xf32>
    %263 = vector.shape_cast %260 : vector<16x32xf32> to vector<1x16x32xf32>
    tpu.vector_store %arg3[%c2_78, %c0_79, %c0_80], %263 {strides = array<i32>} : memref<8x16x32xf32, #tpu.memory_space<vmem>>, vector<1x16x32xf32>,
    %264 = vector.extract_strided_slice %257 {offsets = [0, 0], sizes = [16, 16], strides = [1, 1]} : vector<16x32xf32> to vector<16x16xf32>
    %265 = vector.extract_strided_slice %255 {offsets = [0, 16], sizes = [16, 16], strides = [1, 1]} : vector<16x32xf32> to vector<16x16xf32>
    %266 = tpu.concatenate %264, %265 in 1 : vector<16x16xf32>, vector<16x16xf32> -> vector<16x32xf32>
    %c5_81 = arith.constant 5 : index
    %c0_82 = arith.constant 0 : index
    %c0_83 = arith.constant 0 : index
    %267 = vector.load %arg3[%c5_81, %c0_82, %c0_83] : memref<8x16x32xf32, #tpu.memory_space<vmem>>, vector<1x16x32xf32>
    %268 = vector.shape_cast %267 : vector<1x16x32xf32> to vector<16x32xf32>
    %269 = vector.shape_cast %266 : vector<16x32xf32> to vector<1x16x32xf32>
    tpu.vector_store %arg3[%c5_81, %c0_82, %c0_83], %269 {strides = array<i32>} : memref<8x16x32xf32, #tpu.memory_space<vmem>>, vector<1x16x32xf32>,
    %c3 = arith.constant 3 : index
    %c0_84 = arith.constant 0 : index
    %c0_85 = arith.constant 0 : index
    %270 = vector.load %arg3[%c3, %c0_84, %c0_85] : memref<8x16x32xf32, #tpu.memory_space<vmem>>, vector<1x16x32xf32>
    %271 = vector.shape_cast %270 : vector<1x16x32xf32> to vector<16x32xf32>
    %c4 = arith.constant 4 : index
    %c0_86 = arith.constant 0 : index
    %c0_87 = arith.constant 0 : index
    %272 = vector.load %arg3[%c4, %c0_86, %c0_87] : memref<8x16x32xf32, #tpu.memory_space<vmem>>, vector<1x16x32xf32>
    %273 = vector.shape_cast %272 : vector<1x16x32xf32> to vector<16x32xf32>
    %274 = vector.extract_strided_slice %271 {offsets = [0, 0], sizes = [16, 16], strides = [1, 1]} : vector<16x32xf32> to vector<16x16xf32>
    %275 = vector.extract_strided_slice %273 {offsets = [0, 16], sizes = [16, 16], strides = [1, 1]} : vector<16x32xf32> to vector<16x16xf32>
    %276 = tpu.concatenate %274, %275 in 1 : vector<16x16xf32>, vector<16x16xf32> -> vector<16x32xf32>
    %c3_88 = arith.constant 3 : index
    %c0_89 = arith.constant 0 : index
    %c0_90 = arith.constant 0 : index
    %277 = vector.load %arg3[%c3_88, %c0_89, %c0_90] : memref<8x16x32xf32, #tpu.memory_space<vmem>>, vector<1x16x32xf32>
    %278 = vector.shape_cast %277 : vector<1x16x32xf32> to vector<16x32xf32>
    %279 = vector.shape_cast %276 : vector<16x32xf32> to vector<1x16x32xf32>
    tpu.vector_store %arg3[%c3_88, %c0_89, %c0_90], %279 {strides = array<i32>} : memref<8x16x32xf32, #tpu.memory_space<vmem>>, vector<1x16x32xf32>,
    %280 = vector.extract_strided_slice %273 {offsets = [0, 0], sizes = [16, 16], strides = [1, 1]} : vector<16x32xf32> to vector<16x16xf32>
    %281 = vector.extract_strided_slice %271 {offsets = [0, 16], sizes = [16, 16], strides = [1, 1]} : vector<16x32xf32> to vector<16x16xf32>
    %282 = tpu.concatenate %280, %281 in 1 : vector<16x16xf32>, vector<16x16xf32> -> vector<16x32xf32>
    %c4_91 = arith.constant 4 : index
    %c0_92 = arith.constant 0 : index
    %c0_93 = arith.constant 0 : index
    %283 = vector.load %arg3[%c4_91, %c0_92, %c0_93] : memref<8x16x32xf32, #tpu.memory_space<vmem>>, vector<1x16x32xf32>
    %284 = vector.shape_cast %283 : vector<1x16x32xf32> to vector<16x32xf32>
    %285 = vector.shape_cast %282 : vector<16x32xf32> to vector<1x16x32xf32>
    tpu.vector_store %arg3[%c4_91, %c0_92, %c0_93], %285 {strides = array<i32>} : memref<8x16x32xf32, #tpu.memory_space<vmem>>, vector<1x16x32xf32>,
    return
  }
  func.func @transform_0(%arg0: i32) -> (i32, i32, i32) {
    %c0_i32 = arith.constant 0 : i32
    %c0_i32_0 = arith.constant 0 : i32
    %c0_i32_1 = arith.constant 0 : i32
    return %c0_i32, %arg0, %c0_i32_0 : i32, i32, i32
  }
  func.func @transform_1(%arg0: i32) -> (i32, i32) {
    %c0_i32 = arith.constant 0 : i32
    %c0_i32_0 = arith.constant 0 : i32
    %c0_i32_1 = arith.constant 0 : i32
    return %c0_i32, %c0_i32_0 : i32, i32
  }
  func.func @transform_2(%arg0: i32) -> (i32, i32, i32) {
    %c0_i32 = arith.constant 0 : i32
    %c0_i32_0 = arith.constant 0 : i32
    %c0_i32_1 = arith.constant 0 : i32
    return %c0_i32, %arg0, %c0_i32_0 : i32, i32, i32
  }
}

</mosaic_0001>

<bundles_post_ra>
// kernel: fnblock_forward.3
= control target key start
LH: loop header
LB: loop body
LE: loop exit
PB: predicated region body
PF: predicated region fallthrough
CT: control target
= control target key end

     0   :  { %s2035_s9 = smov 0   ;;  %s2037_s10 = smov 0   ;;  %s2499_s0 = inlined_call_operand.vmem [shape: f32[8,32,128], index: 0, kind: input, shape index: {}]   ;;  %s2500_s1 = inlined_call_operand.vmem [shape: f32[32,128], index: 1, kind: input, shape index: {}]   ;;  %s2501_s2 = inlined_call_operand.vmem [shape: f32[8,32,32], index: 2, kind: output, shape index: {}]  }
   0x1   :  { %s2039_s11 = smov 0  }
   0x2 LB: > { %s1629_s12 = sadd.s32 4294967295, %s2014_s11   ;;  %s2052_s13 = sadd.s32 1, %s2014_s11   ;;  %s2014_s11 = sphi %s2039_s11, %s2507_s11   ;;  %s2010_s10 = sphi %s2037_s10, %s2506_s10   ;;  %s2006_s9 = sphi %s2035_s9, %s2505_s9  }
   0x3   : > { %s16_s14 = ssub.s32 %s2014_s11, %s2052_s13  ;;  %s19_s15 = sadd.s32 1, %s2010_s10 }
   0x4   : > { %p17_p0 = scmp.eq.s32.totalorder %s16_s14, 0  ;;  %p26_p1 = scmp.ne.s32.totalorder %s2010_s10, %s2006_s9 }
   0x5   : > { %p27_p2 = scmp.eq.s32.totalorder %s2014_s11, 0  ;;  %p77_p3 = scmp.eq.s32.totalorder %s1629_s12, 1 }
   0x6   : > { %s2063_s16 = scalar_select %p17_p0, %s2010_s10, %s19_s15  }
   0x7   : > { %p28_p4 = por %p27_p2, %p26_p1  ;;  %p2065_p5 = por %p77_p3, %p26_p1 }
   0x8   : > { %p1632_p6 = scmp.ge.s32.totalorder %s2014_s11, 2 }
   0xa   : > { %102 = sbr.rel (%p1632_p6) target bundleno = 27 (0x1b), region = 20 }
   0xf   : > { %105 = sbr.rel (!%p28_p4) target bundleno = 27 (0x1b), region = 24  ;;  %s107_s18 = sand.u32 (%p28_p4), 1, %s2010_s10  }
  0x10   : > { %s1730_s19 = sshll.u32 (%p28_p4), %s2014_s11, 4  ;;  %s1633_s20 = sshll.u32 (%p28_p4), %s107_s18, 7 }
  0x11   : > { %s2075_s23 = scalar_lea.vmem (%p28_p4), %s2499_s0, %s1730_s19  ;;  %s109_s24 = scalar_lea.vmem (%p28_p4), [#allocation2], %s1633_s20 }
  0x12   : > { %v171_v0 = vld [vmem:[%s2075_s23] sm:$0xff] (%p28_p4)  ;;  %v173_v1 = vld [vmem:[%s2075_s23 + $0x8] sm:$0xff] (%p28_p4) }
  0x13   : > { %v175_v2 = vld [vmem:[%s2075_s23 + $0x20] sm:$0xff] (%p28_p4)  ;;  %172 = vst [vmem:[%s109_s24] sm:$0xff] (%p28_p4), %v171_v0  ;;  %174 = vst [vmem:[%s109_s24 + $0x8] sm:$0xff] (%p28_p4), %v173_v1  ;;  %v177_v3 = vld [vmem:[%s2075_s23 + $0x28] sm:$0xff] (%p28_p4) }
  0x14   : > { %176 = vst [vmem:[%s109_s24 + $0x10] sm:$0xff] %v175_v2  ;;  %v179_v4 = vld [vmem:[%s2075_s23 + $0x40] sm:$0xff]  ;;  %v181_v5 = vld [vmem:[%s2075_s23 + $0x48] sm:$0xff]  ;;  %178 = vst [vmem:[%s109_s24 + $0x18] sm:$0xff] %v177_v3 }
  0x15   : > { %180 = vst [vmem:[%s109_s24 + $0x20] sm:$0xff] %v179_v4  ;;  %182 = vst [vmem:[%s109_s24 + $0x28] sm:$0xff] %v181_v5  ;;  %v183_v6 = vld [vmem:[%s2075_s23 + $0x60] sm:$0xff]  ;;  %v185_v7 = vld [vmem:[%s2075_s23 + $0x68] sm:$0xff] }
  0x16   : > { %v187_v8 = vld [vmem:[%s2075_s23 + $0x80] sm:$0xff]  ;;  %184 = vst [vmem:[%s109_s24 + $0x30] sm:$0xff] %v183_v6  ;;  %186 = vst [vmem:[%s109_s24 + $0x38] sm:$0xff] %v185_v7  ;;  %v189_v9 = vld [vmem:[%s2075_s23 + $0x88] sm:$0xff] }
  0x17   : > { %188 = vst [vmem:[%s109_s24 + $0x40] sm:$0xff] %v187_v8  ;;  %v191_v10 = vld [vmem:[%s2075_s23 + $0xa0] sm:$0xff]  ;;  %v193_v11 = vld [vmem:[%s2075_s23 + $0xa8] sm:$0xff]  ;;  %190 = vst [vmem:[%s109_s24 + $0x48] sm:$0xff] %v189_v9 }
  0x18   : > { %192 = vst [vmem:[%s109_s24 + $0x50] sm:$0xff] %v191_v10  ;;  %194 = vst [vmem:[%s109_s24 + $0x58] sm:$0xff] %v193_v11  ;;  %v195_v12 = vld [vmem:[%s2075_s23 + $0xc0] sm:$0xff]  ;;  %v197_v13 = vld [vmem:[%s2075_s23 + $0xc8] sm:$0xff] }
  0x19   : > { %v199_v14 = vld [vmem:[%s2075_s23 + $0xe0] sm:$0xff]  ;;  %196 = vst [vmem:[%s109_s24 + $0x60] sm:$0xff] %v195_v12  ;;  %198 = vst [vmem:[%s109_s24 + $0x68] sm:$0xff] %v197_v13  ;;  %v201_v15 = vld [vmem:[%s2075_s23 + $0xe8] sm:$0xff] }
  0x1a   : > { %200 = vst [vmem:[%s109_s24 + $0x70] sm:$0xff] %v199_v14  ;;  %202 = vst [vmem:[%s109_s24 + $0x78] sm:$0xff] %v201_v15 }
  0x1b PF: > { %p1636_p7 = scmp.ge.s32.totalorder %s2014_s11, 1  ;;  %p207_p8 = scmp.lt.s32.totalorder %s2014_s11, 3 }
  0x1d   : > { %p208_p9 = pnand %p1636_p7, %p207_p8 }
  0x1e   : > { %s214_s5 = sand.u32 (!%p208_p9), 1, %s2006_s9   ;;  %s2018_s8 = smov (!%p208_p9), 64  }
  0x1f   : > { %211 = sbr.rel (%p208_p9) target bundleno = 5793 (0x16a1), region = 62  ;;  %s2142_s6 = sshll.u32 (!%p208_p9), %s214_s5, 7 }
  0x20   : > { %s2149_s7 = scalar_lea.vmem (!%p208_p9), [#allocation2], %s2142_s6  ;;  %s2019_s9 = smov (!%p208_p9), 32  }
  0x21   : > { %s2179_s14 = scalar_lea.vmem (!%p208_p9), [#allocation3], %s2142_s6 }
  0x24   : > { %v2098_v16 = vld [vmem:[%s2500_s1 + $0x18] sm:$0xff]  ;;  %v2103_v17 = vld [vmem:[%s2500_s1 + $0x10] sm:$0xff]  ;;  %v2016_v18 = vmov 0.0   ;;  %v2110_v19 = vld [vmem:[%s2500_s1 + $0x8] sm:$0xff]  ;;  %v240_v21 = vlaneseq  ;;  %v2017_v25 = vmov 1.0   ;;  %vm249_vm3 = vcmask 261120  }
  0x25   : > { %1780 = vmatprep.subr.mxu0 %v2098_v16  ;;  %1788 = vmatprep.mubr.f32.mxu0 %v2016_v18  ;;  %v2119_v20 = vld [vmem:[%s2500_s1] sm:$0xff]  ;;  %v248_v24 = vld [vmem:[%s2149_s7 + $0x8] sm:$0xff]  ;;  %v1642_v1 = vld [vmem:[%s2149_s7 + $0x18] sm:$0xff]  ;;  %vm1425_vm4 = vcmask 130048   ;;  %s1731_s15 = sshll.u32 (%p2065_p5), %s1629_s12, 4 }
  0x26   : > { %1781 = vmatpush3.msra.mxu0 %v2098_v16  ;;  %1791 = vmatprep.subr.mxu1 %v2098_v16  ;;  %v241_v22 = vand.u32 127, %v240_v21  ;;  %v247_v28 = vld [vmem:[%s2149_s7] sm:$0xff]  ;;  %v1641_v3 = vld [vmem:[%s2149_s7 + $0x10] sm:$0xff]  ;;  %s1479_s17 = scalar_lea.vmem (%p2065_p5), %s2501_s2, %s1731_s15 }
  0x27   : > { %1782 = vmatprep.subr.mxu0 %v2103_v17  ;;  %1792 = vmatpush3.msra.mxu1 %v2098_v16 }
  0x28   : > { %1783 = vmatpush3.msra.mxu0 %v2103_v17  ;;  %1793 = vmatprep.subr.mxu1 %v2103_v17  ;;  %vm242_vm0 = vcmp.ge.s32.totalorder %v241_v22, 64  ;;  %vm243_vm1 = vcmp.lt.s32.totalorder %v241_v22, 96 }
  0x29   : > { %1784 = vmatprep.subr.mxu0 %v2110_v19  ;;  %1794 = vmatpush3.msra.mxu1 %v2103_v17  ;;  %vm2144_vm2 = vmand %vm242_vm0, %vm243_vm1 }
  0x2a   : > { %1785 = vmatpush3.msra.mxu0 %v2110_v19  ;;  %1795 = vmatprep.subr.mxu1 %v2110_v19  ;;  %v2154_v26 = vsel %vm2144_vm2, 2.0, %v2017_v25  ;;  %v2162_v43 = vsel %vm2144_vm2, -1.0, %v2016_v18 }
  0x2b   : > { %1786 = vmatprep.subr.mxu0 %v2119_v20  ;;  %1796 = vmatpush3.msra.mxu1 %v2110_v19 }
  0x2c   : > { %1787 = vmatpush3.msra.mxu0 %v2119_v20  ;;  %1797 = vmatprep.subr.mxu1 %v2119_v20 }
  0x2d   : > { %1789 = vmatmul.mubr.f32.vlgmr.msra.gmra.mxu0 %v2016_v18  ;;  %1798 = vmatpush3.msra.mxu1 %v2119_v20 }
  0x2e   : > { %1802 = vmatprep.subr.mxu0 %v2098_v16  ;;  %1813 = vmatprep.subr.mxu1 %v2098_v16 }
  0x2f   : > { %1803 = vmatpush3.msra.mxu0 %v2098_v16 }
  0x30   : > { %1804 = vmatprep.subr.mxu0 %v2103_v17 }
  0x31   : > { %1805 = vmatpush3.msra.mxu0 %v2103_v17 }
  0x32   : > { %1806 = vmatprep.subr.mxu0 %v2110_v19 }
  0x33   : > { %1807 = vmatpush3.msra.mxu0 %v2110_v19 }
  0x34   : > { %1808 = vmatprep.subr.mxu0 %v2119_v20 }
  0x35   : > { %1809 = vmatpush3.msra.mxu0 %v2119_v20 }
  0x36   : > { %1824 = vmatprep.subr.mxu0 %v2098_v16 }
  0xed   : > { %v1790_v27 = vpop.f32.mrf.mxu0 }
  0xee   : > { %v329_v29 = vadd.f32 %v1790_v27, %v248_v24 }
  0xef   : > { %v319_v30 = vpop.f32.mrf.mxu0 }
  0xf0   : > { %v331_v31 = vmul.f32 %v329_v29, %v2154_v26  ;;  %v328_v32 = vadd.f32 %v319_v30, %v247_v28 }
  0xf2   : > { %v1640_v33 = vmul.f32 -1.442695, %v331_v31  ;;  %v330_v34 = vmul.f32 %v328_v32, %v2154_v26 }
  0xf4   : > { %1896 = vpow2.f32 %v1640_v33  ;;  %v1639_v35 = vmul.f32 -1.442695, %v330_v34 }
  0xf6   : > { %1898 = vpow2.f32 %v1639_v35 }
 0x101   : > { %v1897_v36 = vpop.eup %1896 }
 0x102   : > { %v339_v37 = vadd.f32 1.0, %v1897_v36 }
 0x103   : > { %v1899_v38 = vpop.eup %1898 }
 0x104   : > { %v338_v39 = vadd.f32 1.0, %v1899_v38  ;;  %1900 = vrcp.f32 %v339_v37 }
 0x106   : > { %1902 = vrcp.f32 %v338_v39 }
 0x111   : > { %v1901_v40 = vpop.eup %1900 }
 0x112   : > { %v345_v45 = vmul.f32 %v1901_v40, %v2154_v26 }
 0x113   : > { %v1903_v41 = vpop.eup %1902 }
 0x114   : > { %v344_v42 = vmul.f32 %v1903_v41, %v2154_v26  ;;  %v347_v46 = vadd.f32 %v345_v45, %v2162_v43  ;;  %v1650_v45 = vld [vmem:[%s2149_s7 + $0x28] sm:$0xff] }
 0x116   : > { %v346_v44 = vadd.f32 %v344_v42, %v2162_v43  ;;  %v349_v54 = vmul.f32 0.0, %v347_v46 }
 0x118   : > { %352 = vrot.lane.b32.xlu0 %v346_v44, %s2018_s8  ;;  %v348_v51 = vmul.f32 0.0, %v346_v44 }
 0x11c   : > { %354 = vrot.lane.b32.xlu0 %v347_v46, %s2018_s8 }
 0x18a   : > { %v353_v47 = vpop.permute.xlu0 %352 }
 0x18b   : > { %v358_v48 = vmul.f32 %v353_v47, %v346_v44  ;;  %v1649_v47 = vld [vmem:[%s2149_s7 + $0x20] sm:$0xff] }
 0x18d   : > { %362 = vrot.lane.b32.xlu1 %v358_v48, %s2019_s9 }
 0x18e   : > { %v355_v49 = vpop.permute.xlu0 %354 }
 0x18f   : > { %v359_v50 = vmul.f32 %v355_v49, %v347_v46 }
 0x191   : > { %364 = vrot.lane.b32.xlu1 %v359_v50, %s2019_s9 }
 0x1ff   : > { %v363_v52 = vpop.permute.xlu1 %362 }
 0x200   : > { %v2171_v53 = vadd.f32 %v363_v52, %v348_v51 }
 0x202   : > { %1904 = vtanh.f32 %v2171_v53 }
 0x203   : > { %v365_v55 = vpop.permute.xlu1 %364 }
 0x204   : > { %v369_v56 = vadd.f32 %v365_v55, %v349_v54 }
 0x206   : > { %1906 = vtanh.f32 %v369_v56 }
 0x20f   : > { %v1905_v57 = vpop.eup %1904 }
 0x210   : > { %374 = vrot.lane.b32.xlu0 %v1905_v57, %s2018_s8 }
 0x213   : > { %v1907_v58 = vpop.eup %1906 }
 0x214   : > { %376 = vrot.lane.b32.xlu1 %v1907_v58, %s2018_s8 }
 0x282   : > { %v375_v59 = vpop.permute.xlu0 %374 }
 0x283   : > { %v380_v60 = vmul.f32 %v375_v59, %v346_v44 }
 0x285   : > { %384 = vrot.lane.b32.xlu0 %v380_v60, %s2019_s9 }
 0x286   : > { %v377_v61 = vpop.permute.xlu1 %376 }
 0x287   : > { %v381_v62 = vmul.f32 %v377_v61, %v347_v46 }
 0x289   : > { %386 = vrot.lane.b32.xlu1 %v381_v62, %s2019_s9 }
 0x2f7   : > { %v385_v63 = vpop.permute.xlu0 %384 }
 0x2f8   : > { %390 = vst.msk [vmem:[%s2179_s14] sm:$0xff] %vm249_vm3, %v385_v63  ;;  %1799 = vmatprep.mubr.msk.f32.mxu1 %vm249_vm3, %v385_v63 }
 0x2fb   : > { %v387_v0 = vpop.permute.xlu1 %386 }
 0x2fc   : > { %391 = vst.msk [vmem:[%s2179_s14 + $0x8] sm:$0xff] %vm249_vm3, %v387_v0  ;;  %1800 = vmatmul.mubr.msk.f32.vlgmr.msra.gmra.mxu1 %vm249_vm3, %v387_v0 }
 0x2fd   : > { %1814 = vmatpush3.msra.mxu1 %v2098_v16 }
 0x2fe   : > { %1815 = vmatprep.subr.mxu1 %v2103_v17 }
 0x2ff   : > { %1816 = vmatpush3.msra.mxu1 %v2103_v17 }
 0x300   : > { %1817 = vmatprep.subr.mxu1 %v2110_v19 }
 0x301   : > { %1818 = vmatpush3.msra.mxu1 %v2110_v19 }
 0x302   : > { %1819 = vmatprep.subr.mxu1 %v2119_v20 }
 0x303   : > { %1820 = vmatpush3.msra.mxu1 %v2119_v20 }
 0x304   : > { %1835 = vmatprep.subr.mxu1 %v2098_v16 }
 0x3bc   : > { %v1801_v2 = vpop.f32.mrf.mxu1 }
 0x3bd   : > { %v475_v4 = vadd.f32 %v1801_v2, %v1642_v1 }
 0x3be   : > { %v465_v5 = vpop.f32.mrf.mxu1 }
 0x3bf   : > { %v477_v6 = vmul.f32 %v475_v4, %v2154_v26  ;;  %v474_v7 = vadd.f32 %v1641_v3, %v465_v5 }
 0x3c1   : > { %v1646_v8 = vmul.f32 -1.442695, %v477_v6  ;;  %v476_v9 = vmul.f32 %v474_v7, %v2154_v26 }
 0x3c3   : > { %1908 = vpow2.f32 %v1646_v8  ;;  %v1645_v10 = vmul.f32 -1.442695, %v476_v9 }
 0x3c5   : > { %1910 = vpow2.f32 %v1645_v10 }
 0x3d0   : > { %v1909_v11 = vpop.eup %1908 }
 0x3d1   : > { %v485_v12 = vadd.f32 1.0, %v1909_v11 }
 0x3d2   : > { %v1911_v13 = vpop.eup %1910 }
 0x3d3   : > { %1912 = vrcp.f32 %v485_v12  ;;  %v484_v14 = vadd.f32 1.0, %v1911_v13 }
 0x3d5   : > { %1914 = vrcp.f32 %v484_v14 }
 0x3e0   : > { %v1913_v15 = vpop.eup %1912 }
 0x3e1   : > { %v491_v18 = vmul.f32 %v1913_v15, %v2154_v26 }
 0x3e2   : > { %v1915_v21 = vpop.eup %1914 }
 0x3e3   : > { %v493_v22 = vadd.f32 %v491_v18, %v2162_v43  ;;  %v490_v23 = vmul.f32 %v1915_v21, %v2154_v26 }
 0x3e5   : > { %500 = vrot.lane.b32.xlu1 %v493_v22, %s2018_s8  ;;  %v492_v24 = vadd.f32 %v490_v23, %v2162_v43  ;;  %v495_v30 = vmul.f32 %v493_v22, %v369_v56  ;;  %v1658_v23 = vld [vmem:[%s2149_s7 + $0x38] sm:$0xff] }
 0x3e7   : > { %498 = vrot.lane.b32.xlu0 %v492_v24, %s2018_s8  ;;  %v494_v33 = vmul.f32 %v492_v24, %v2171_v53 }
 0x457   : > { %v501_v25 = vpop.permute.xlu1 %500 }
 0x458   : > { %v505_v27 = vmul.f32 %v501_v25, %v493_v22  ;;  %v1657_v25 = vld [vmem:[%s2149_s7 + $0x30] sm:$0xff] }
 0x459   : > { %v499_v28 = vpop.permute.xlu0 %498 }
 0x45a   : > { %v504_v29 = vmul.f32 %v499_v28, %v492_v24  ;;  %510 = vrot.lane.b32.xlu1 %v505_v27, %s2019_s9 }
 0x45c   : > { %508 = vrot.lane.b32.xlu0 %v504_v29, %s2019_s9 }
 0x4cc   : > { %v511_v31 = vpop.permute.xlu1 %510 }
 0x4cd   : > { %v515_v32 = vadd.f32 %v511_v31, %v495_v30 }
 0x4ce   : > { %v509_v34 = vpop.permute.xlu0 %508 }
 0x4cf   : > { %1916 = vtanh.f32 %v515_v32  ;;  %v514_v35 = vadd.f32 %v509_v34, %v494_v33 }
 0x4d1   : > { %1918 = vtanh.f32 %v514_v35 }
 0x4dc   : > { %v1917_v36 = vpop.eup %1916 }
 0x4dd   : > { %522 = vrot.lane.b32.xlu1 %v1917_v36, %s2018_s8 }
 0x4de   : > { %v1919_v37 = vpop.eup %1918 }
 0x4df   : > { %520 = vrot.lane.b32.xlu0 %v1919_v37, %s2018_s8 }
 0x54f   : > { %v523_v38 = vpop.permute.xlu1 %522 }
 0x550   : > { %v527_v39 = vmul.f32 %v523_v38, %v493_v22 }
 0x551   : > { %v521_v40 = vpop.permute.xlu0 %520 }
 0x552   : > { %v526_v41 = vmul.f32 %v521_v40, %v492_v24  ;;  %532 = vrot.lane.b32.xlu1 %v527_v39, %s2019_s9 }
 0x554   : > { %530 = vrot.lane.b32.xlu0 %v526_v41, %s2019_s9 }
 0x5c4   : > { %v533_v42 = vpop.permute.xlu1 %532 }
 0x5c5   : > { %1648 = vst.msk [vmem:[%s2179_s14 + $0x18] sm:$0xff] %vm249_vm3, %v533_v42 }
 0x5c6   : > { %v531_v44 = vpop.permute.xlu0 %530 }
 0x5c7   : > { %1647 = vst.msk [vmem:[%s2179_s14 + $0x10] sm:$0xff] %vm249_vm3, %v531_v44  ;;  %1810 = vmatprep.mubr.msk.f32.mxu0 %vm249_vm3, %v531_v44 }
 0x5c8   : > { %1811 = vmatmul.mubr.msk.f32.vlgmr.msra.gmra.mxu0 %vm249_vm3, %v533_v42 }
 0x5c9   : > { %1825 = vmatpush3.msra.mxu0 %v2098_v16 }
 0x5ca   : > { %1826 = vmatprep.subr.mxu0 %v2103_v17 }
 0x5cb   : > { %1827 = vmatpush3.msra.mxu0 %v2103_v17 }
 0x5cc   : > { %1828 = vmatprep.subr.mxu0 %v2110_v19 }
 0x5cd   : > { %1829 = vmatpush3.msra.mxu0 %v2110_v19 }
 0x5ce   : > { %1830 = vmatprep.subr.mxu0 %v2119_v20 }
 0x5cf   : > { %1831 = vmatpush3.msra.mxu0 %v2119_v20 }
 0x5d0   : > { %1846 = vmatprep.subr.mxu0 %v2098_v16 }
 0x688   : > { %v1812_v46 = vpop.f32.mrf.mxu0 }
 0x689   : > { %v622_v48 = vadd.f32 %v1812_v46, %v1650_v45 }
 0x68a   : > { %v612_v49 = vpop.f32.mrf.mxu0 }
 0x68b   : > { %v624_v50 = vmul.f32 %v622_v48, %v2154_v26  ;;  %v621_v51 = vadd.f32 %v1649_v47, %v612_v49 }
 0x68d   : > { %v1654_v52 = vmul.f32 -1.442695, %v624_v50  ;;  %v623_v53 = vmul.f32 %v621_v51, %v2154_v26 }
 0x68f   : > { %1920 = vpow2.f32 %v1654_v52  ;;  %v1653_v54 = vmul.f32 -1.442695, %v623_v53 }
 0x691   : > { %1922 = vpow2.f32 %v1653_v54 }
 0x69c   : > { %v1921_v55 = vpop.eup %1920 }
 0x69d   : > { %v632_v56 = vadd.f32 1.0, %v1921_v55 }
 0x69e   : > { %v1923_v57 = vpop.eup %1922 }
 0x69f   : > { %1924 = vrcp.f32 %v632_v56  ;;  %v631_v58 = vadd.f32 1.0, %v1923_v57 }
 0x6a1   : > { %1926 = vrcp.f32 %v631_v58 }
 0x6ac   : > { %v1925_v59 = vpop.eup %1924 }
 0x6ad   : > { %v638_v60 = vmul.f32 %v1925_v59, %v2154_v26 }
 0x6ae   : > { %v1927_v61 = vpop.eup %1926 }
 0x6af   : > { %v640_v62 = vadd.f32 %v638_v60, %v2162_v43  ;;  %v637_v63 = vmul.f32 %v1927_v61, %v2154_v26 }
 0x6b1   : > { %647 = vrot.lane.b32.xlu1 %v640_v62, %s2018_s8  ;;  %v639_v0 = vadd.f32 %v637_v63, %v2162_v43  ;;  %v642_v5 = vmul.f32 %v640_v62, %v515_v32  ;;  %v1666_v63 = vld [vmem:[%s2149_s7 + $0x48] sm:$0xff] }
 0x6b3   : > { %645 = vrot.lane.b32.xlu0 %v639_v0, %s2018_s8  ;;  %v641_v8 = vmul.f32 %v639_v0, %v514_v35 }
 0x723   : > { %v648_v1 = vpop.permute.xlu1 %647 }
 0x724   : > { %v652_v2 = vmul.f32 %v648_v1, %v640_v62  ;;  %v1665_v1 = vld [vmem:[%s2149_s7 + $0x40] sm:$0xff] }
 0x725   : > { %v646_v3 = vpop.permute.xlu0 %645 }
 0x726   : > { %v651_v4 = vmul.f32 %v646_v3, %v639_v0  ;;  %657 = vrot.lane.b32.xlu1 %v652_v2, %s2019_s9 }
 0x728   : > { %655 = vrot.lane.b32.xlu0 %v651_v4, %s2019_s9 }
 0x798   : > { %v658_v6 = vpop.permute.xlu1 %657 }
 0x799   : > { %v662_v7 = vadd.f32 %v658_v6, %v642_v5 }
 0x79a   : > { %v656_v9 = vpop.permute.xlu0 %655 }
 0x79b   : > { %1928 = vtanh.f32 %v662_v7  ;;  %v661_v10 = vadd.f32 %v656_v9, %v641_v8 }
 0x79d   : > { %1930 = vtanh.f32 %v661_v10 }
 0x7a8   : > { %v1929_v11 = vpop.eup %1928 }
 0x7a9   : > { %669 = vrot.lane.b32.xlu1 %v1929_v11, %s2018_s8 }
 0x7aa   : > { %v1931_v12 = vpop.eup %1930 }
 0x7ab   : > { %667 = vrot.lane.b32.xlu0 %v1931_v12, %s2018_s8 }
 0x81b   : > { %v670_v13 = vpop.permute.xlu1 %669 }
 0x81c   : > { %v674_v14 = vmul.f32 %v670_v13, %v640_v62 }
 0x81d   : > { %v668_v15 = vpop.permute.xlu0 %667 }
 0x81e   : > { %v673_v18 = vmul.f32 %v668_v15, %v639_v0  ;;  %679 = vrot.lane.b32.xlu1 %v674_v14, %s2019_s9 }
 0x820   : > { %677 = vrot.lane.b32.xlu0 %v673_v18, %s2019_s9 }
 0x890   : > { %v680_v21 = vpop.permute.xlu1 %679 }
 0x891   : > { %1656 = vst.msk [vmem:[%s2179_s14 + $0x28] sm:$0xff] %vm249_vm3, %v680_v21 }
 0x892   : > { %v678_v22 = vpop.permute.xlu0 %677 }
 0x893   : > { %1655 = vst.msk [vmem:[%s2179_s14 + $0x20] sm:$0xff] %vm249_vm3, %v678_v22  ;;  %1821 = vmatprep.mubr.msk.f32.mxu1 %vm249_vm3, %v678_v22 }
 0x894   : > { %1822 = vmatmul.mubr.msk.f32.vlgmr.msra.gmra.mxu1 %vm249_vm3, %v680_v21 }
 0x895   : > { %1836 = vmatpush3.msra.mxu1 %v2098_v16 }
 0x896   : > { %1837 = vmatprep.subr.mxu1 %v2103_v17 }
 0x897   : > { %1838 = vmatpush3.msra.mxu1 %v2103_v17 }
 0x898   : > { %1839 = vmatprep.subr.mxu1 %v2110_v19 }
 0x899   : > { %1840 = vmatpush3.msra.mxu1 %v2110_v19 }
 0x89a   : > { %1841 = vmatprep.subr.mxu1 %v2119_v20 }
 0x89b   : > { %1842 = vmatpush3.msra.mxu1 %v2119_v20 }
 0x89c   : > { %1857 = vmatprep.subr.mxu1 %v2098_v16 }
 0x954   : > { %v1823_v24 = vpop.f32.mrf.mxu1 }
 0x955   : > { %v769_v27 = vadd.f32 %v1823_v24, %v1658_v23 }
 0x956   : > { %v759_v28 = vpop.f32.mrf.mxu1 }
 0x957   : > { %v771_v29 = vmul.f32 %v769_v27, %v2154_v26  ;;  %v768_v30 = vadd.f32 %v1657_v25, %v759_v28 }
 0x959   : > { %v1662_v31 = vmul.f32 -1.442695, %v771_v29  ;;  %v770_v32 = vmul.f32 %v768_v30, %v2154_v26 }
 0x95b   : > { %1932 = vpow2.f32 %v1662_v31  ;;  %v1661_v33 = vmul.f32 -1.442695, %v770_v32 }
 0x95d   : > { %1934 = vpow2.f32 %v1661_v33 }
 0x968   : > { %v1933_v34 = vpop.eup %1932 }
 0x969   : > { %v779_v35 = vadd.f32 1.0, %v1933_v34 }
 0x96a   : > { %v1935_v36 = vpop.eup %1934 }
 0x96b   : > { %1936 = vrcp.f32 %v779_v35  ;;  %v778_v37 = vadd.f32 1.0, %v1935_v36 }
 0x96d   : > { %1938 = vrcp.f32 %v778_v37 }
 0x978   : > { %v1937_v38 = vpop.eup %1936 }
 0x979   : > { %v785_v39 = vmul.f32 %v1937_v38, %v2154_v26 }
 0x97a   : > { %v1939_v40 = vpop.eup %1938 }
 0x97b   : > { %v787_v41 = vadd.f32 %v785_v39, %v2162_v43  ;;  %v784_v42 = vmul.f32 %v1939_v40, %v2154_v26 }
 0x97d   : > { %794 = vrot.lane.b32.xlu1 %v787_v41, %s2018_s8  ;;  %v786_v44 = vadd.f32 %v784_v42, %v2162_v43  ;;  %v789_v49 = vmul.f32 %v787_v41, %v662_v7 }
 0x97f   : > { %792 = vrot.lane.b32.xlu0 %v786_v44, %s2018_s8  ;;  %v788_v52 = vmul.f32 %v786_v44, %v661_v10 }
 0x9ef   : > { %v795_v45 = vpop.permute.xlu1 %794 }
 0x9f0   : > { %v799_v46 = vmul.f32 %v795_v45, %v787_v41 }
 0x9f1   : > { %v793_v47 = vpop.permute.xlu0 %792 }
 0x9f2   : > { %v798_v48 = vmul.f32 %v793_v47, %v786_v44  ;;  %804 = vrot.lane.b32.xlu1 %v799_v46, %s2019_s9 }
 0x9f4   : > { %802 = vrot.lane.b32.xlu0 %v798_v48, %s2019_s9 }
 0xa64   : > { %v805_v50 = vpop.permute.xlu1 %804 }
 0xa65   : > { %v809_v51 = vadd.f32 %v805_v50, %v789_v49  ;;  %v1674_v49 = vld [vmem:[%s2149_s7 + $0x58] sm:$0xff]  ;;  %v1673_v50 = vld [vmem:[%s2149_s7 + $0x50] sm:$0xff] }
 0xa66   : > { %v803_v53 = vpop.permute.xlu0 %802 }
 0xa67   : > { %1940 = vtanh.f32 %v809_v51  ;;  %v808_v54 = vadd.f32 %v803_v53, %v788_v52 }
 0xa69   : > { %1942 = vtanh.f32 %v808_v54 }
 0xa74   : > { %v1941_v55 = vpop.eup %1940 }
 0xa75   : > { %816 = vrot.lane.b32.xlu1 %v1941_v55, %s2018_s8 }
 0xa76   : > { %v1943_v56 = vpop.eup %1942 }
 0xa77   : > { %814 = vrot.lane.b32.xlu0 %v1943_v56, %s2018_s8 }
 0xae7   : > { %v817_v57 = vpop.permute.xlu1 %816 }
 0xae8   : > { %v821_v58 = vmul.f32 %v817_v57, %v787_v41 }
 0xae9   : > { %v815_v59 = vpop.permute.xlu0 %814 }
 0xaea   : > { %v820_v60 = vmul.f32 %v815_v59, %v786_v44  ;;  %826 = vrot.lane.b32.xlu1 %v821_v58, %s2019_s9 }
 0xaec   : > { %824 = vrot.lane.b32.xlu0 %v820_v60, %s2019_s9 }
 0xb5c   : > { %v827_v61 = vpop.permute.xlu1 %826 }
 0xb5d   : > { %1664 = vst.msk [vmem:[%s2179_s14 + $0x38] sm:$0xff] %vm249_vm3, %v827_v61 }
 0xb5e   : > { %v825_v62 = vpop.permute.xlu0 %824 }
 0xb5f   : > { %1663 = vst.msk [vmem:[%s2179_s14 + $0x30] sm:$0xff] %vm249_vm3, %v825_v62  ;;  %1832 = vmatprep.mubr.msk.f32.mxu0 %vm249_vm3, %v825_v62 }
 0xb60   : > { %1833 = vmatmul.mubr.msk.f32.vlgmr.msra.gmra.mxu0 %vm249_vm3, %v827_v61 }
 0xb61   : > { %1847 = vmatpush3.msra.mxu0 %v2098_v16 }
 0xb62   : > { %1848 = vmatprep.subr.mxu0 %v2103_v17 }
 0xb63   : > { %1849 = vmatpush3.msra.mxu0 %v2103_v17 }
 0xb64   : > { %1850 = vmatprep.subr.mxu0 %v2110_v19  ;;  %v1718_v42 = vld [vmem:[%s2179_s14 + $0x38] sm:$0xff] }
 0xb65   : > { %1851 = vmatpush3.msra.mxu0 %v2110_v19 }
 0xb66   : > { %1852 = vmatprep.subr.mxu0 %v2119_v20 }
 0xb67   : > { %1853 = vmatpush3.msra.mxu0 %v2119_v20 }
 0xc20   : > { %v1834_v0 = vpop.f32.mrf.mxu0 }
 0xc21   : > { %v916_v2 = vadd.f32 %v1834_v0, %v1666_v63 }
 0xc22   : > { %v906_v3 = vpop.f32.mrf.mxu0 }
 0xc23   : > { %v918_v4 = vmul.f32 %v916_v2, %v2154_v26  ;;  %v915_v5 = vadd.f32 %v1665_v1, %v906_v3 }
 0xc25   : > { %v1670_v6 = vmul.f32 -1.442695, %v918_v4  ;;  %v917_v7 = vmul.f32 %v915_v5, %v2154_v26 }
 0xc27   : > { %1944 = vpow2.f32 %v1670_v6  ;;  %v1669_v8 = vmul.f32 -1.442695, %v917_v7 }
 0xc29   : > { %1946 = vpow2.f32 %v1669_v8 }
 0xc34   : > { %v1945_v9 = vpop.eup %1944 }
 0xc35   : > { %v926_v10 = vadd.f32 1.0, %v1945_v9 }
 0xc36   : > { %v1947_v11 = vpop.eup %1946 }
 0xc37   : > { %1948 = vrcp.f32 %v926_v10  ;;  %v925_v12 = vadd.f32 1.0, %v1947_v11 }
 0xc39   : > { %1950 = vrcp.f32 %v925_v12 }
 0xc44   : > { %v1949_v13 = vpop.eup %1948 }
 0xc45   : > { %v932_v14 = vmul.f32 %v1949_v13, %v2154_v26 }
 0xc46   : > { %v1951_v15 = vpop.eup %1950 }
 0xc47   : > { %v934_v18 = vadd.f32 %v932_v14, %v2162_v43  ;;  %v931_v21 = vmul.f32 %v1951_v15, %v2154_v26 }
 0xc49   : > { %941 = vrot.lane.b32.xlu1 %v934_v18, %s2018_s8  ;;  %v933_v22 = vadd.f32 %v931_v21, %v2162_v43  ;;  %v936_v28 = vmul.f32 %v934_v18, %v809_v51 }
 0xc4b   : > { %939 = vrot.lane.b32.xlu0 %v933_v22, %s2018_s8  ;;  %v935_v31 = vmul.f32 %v933_v22, %v808_v54 }
 0xcbb   : > { %v942_v23 = vpop.permute.xlu1 %941 }
 0xcbc   : > { %v946_v24 = vmul.f32 %v942_v23, %v934_v18 }
 0xcbd   : > { %v940_v25 = vpop.permute.xlu0 %939 }
 0xcbe   : > { %v945_v27 = vmul.f32 %v940_v25, %v933_v22  ;;  %951 = vrot.lane.b32.xlu1 %v946_v24, %s2019_s9  ;;  %v1710_v25 = vld [vmem:[%s2179_s14 + $0x28] sm:$0xff] }
 0xcc0   : > { %949 = vrot.lane.b32.xlu0 %v945_v27, %s2019_s9 }
 0xd30   : > { %v952_v29 = vpop.permute.xlu1 %951 }
 0xd31   : > { %v2297_v30 = vadd.f32 %v952_v29, %v936_v28 }
 0xd32   : > { %v950_v32 = vpop.permute.xlu0 %949 }
 0xd33   : > { %1952 = vtanh.f32 %v2297_v30  ;;  %v2300_v33 = vadd.f32 %v950_v32, %v935_v31 }
 0xd35   : > { %1954 = vtanh.f32 %v2300_v33 }
 0xd40   : > { %v1953_v34 = vpop.eup %1952 }
 0xd41   : > { %963 = vrot.lane.b32.xlu1 %v1953_v34, %s2018_s8  ;;  %v1682_v34 = vld [vmem:[%s2149_s7 + $0x68] sm:$0xff] }
 0xd42   : > { %v1955_v35 = vpop.eup %1954 }
 0xd43   : > { %961 = vrot.lane.b32.xlu0 %v1955_v35, %s2018_s8 }
 0xdb3   : > { %v964_v36 = vpop.permute.xlu1 %963 }
 0xdb4   : > { %v968_v37 = vmul.f32 %v964_v36, %v934_v18  ;;  %v1681_v36 = vld [vmem:[%s2149_s7 + $0x60] sm:$0xff] }
 0xdb5   : > { %v962_v38 = vpop.permute.xlu0 %961 }
 0xdb6   : > { %v967_v39 = vmul.f32 %v962_v38, %v933_v22  ;;  %973 = vrot.lane.b32.xlu1 %v968_v37, %s2019_s9 }
 0xdb8   : > { %971 = vrot.lane.b32.xlu0 %v967_v39, %s2019_s9 }
 0xe28   : > { %v974_v40 = vpop.permute.xlu1 %973 }
 0xe29   : > { %1672 = vst.msk [vmem:[%s2179_s14 + $0x48] sm:$0xff] %vm249_vm3, %v974_v40 }
 0xe2a   : > { %v972_v41 = vpop.permute.xlu0 %971 }
 0xe2b   : > { %1671 = vst.msk [vmem:[%s2179_s14 + $0x40] sm:$0xff] %vm249_vm3, %v972_v41  ;;  %1843 = vmatprep.mubr.msk.f32.mxu1 %vm249_vm3, %v972_v41 }
 0xe2c   : > { %1844 = vmatmul.mubr.msk.f32.vlgmr.msra.gmra.mxu1 %vm249_vm3, %v974_v40 }
 0xe2d   : > { %1858 = vmatpush3.msra.mxu1 %v2098_v16  ;;  %v1717_v16 = vld [vmem:[%s2179_s14 + $0x30] sm:$0xff] }
 0xe2e   : > { %1859 = vmatprep.subr.mxu1 %v2103_v17 }
 0xe2f   : > { %1860 = vmatpush3.msra.mxu1 %v2103_v17 }
 0xe30   : > { %v1720_v44 = vld [vmem:[%s2179_s14 + $0x48] sm:$0xff]  ;;  %1861 = vmatprep.subr.mxu1 %v2110_v19 }
 0xe31   : > { %v1463_v45 = vsel %vm1425_vm4, %v1718_v42, %v1720_v44  ;;  %v1467_v46 = vsel %vm1425_vm4, %v1720_v44, %v1718_v42  ;;  %1862 = vmatpush3.msra.mxu1 %v2110_v19 }
 0xe32   : > { %1722 = vst.msk [vmem:[%s2179_s14 + $0x38] sm:$0xff] %vm249_vm3, %v1463_v45  ;;  %1724 = vst.msk [vmem:[%s2179_s14 + $0x48] sm:$0xff] %vm249_vm3, %v1467_v46  ;;  %v1719_v47 = vld [vmem:[%s2179_s14 + $0x40] sm:$0xff]  ;;  %1863 = vmatprep.subr.mxu1 %v2119_v20 }
 0xe33   : > { %v1462_v17 = vsel %vm1425_vm4, %v1717_v16, %v1719_v47  ;;  %v1466_v48 = vsel %vm1425_vm4, %v1719_v47, %v1717_v16  ;;  %1864 = vmatpush3.msra.mxu1 %v2119_v20 }
 0xe34   : > { %1721 = vst.msk [vmem:[%s2179_s14 + $0x30] sm:$0xff] %vm249_vm3, %v1462_v17  ;;  %1723 = vst.msk [vmem:[%s2179_s14 + $0x40] sm:$0xff] %vm249_vm3, %v1466_v48 }
 0xeec   : > { %v1845_v19 = vpop.f32.mrf.mxu1 }
 0xeed   : > { %v1063_v51 = vadd.f32 %v1845_v19, %v1674_v49 }
 0xeee   : > { %v1053_v52 = vpop.f32.mrf.mxu1 }
 0xeef   : > { %v1065_v53 = vmul.f32 %v1063_v51, %v2154_v26  ;;  %v1062_v54 = vadd.f32 %v1673_v50, %v1053_v52 }
 0xef1   : > { %v1678_v55 = vmul.f32 -1.442695, %v1065_v53  ;;  %v1064_v56 = vmul.f32 %v1062_v54, %v2154_v26 }
 0xef3   : > { %1956 = vpow2.f32 %v1678_v55  ;;  %v1677_v57 = vmul.f32 -1.442695, %v1064_v56 }
 0xef5   : > { %1958 = vpow2.f32 %v1677_v57 }
 0xf00   : > { %v1957_v58 = vpop.eup %1956 }
 0xf01   : > { %v1073_v20 = vadd.f32 1.0, %v1957_v58 }
 0xf02   : > { %v1959_v59 = vpop.eup %1958 }
 0xf03   : > { %1960 = vrcp.f32 %v1073_v20  ;;  %v1072_v60 = vadd.f32 1.0, %v1959_v59 }
 0xf05   : > { %1962 = vrcp.f32 %v1072_v60 }
 0xf10   : > { %v1961_v61 = vpop.eup %1960 }
 0xf11   : > { %v1079_v62 = vmul.f32 %v1961_v61, %v2154_v26 }
 0xf12   : > { %v1963_v63 = vpop.eup %1962 }
 0xf13   : > { %v1081_v0 = vadd.f32 %v1079_v62, %v2162_v43  ;;  %v1078_v1 = vmul.f32 %v1963_v63, %v2154_v26 }
 0xf15   : > { %1088 = vrot.lane.b32.xlu1 %v1081_v0, %s2018_s8  ;;  %v1080_v2 = vadd.f32 %v1078_v1, %v2162_v43  ;;  %v1083_v7 = vmul.f32 %v1081_v0, %v2297_v30  ;;  %v1709_v30 = vld [vmem:[%s2179_s14 + $0x20] sm:$0xff] }
 0xf17   : > { %1086 = vrot.lane.b32.xlu0 %v1080_v2, %s2018_s8  ;;  %v1082_v10 = vmul.f32 %v1080_v2, %v2300_v33 }
 0xf87   : > { %v1089_v3 = vpop.permute.xlu1 %1088 }
 0xf88   : > { %v1093_v4 = vmul.f32 %v1089_v3, %v1081_v0 }
 0xf89   : > { %v1087_v5 = vpop.permute.xlu0 %1086 }
 0xf8a   : > { %v1092_v6 = vmul.f32 %v1087_v5, %v1080_v2  ;;  %1098 = vrot.lane.b32.xlu1 %v1093_v4, %s2019_s9  ;;  %v1702_v5 = vld [vmem:[%s2179_s14 + $0x18] sm:$0xff] }
 0xf8c   : > { %1096 = vrot.lane.b32.xlu0 %v1092_v6, %s2019_s9 }
 0xffc   : > { %v1099_v8 = vpop.permute.xlu1 %1098 }
 0xffd   : > { %v2349_v9 = vadd.f32 %v1099_v8, %v1083_v7 }
 0xffe   : > { %v1097_v11 = vpop.permute.xlu0 %1096 }
 0xfff   : > { %1964 = vtanh.f32 %v2349_v9  ;;  %v2353_v12 = vadd.f32 %v1097_v11, %v1082_v10 }
0x1001   : > { %1966 = vtanh.f32 %v2353_v12 }
0x100c   : > { %v1965_v13 = vpop.eup %1964 }
0x100d   : > { %1110 = vrot.lane.b32.xlu1 %v1965_v13, %s2018_s8  ;;  %v1690_v13 = vld [vmem:[%s2149_s7 + $0x78] sm:$0xff] }
0x100e   : > { %v1967_v14 = vpop.eup %1966 }
0x100f   : > { %1108 = vrot.lane.b32.xlu0 %v1967_v14, %s2018_s8 }
0x107f   : > { %v1111_v15 = vpop.permute.xlu1 %1110 }
0x1080   : > { %v1115_v18 = vmul.f32 %v1111_v15, %v1081_v0  ;;  %v1689_v15 = vld [vmem:[%s2149_s7 + $0x70] sm:$0xff] }
0x1081   : > { %v1109_v21 = vpop.permute.xlu0 %1108 }
0x1082   : > { %v1114_v22 = vmul.f32 %v1109_v21, %v1080_v2  ;;  %1120 = vrot.lane.b32.xlu1 %v1115_v18, %s2019_s9 }
0x1084   : > { %1118 = vrot.lane.b32.xlu0 %v1114_v22, %s2019_s9 }
0x10f4   : > { %v1121_v23 = vpop.permute.xlu1 %1120 }
0x10f5   : > { %1680 = vst.msk [vmem:[%s2179_s14 + $0x58] sm:$0xff] %vm249_vm3, %v1121_v23 }
0x10f6   : > { %v1119_v24 = vpop.permute.xlu0 %1118 }
0x10f7   : > { %1679 = vst.msk [vmem:[%s2179_s14 + $0x50] sm:$0xff] %vm249_vm3, %v1119_v24  ;;  %1854 = vmatprep.mubr.msk.f32.mxu0 %vm249_vm3, %v1119_v24 }
0x10f8   : > { %1855 = vmatmul.mubr.msk.f32.vlgmr.msra.gmra.mxu0 %vm249_vm3, %v1121_v23 }
0x10fc   : > { %v1712_v27 = vld [vmem:[%s2179_s14 + $0x58] sm:$0xff] }
0x10fd   : > { %v1451_v28 = vsel %vm1425_vm4, %v1710_v25, %v1712_v27  ;;  %v1455_v29 = vsel %vm1425_vm4, %v1712_v27, %v1710_v25 }
0x10fe   : > { %1714 = vst.msk [vmem:[%s2179_s14 + $0x28] sm:$0xff] %vm249_vm3, %v1451_v28  ;;  %1716 = vst.msk [vmem:[%s2179_s14 + $0x58] sm:$0xff] %vm249_vm3, %v1455_v29  ;;  %v1711_v31 = vld [vmem:[%s2179_s14 + $0x50] sm:$0xff] }
0x10ff   : > { %v1450_v32 = vsel %vm1425_vm4, %v1709_v30, %v1711_v31  ;;  %v1454_v33 = vsel %vm1425_vm4, %v1711_v31, %v1709_v30 }
0x1100   : > { %1713 = vst.msk [vmem:[%s2179_s14 + $0x20] sm:$0xff] %vm249_vm3, %v1450_v32  ;;  %1715 = vst.msk [vmem:[%s2179_s14 + $0x50] sm:$0xff] %vm249_vm3, %v1454_v33 }
0x11b8   : > { %v1856_v35 = vpop.f32.mrf.mxu0 }
0x11b9   : > { %v1210_v37 = vadd.f32 %v1856_v35, %v1682_v34 }
0x11ba   : > { %v1200_v38 = vpop.f32.mrf.mxu0 }
0x11bb   : > { %v1212_v39 = vmul.f32 %v1210_v37, %v2154_v26  ;;  %v1209_v40 = vadd.f32 %v1681_v36, %v1200_v38 }
0x11bd   : > { %v1686_v41 = vmul.f32 -1.442695, %v1212_v39  ;;  %v1211_v42 = vmul.f32 %v1209_v40, %v2154_v26 }
0x11bf   : > { %1968 = vpow2.f32 %v1686_v41  ;;  %v1685_v44 = vmul.f32 -1.442695, %v1211_v42 }
0x11c1   : > { %1970 = vpow2.f32 %v1685_v44 }
0x11cc   : > { %v1969_v45 = vpop.eup %1968 }
0x11cd   : > { %v1220_v46 = vadd.f32 1.0, %v1969_v45 }
0x11ce   : > { %v1971_v16 = vpop.eup %1970 }
0x11cf   : > { %1972 = vrcp.f32 %v1220_v46  ;;  %v1219_v47 = vadd.f32 1.0, %v1971_v16 }
0x11d1   : > { %1974 = vrcp.f32 %v1219_v47 }
0x11dc   : > { %v1973_v17 = vpop.eup %1972 }
0x11dd   : > { %v1226_v48 = vmul.f32 %v1973_v17, %v2154_v26 }
0x11de   : > { %v1975_v49 = vpop.eup %1974 }
0x11df   : > { %v1228_v19 = vadd.f32 %v1226_v48, %v2162_v43  ;;  %v1225_v50 = vmul.f32 %v1975_v49, %v2154_v26 }
0x11e1   : > { %1235 = vrot.lane.b32.xlu1 %v1228_v19, %s2018_s8  ;;  %v1227_v51 = vadd.f32 %v1225_v50, %v2162_v43  ;;  %v1230_v56 = vmul.f32 %v1228_v19, %v2349_v9  ;;  %v1701_v9 = vld [vmem:[%s2179_s14 + $0x10] sm:$0xff] }
0x11e3   : > { %1233 = vrot.lane.b32.xlu0 %v1227_v51, %s2018_s8  ;;  %v1229_v20 = vmul.f32 %v1227_v51, %v2353_v12 }
0x1253   : > { %v1236_v52 = vpop.permute.xlu1 %1235 }
0x1254   : > { %v1240_v53 = vmul.f32 %v1236_v52, %v1228_v19  ;;  %v1422_v52 = vld [vmem:[%s2179_s14 + $0x8] sm:$0xff] }
0x1255   : > { %v1234_v54 = vpop.permute.xlu0 %1233 }
0x1256   : > { %v1239_v55 = vmul.f32 %v1234_v54, %v1227_v51  ;;  %1245 = vrot.lane.b32.xlu1 %v1240_v53, %s2019_s9 }
0x1258   : > { %1243 = vrot.lane.b32.xlu0 %v1239_v55, %s2019_s9 }
0x12c8   : > { %v1246_v57 = vpop.permute.xlu1 %1245 }
0x12c9   : > { %v2395_v58 = vadd.f32 %v1246_v57, %v1230_v56  ;;  %v1421_v56 = vld [vmem:[%s2179_s14] sm:$0xff] }
0x12ca   : > { %v1244_v59 = vpop.permute.xlu0 %1243 }
0x12cb   : > { %1976 = vtanh.f32 %v2395_v58  ;;  %v2399_v60 = vadd.f32 %v1244_v59, %v1229_v20 }
0x12cd   : > { %1978 = vtanh.f32 %v2399_v60 }
0x12d8   : > { %v1977_v61 = vpop.eup %1976 }
0x12d9   : > { %1257 = vrot.lane.b32.xlu1 %v1977_v61, %s2018_s8 }
0x12da   : > { %v1979_v62 = vpop.eup %1978 }
0x12db   : > { %1255 = vrot.lane.b32.xlu0 %v1979_v62, %s2018_s8 }
0x134b   : > { %v1258_v63 = vpop.permute.xlu1 %1257 }
0x134c   : > { %v1262_v0 = vmul.f32 %v1258_v63, %v1228_v19  ;;  %v1546_v63 = vld [vmem:[%s2179_s14 + $0x20] sm:$0xff] (%p2065_p5) }
0x134d   : > { %v1256_v1 = vpop.permute.xlu0 %1255  ;;  %1547 = vst [vmem:[%s1479_s17 + $0x40] sm:$0xff] (%p2065_p5), %v1546_v63 }
0x134e   : > { %v1261_v2 = vmul.f32 %v1256_v1, %v1227_v51  ;;  %1267 = vrot.lane.b32.xlu1 %v1262_v0, %s2019_s9  ;;  %v1548_v0 = vld [vmem:[%s2179_s14 + $0x28] sm:$0xff] (%p2065_p5)  ;;  %v1550_v1 = vld [vmem:[%s2179_s14 + $0x30] sm:$0xff] (%p2065_p5) }
0x134f   : > { %1549 = vst [vmem:[%s1479_s17 + $0x48] sm:$0xff] (%p2065_p5), %v1548_v0  ;;  %1551 = vst [vmem:[%s1479_s17 + $0x60] sm:$0xff] (%p2065_p5), %v1550_v1 }
0x1350   : > { %1265 = vrot.lane.b32.xlu0 %v1261_v2, %s2019_s9  ;;  %v1552_v2 = vld [vmem:[%s2179_s14 + $0x38] sm:$0xff] (%p2065_p5) }
0x1351   : > { %1553 = vst [vmem:[%s1479_s17 + $0x68] sm:$0xff] (%p2065_p5), %v1552_v2 }
0x13c0   : > { %v1268_v3 = vpop.permute.xlu1 %1267 }
0x13c1   : > { %1688 = vst.msk [vmem:[%s2179_s14 + $0x68] sm:$0xff] %vm249_vm3, %v1268_v3 }
0x13c2   : > { %v1266_v4 = vpop.permute.xlu0 %1265 }
0x13c3   : > { %1687 = vst.msk [vmem:[%s2179_s14 + $0x60] sm:$0xff] %vm249_vm3, %v1266_v4  ;;  %1865 = vmatprep.mubr.msk.f32.mxu1 %vm249_vm3, %v1266_v4  ;;  %v1556_v4 = vld [vmem:[%s2179_s14 + $0x48] sm:$0xff] (%p2065_p5) }
0x13c4   : > { %1866 = vmatmul.mubr.msk.f32.vlgmr.msra.gmra.mxu1 %vm249_vm3, %v1268_v3  ;;  %v1554_v3 = vld [vmem:[%s2179_s14 + $0x40] sm:$0xff] (%p2065_p5)  ;;  %1557 = vst [vmem:[%s1479_s17 + $0x88] sm:$0xff] (%p2065_p5), %v1556_v4 }
0x13c5   : > { %1555 = vst [vmem:[%s1479_s17 + $0x80] sm:$0xff] (%p2065_p5), %v1554_v3 }
0x13c8   : > { %v1704_v6 = vld [vmem:[%s2179_s14 + $0x68] sm:$0xff] }
0x13c9   : > { %v1439_v7 = vsel %vm1425_vm4, %v1702_v5, %v1704_v6  ;;  %v1443_v8 = vsel %vm1425_vm4, %v1704_v6, %v1702_v5  ;;  %v1558_v5 = vld [vmem:[%s2179_s14 + $0x50] sm:$0xff] (%p2065_p5)  ;;  %v1560_v6 = vld [vmem:[%s2179_s14 + $0x58] sm:$0xff] (%p2065_p5) }
0x13ca   : > { %1706 = vst.msk [vmem:[%s2179_s14 + $0x18] sm:$0xff] %vm249_vm3, %v1439_v7  ;;  %1708 = vst.msk [vmem:[%s2179_s14 + $0x68] sm:$0xff] %vm249_vm3, %v1443_v8  ;;  %v1703_v10 = vld [vmem:[%s2179_s14 + $0x60] sm:$0xff] }
0x13cb   : > { %v1438_v11 = vsel %vm1425_vm4, %v1701_v9, %v1703_v10  ;;  %v1442_v12 = vsel %vm1425_vm4, %v1703_v10, %v1701_v9  ;;  %1559 = vst [vmem:[%s1479_s17 + $0xa0] sm:$0xff] (%p2065_p5), %v1558_v5  ;;  %1561 = vst [vmem:[%s1479_s17 + $0xa8] sm:$0xff] (%p2065_p5), %v1560_v6 }
0x13cc   : > { %1705 = vst.msk [vmem:[%s2179_s14 + $0x10] sm:$0xff] %vm249_vm3, %v1438_v11  ;;  %1707 = vst.msk [vmem:[%s2179_s14 + $0x60] sm:$0xff] %vm249_vm3, %v1442_v12 }
0x13d1   : > { %v1544_v62 = vld [vmem:[%s2179_s14 + $0x18] sm:$0xff] (%p2065_p5)  ;;  %v1564_v8 = vld [vmem:[%s2179_s14 + $0x68] sm:$0xff] (%p2065_p5) }
0x13d2   : > { %1545 = vst [vmem:[%s1479_s17 + $0x28] sm:$0xff] (%p2065_p5), %v1544_v62  ;;  %1565 = vst [vmem:[%s1479_s17 + $0xc8] sm:$0xff] (%p2065_p5), %v1564_v8 }
0x13d3   : > { %v1542_v61 = vld [vmem:[%s2179_s14 + $0x10] sm:$0xff] (%p2065_p5)  ;;  %v1562_v7 = vld [vmem:[%s2179_s14 + $0x60] sm:$0xff] (%p2065_p5) }
0x13d4   : > { %1543 = vst [vmem:[%s1479_s17 + $0x20] sm:$0xff] (%p2065_p5), %v1542_v61  ;;  %1563 = vst [vmem:[%s1479_s17 + $0xc0] sm:$0xff] (%p2065_p5), %v1562_v7 }
0x1484   : > { %v1867_v14 = vpop.f32.mrf.mxu1 }
0x1485   : > { %v1357_v18 = vadd.f32 %v1867_v14, %v1690_v13 }
0x1486   : > { %v1347_v21 = vpop.f32.mrf.mxu1 }
0x1487   : > { %v1359_v22 = vmul.f32 %v1357_v18, %v2154_v26  ;;  %v1356_v23 = vadd.f32 %v1689_v15, %v1347_v21 }
0x1489   : > { %v1694_v24 = vmul.f32 -1.442695, %v1359_v22  ;;  %v1358_v25 = vmul.f32 %v1356_v23, %v2154_v26 }
0x148b   : > { %1980 = vpow2.f32 %v1694_v24  ;;  %v1693_v27 = vmul.f32 -1.442695, %v1358_v25 }
0x148d   : > { %1982 = vpow2.f32 %v1693_v27 }
0x1498   : > { %v1981_v28 = vpop.eup %1980 }
0x1499   : > { %v1367_v29 = vadd.f32 1.0, %v1981_v28 }
0x149a   : > { %v1983_v30 = vpop.eup %1982 }
0x149b   : > { %1984 = vrcp.f32 %v1367_v29  ;;  %v1366_v31 = vadd.f32 1.0, %v1983_v30 }
0x149d   : > { %1986 = vrcp.f32 %v1366_v31 }
0x14a8   : > { %v1985_v32 = vpop.eup %1984 }
0x14a9   : > { %v1373_v33 = vmul.f32 %v1985_v32, %v2154_v26 }
0x14aa   : > { %v1987_v34 = vpop.eup %1986 }
0x14ab   : > { %v1375_v35 = vadd.f32 %v1373_v33, %v2162_v43  ;;  %v1372_v36 = vmul.f32 %v1987_v34, %v2154_v26 }
0x14ad   : > { %1382 = vrot.lane.b32.xlu1 %v1375_v35, %s2018_s8  ;;  %v1374_v37 = vadd.f32 %v1372_v36, %v2162_v43  ;;  %v1377_v42 = vmul.f32 %v1375_v35, %v2395_v58 }
0x14af   : > { %1380 = vrot.lane.b32.xlu0 %v1374_v37, %s2018_s8  ;;  %v1376_v26 = vmul.f32 %v1374_v37, %v2399_v60 }
0x151f   : > { %v1383_v38 = vpop.permute.xlu1 %1382 }
0x1520   : > { %v1387_v39 = vmul.f32 %v1383_v38, %v1375_v35 }
0x1521   : > { %v1381_v40 = vpop.permute.xlu0 %1380 }
0x1522   : > { %v1386_v41 = vmul.f32 %v1381_v40, %v1374_v37  ;;  %1392 = vrot.lane.b32.xlu1 %v1387_v39, %s2019_s9 }
0x1524   : > { %1390 = vrot.lane.b32.xlu0 %v1386_v41, %s2019_s9 }
0x1594   : > { %v1393_v44 = vpop.permute.xlu1 %1392 }
0x1595   : > { %v1397_v45 = vadd.f32 %v1393_v44, %v1377_v42 }
0x1596   : > { %v1391_v46 = vpop.permute.xlu0 %1390 }
0x1597   : > { %1988 = vtanh.f32 %v1397_v45  ;;  %v1396_v43 = vadd.f32 %v1391_v46, %v1376_v26 }
0x1599   : > { %1990 = vtanh.f32 %v1396_v43 }
0x15a4   : > { %v1989_v16 = vpop.eup %1988 }
0x15a5   : > { %1404 = vrot.lane.b32.xlu1 %v1989_v16, %s2018_s8 }
0x15a6   : > { %v1991_v47 = vpop.eup %1990 }
0x15a7   : > { %1402 = vrot.lane.b32.xlu0 %v1991_v47, %s2018_s8 }
0x1617   : > { %v1405_v17 = vpop.permute.xlu1 %1404 }
0x1618   : > { %v1409_v48 = vmul.f32 %v1405_v17, %v1375_v35 }
0x1619   : > { %v1403_v49 = vpop.permute.xlu0 %1402 }
0x161a   : > { %v1408_v19 = vmul.f32 %v1403_v49, %v1374_v37  ;;  %1414 = vrot.lane.b32.xlu1 %v1409_v48, %s2019_s9 }
0x161c   : > { %1412 = vrot.lane.b32.xlu0 %v1408_v19, %s2019_s9 }
0x168c   : > { %v1415_v50 = vpop.permute.xlu1 %1414 }
0x168d   : > { %1696 = vst.msk [vmem:[%s2179_s14 + $0x78] sm:$0xff] %vm249_vm3, %v1415_v50 }
0x168e   : > { %v1413_v51 = vpop.permute.xlu0 %1412 }
0x168f   : > { %1695 = vst.msk [vmem:[%s2179_s14 + $0x70] sm:$0xff] %vm249_vm3, %v1413_v51 }
0x1694   : > { %v1698_v53 = vld [vmem:[%s2179_s14 + $0x78] sm:$0xff]  ;;  %1476 = sbr.rel (!%p2065_p5) target bundleno = 5793 (0x16a1), region = 70 }
0x1695   : > { %v1427_v54 = vsel %vm1425_vm4, %v1422_v52, %v1698_v53  ;;  %v1431_v55 = vsel %vm1425_vm4, %v1698_v53, %v1422_v52 }
0x1696   : > { %1429 = vst.msk [vmem:[%s2179_s14 + $0x8] sm:$0xff] %vm249_vm3, %v1427_v54  ;;  %1700 = vst.msk [vmem:[%s2179_s14 + $0x78] sm:$0xff] %vm249_vm3, %v1431_v55  ;;  %v1697_v57 = vld [vmem:[%s2179_s14 + $0x70] sm:$0xff] }
0x1697   : > { %v1426_v58 = vsel %vm1425_vm4, %v1421_v56, %v1697_v57  ;;  %v1430_v20 = vsel %vm1425_vm4, %v1697_v57, %v1421_v56 }
0x1698   : > { %1428 = vst.msk [vmem:[%s2179_s14] sm:$0xff] %vm249_vm3, %v1426_v58  ;;  %1699 = vst.msk [vmem:[%s2179_s14 + $0x70] sm:$0xff] %vm249_vm3, %v1430_v20 }
0x169d   : > { %v1540_v60 = vld [vmem:[%s2179_s14 + $0x8] sm:$0xff]  ;;  %v1568_v10 = vld [vmem:[%s2179_s14 + $0x78] sm:$0xff] }
0x169e   : > { %1541 = vst [vmem:[%s1479_s17 + $0x8] sm:$0xff] %v1540_v60  ;;  %1569 = vst [vmem:[%s1479_s17 + $0xe8] sm:$0xff] %v1568_v10 }
0x169f   : > { %v1538_v59 = vld [vmem:[%s2179_s14] sm:$0xff]  ;;  %v1566_v9 = vld [vmem:[%s2179_s14 + $0x70] sm:$0xff] }
0x16a0   : > { %1539 = vst [vmem:[%s1479_s17] sm:$0xff] %v1538_v59  ;;  %1567 = vst [vmem:[%s1479_s17 + $0xe0] sm:$0xff] %v1566_v9 }
0x16a1 PF: > { %p9_p10 = scmp.ge.s32.totalorder %s2052_s13, 4   ;;  %s2505_s9 = smov %s2010_s10 }
0x16a2   : > { %s2506_s10 = smov %s2063_s16  ;;  %s2507_s11 = smov %s2052_s13 }
0x16a3   :  { %11 = sbr.rel (!%p9_p10) target bundleno = 2 (0x2), region = 153 }

// kernel: fnblock_forward.2
= control target key start
LH: loop header
LB: loop body
LE: loop exit
PB: predicated region body
PF: predicated region fallthrough
CT: control target
= control target key end

     0   :  { %s2696_s9 = smov 0   ;;  %s2698_s10 = smov 0   ;;  %s3227_s0 = inlined_call_operand.vmem [shape: f32[16,16,128], index: 0, kind: input, shape index: {}]   ;;  %s3228_s1 = inlined_call_operand.vmem [shape: f32[32,128], index: 1, kind: input, shape index: {}]   ;;  %s3229_s2 = inlined_call_operand.vmem [shape: f32[16,16,32], index: 2, kind: output, shape index: {}]  }
   0x1   :  { %s2700_s11 = smov 0  }
   0x2 LB: > { %s2163_s12 = sadd.s32 4294967295, %s2674_s11   ;;  %s2713_s13 = sadd.s32 1, %s2674_s11   ;;  %s2674_s11 = sphi %s2700_s11, %s3233_s11   ;;  %s2670_s10 = sphi %s2698_s10, %s3232_s10   ;;  %s2666_s9 = sphi %s2696_s9, %s3231_s9  }
   0x3   : > { %s16_s14 = ssub.s32 %s2674_s11, %s2713_s13  ;;  %s19_s15 = sadd.s32 1, %s2670_s10 }
   0x4   : > { %p17_p0 = scmp.eq.s32.totalorder %s16_s14, 0  ;;  %p26_p1 = scmp.ne.s32.totalorder %s2670_s10, %s2666_s9 }
   0x5   : > { %p27_p2 = scmp.eq.s32.totalorder %s2674_s11, 0  ;;  %p77_p3 = scmp.eq.s32.totalorder %s2163_s12, 1 }
   0x6   : > { %s2724_s16 = scalar_select %p17_p0, %s2670_s10, %s19_s15  }
   0x7   : > { %p28_p4 = por %p27_p2, %p26_p1  ;;  %p2726_p5 = por %p77_p3, %p26_p1 }
   0x8   : > { %p2166_p6 = scmp.ge.s32.totalorder %s2674_s11, 2 }
   0xa   : > { %102 = sbr.rel (%p2166_p6) target bundleno = 27 (0x1b), region = 20 }
   0xf   : > { %105 = sbr.rel (!%p28_p4) target bundleno = 27 (0x1b), region = 24  ;;  %s107_s18 = sand.u32 (%p28_p4), 1, %s2670_s10  }
  0x10   : > { %s2168_s19 = sshll.u32 (%p28_p4), %s2674_s11, 3  ;;  %s2167_s20 = sshll.u32 (%p28_p4), %s107_s18, 7 }
  0x11   : > { %s2736_s23 = scalar_lea.vmem (%p28_p4), %s3227_s0, %s2168_s19  ;;  %s109_s24 = scalar_lea.vmem (%p28_p4), [#allocation2], %s2167_s20 }
  0x12   : > { %v170_v0 = vld [vmem:[%s2736_s23] sm:$0xff] (%p28_p4)  ;;  %v172_v1 = vld [vmem:[%s2736_s23 + $0x10] sm:$0xff] (%p28_p4) }
  0x13   : > { %v174_v2 = vld [vmem:[%s2736_s23 + $0x20] sm:$0xff] (%p28_p4)  ;;  %171 = vst [vmem:[%s109_s24] sm:$0xff] (%p28_p4), %v170_v0  ;;  %173 = vst [vmem:[%s109_s24 + $0x8] sm:$0xff] (%p28_p4), %v172_v1  ;;  %v176_v3 = vld [vmem:[%s2736_s23 + $0x30] sm:$0xff] (%p28_p4) }
  0x14   : > { %175 = vst [vmem:[%s109_s24 + $0x10] sm:$0xff] %v174_v2  ;;  %v178_v4 = vld [vmem:[%s2736_s23 + $0x40] sm:$0xff]  ;;  %v180_v5 = vld [vmem:[%s2736_s23 + $0x50] sm:$0xff]  ;;  %177 = vst [vmem:[%s109_s24 + $0x18] sm:$0xff] %v176_v3 }
  0x15   : > { %179 = vst [vmem:[%s109_s24 + $0x20] sm:$0xff] %v178_v4  ;;  %181 = vst [vmem:[%s109_s24 + $0x28] sm:$0xff] %v180_v5  ;;  %v182_v6 = vld [vmem:[%s2736_s23 + $0x60] sm:$0xff]  ;;  %v184_v7 = vld [vmem:[%s2736_s23 + $0x70] sm:$0xff] }
  0x16   : > { %v186_v8 = vld [vmem:[%s2736_s23 + $0x80] sm:$0xff]  ;;  %183 = vst [vmem:[%s109_s24 + $0x30] sm:$0xff] %v182_v6  ;;  %185 = vst [vmem:[%s109_s24 + $0x38] sm:$0xff] %v184_v7  ;;  %v188_v9 = vld [vmem:[%s2736_s23 + $0x90] sm:$0xff] }
  0x17   : > { %187 = vst [vmem:[%s109_s24 + $0x40] sm:$0xff] %v186_v8  ;;  %v190_v10 = vld [vmem:[%s2736_s23 + $0xa0] sm:$0xff]  ;;  %v192_v11 = vld [vmem:[%s2736_s23 + $0xb0] sm:$0xff]  ;;  %189 = vst [vmem:[%s109_s24 + $0x48] sm:$0xff] %v188_v9 }
  0x18   : > { %191 = vst [vmem:[%s109_s24 + $0x50] sm:$0xff] %v190_v10  ;;  %193 = vst [vmem:[%s109_s24 + $0x58] sm:$0xff] %v192_v11  ;;  %v194_v12 = vld [vmem:[%s2736_s23 + $0xc0] sm:$0xff]  ;;  %v196_v13 = vld [vmem:[%s2736_s23 + $0xd0] sm:$0xff] }
  0x19   : > { %v198_v14 = vld [vmem:[%s2736_s23 + $0xe0] sm:$0xff]  ;;  %195 = vst [vmem:[%s109_s24 + $0x60] sm:$0xff] %v194_v12  ;;  %197 = vst [vmem:[%s109_s24 + $0x68] sm:$0xff] %v196_v13  ;;  %v200_v15 = vld [vmem:[%s2736_s23 + $0xf0] sm:$0xff] }
  0x1a   : > { %199 = vst [vmem:[%s109_s24 + $0x70] sm:$0xff] %v198_v14  ;;  %201 = vst [vmem:[%s109_s24 + $0x78] sm:$0xff] %v200_v15 }
  0x1b PF: > { %p2169_p7 = scmp.ge.s32.totalorder %s2674_s11, 1  ;;  %p206_p8 = scmp.lt.s32.totalorder %s2674_s11, 3 }
  0x1d   : > { %p207_p9 = pnand %p2169_p7, %p206_p8 }
  0x1e   : > { %s213_s5 = sand.u32 (!%p207_p9), 1, %s2666_s9   ;;  %s2679_s8 = smov (!%p207_p9), 64  }
  0x1f   : > { %210 = sbr.rel (%p207_p9) target bundleno = 11471 (0x2ccf), region = 62  ;;  %s2810_s6 = sshll.u32 (!%p207_p9), %s213_s5, 7 }
  0x20   : > { %s2813_s7 = scalar_lea.vmem (!%p207_p9), [#allocation2], %s2810_s6  ;;  %s2680_s9 = smov (!%p207_p9), 32  }
  0x21   : > { %s2829_s14 = scalar_lea.vmem (!%p207_p9), [#allocation3], %s2810_s6 }
  0x24   : > { %v2759_v16 = vld [vmem:[%s3228_s1 + $0x18] sm:$0xff]  ;;  %v2676_v17 = vmov 0.0   ;;  %v2765_v18 = vld [vmem:[%s3228_s1 + $0x10] sm:$0xff]  ;;  %vm2677_vm0 = vmmov 0   ;;  %v2775_v19 = vld [vmem:[%s3228_s1 + $0x8] sm:$0xff]  ;;  %v237_v21 = vlaneseq  ;;  %v2678_v24 = vmov 1.0  }
  0x25   : > { %2347 = vmatprep.subr.mxu0 %v2676_v17  ;;  %2355 = vmatprep.mubr.msk.f32.mxu0 %vm2677_vm0, %v2676_v17  ;;  %v2784_v20 = vld [vmem:[%s3228_s1] sm:$0xff]  ;;  %vm245_vm4 = vcmask 261120   ;;  %v2173_v46 = vld [vmem:[%s2813_s7 + $0x8] sm:$0xff]  ;;  %v2177_v2 = vld [vmem:[%s2813_s7 + $0x10] sm:$0xff]  ;;  %vm1958_vm5 = vcmask 130048   ;;  %s2264_s25 = sshll.u32 (%p2726_p5), %s2163_s12, 3 }
  0x26   : > { %2348 = vmatpush3.msra.mxu0 %v2759_v16  ;;  %2358 = vmatprep.subr.mxu1 %v2676_v17  ;;  %v238_v22 = vand.u32 127, %v237_v21  ;;  %v244_v23 = vld [vmem:[%s2813_s7] sm:$0xff]  ;;  %s2013_s17 = scalar_lea.vmem (%p2726_p5), %s3229_s2, %s2264_s25 }
  0x27   : > { %2349 = vmatprep.subr.mxu0 %v2676_v17  ;;  %2359 = vmatpush3.msra.mxu1 %v2759_v16 }
  0x28   : > { %2350 = vmatpush3.msra.mxu0 %v2765_v18  ;;  %2360 = vmatprep.subr.mxu1 %v2676_v17  ;;  %vm239_vm1 = vcmp.ge.s32.totalorder %v238_v22, 64  ;;  %vm240_vm2 = vcmp.lt.s32.totalorder %v238_v22, 96 }
  0x29   : > { %2351 = vmatprep.subr.mxu0 %v2676_v17  ;;  %2361 = vmatpush3.msra.mxu1 %v2765_v18  ;;  %vm241_vm3 = vmand %vm239_vm1, %vm240_vm2 }
  0x2a   : > { %2352 = vmatpush3.msra.mxu0 %v2775_v19  ;;  %2362 = vmatprep.subr.mxu1 %v2676_v17  ;;  %v2816_v25 = vsel %vm241_vm3, 2.0, %v2678_v24  ;;  %v2820_v34 = vsel %vm241_vm3, -1.0, %v2676_v17 }
  0x2b   : > { %2353 = vmatprep.subr.mxu0 %v2676_v17  ;;  %2363 = vmatpush3.msra.mxu1 %v2775_v19 }
  0x2c   : > { %2354 = vmatpush3.msra.mxu0 %v2784_v20  ;;  %2364 = vmatprep.subr.mxu1 %v2676_v17 }
  0x2d   : > { %2356 = vmatmul.mubr.f32.vlgmr.msra.gmra.mxu0 %v2676_v17  ;;  %2365 = vmatpush3.msra.mxu1 %v2784_v20 }
  0x2e   : > { %2366 = vmatprep.mubr.msk.f32.mxu1 %vm2677_vm0, %v2676_v17  ;;  %2369 = vmatprep.subr.mxu0 %v2676_v17 }
  0x2f   : > { %2370 = vmatpush3.msra.mxu0 %v2759_v16  ;;  %2377 = vmatprep.mubr.msk.f32.mxu0 %vm2677_vm0, %v2676_v17 }
  0x30   : > { %2371 = vmatprep.subr.mxu0 %v2676_v17  ;;  %2380 = vmatprep.subr.mxu1 %v2676_v17 }
  0x31   : > { %2372 = vmatpush3.msra.mxu0 %v2765_v18 }
  0x32   : > { %2373 = vmatprep.subr.mxu0 %v2676_v17 }
  0x33   : > { %2374 = vmatpush3.msra.mxu0 %v2775_v19 }
  0x34   : > { %2375 = vmatprep.subr.mxu0 %v2676_v17 }
  0x35   : > { %2376 = vmatpush3.msra.mxu0 %v2784_v20 }
  0x36   : > { %2391 = vmatprep.subr.mxu0 %v2676_v17 }
  0xed   : > { %v315_v26 = vpop.f32.mrf.mxu0 }
  0xee   : > { %v319_v27 = vadd.f32 %v315_v26, %v244_v23 }
  0xef   : > { %v2357_v28 = vpop.f32.mrf.mxu0 }
  0xf0   : > { %v320_v29 = vmul.f32 %v319_v27, %v2816_v25  ;;  %v2181_v28 = vld [vmem:[%s2813_s7 + $0x18] sm:$0xff] }
  0xf2   : > { %v2172_v30 = vmul.f32 -1.442695, %v320_v29 }
  0xf4   : > { %2552 = vpow2.f32 %v2172_v30 }
 0x101   : > { %v2553_v31 = vpop.eup %2552 }
 0x102   : > { %v324_v32 = vadd.f32 1.0, %v2553_v31 }
 0x104   : > { %2554 = vrcp.f32 %v324_v32 }
 0x111   : > { %v2555_v33 = vpop.eup %2554 }
 0x112   : > { %v327_v35 = vmul.f32 %v2555_v33, %v2816_v25 }
 0x114   : > { %v328_v36 = vadd.f32 %v327_v35, %v2820_v34 }
 0x116   : > { %331 = vrot.lane.b32.xlu0 %v328_v36, %s2679_s8  ;;  %v329_v39 = vmul.f32 0.0, %v328_v36 }
 0x188   : > { %v332_v37 = vpop.permute.xlu0 %331 }
 0x189   : > { %v334_v38 = vmul.f32 %v332_v37, %v328_v36 }
 0x18b   : > { %336 = vrot.lane.b32.xlu0 %v334_v38, %s2680_s9 }
 0x1fd   : > { %v337_v40 = vpop.permute.xlu0 %336 }
 0x1fe   : > { %v339_v41 = vadd.f32 %v337_v40, %v329_v39 }
 0x200   : > { %2556 = vtanh.f32 %v339_v41 }
 0x20d   : > { %v2557_v42 = vpop.eup %2556 }
 0x20e   : > { %342 = vrot.lane.b32.xlu1 %v2557_v42, %s2679_s8 }
 0x280   : > { %v343_v43 = vpop.permute.xlu1 %342 }
 0x281   : > { %v345_v44 = vmul.f32 %v343_v43, %v328_v36 }
 0x283   : > { %347 = vrot.lane.b32.xlu1 %v345_v44, %s2680_s9 }
 0x2f5   : > { %v348_v45 = vpop.permute.xlu1 %347 }
 0x2f6   : > { %350 = vst.msk [vmem:[%s2829_s14] sm:$0xff] %vm245_vm4, %v348_v45  ;;  %2367 = vmatmul.mubr.msk.f32.vlgmr.msra.gmra.mxu1 %vm245_vm4, %v348_v45 }
 0x2f7   : > { %2381 = vmatpush3.msra.mxu1 %v2759_v16  ;;  %2388 = vmatprep.mubr.msk.f32.mxu1 %vm2677_vm0, %v2676_v17 }
 0x2f8   : > { %2382 = vmatprep.subr.mxu1 %v2676_v17 }
 0x2f9   : > { %2383 = vmatpush3.msra.mxu1 %v2765_v18 }
 0x2fa   : > { %2384 = vmatprep.subr.mxu1 %v2676_v17 }
 0x2fb   : > { %2385 = vmatpush3.msra.mxu1 %v2775_v19 }
 0x2fc   : > { %2386 = vmatprep.subr.mxu1 %v2676_v17 }
 0x2fd   : > { %2387 = vmatpush3.msra.mxu1 %v2784_v20 }
 0x2fe   : > { %2402 = vmatprep.subr.mxu1 %v2676_v17 }
 0x3b6   : > { %v421_v47 = vpop.f32.mrf.mxu1 }
 0x3b7   : > { %v425_v48 = vadd.f32 %v2173_v46, %v421_v47 }
 0x3b8   : > { %v2368_v49 = vpop.f32.mrf.mxu1 }
 0x3b9   : > { %v426_v50 = vmul.f32 %v425_v48, %v2816_v25  ;;  %v2185_v49 = vld [vmem:[%s2813_s7 + $0x20] sm:$0xff] }
 0x3bb   : > { %v2175_v51 = vmul.f32 -1.442695, %v426_v50 }
 0x3bd   : > { %2558 = vpow2.f32 %v2175_v51 }
 0x3ca   : > { %v2559_v52 = vpop.eup %2558 }
 0x3cb   : > { %v430_v53 = vadd.f32 1.0, %v2559_v52 }
 0x3cd   : > { %2560 = vrcp.f32 %v430_v53 }
 0x3da   : > { %v2561_v54 = vpop.eup %2560 }
 0x3db   : > { %v433_v55 = vmul.f32 %v2561_v54, %v2816_v25 }
 0x3dd   : > { %v434_v56 = vadd.f32 %v433_v55, %v2820_v34 }
 0x3df   : > { %437 = vrot.lane.b32.xlu0 %v434_v56, %s2679_s8  ;;  %v435_v59 = vmul.f32 %v434_v56, %v339_v41 }
 0x451   : > { %v438_v57 = vpop.permute.xlu0 %437 }
 0x452   : > { %v440_v58 = vmul.f32 %v438_v57, %v434_v56 }
 0x454   : > { %442 = vrot.lane.b32.xlu1 %v440_v58, %s2680_s9 }
 0x4c6   : > { %v443_v60 = vpop.permute.xlu1 %442 }
 0x4c7   : > { %v445_v61 = vadd.f32 %v443_v60, %v435_v59 }
 0x4c9   : > { %2562 = vtanh.f32 %v445_v61 }
 0x4d6   : > { %v2563_v62 = vpop.eup %2562 }
 0x4d7   : > { %448 = vrot.lane.b32.xlu0 %v2563_v62, %s2679_s8 }
 0x549   : > { %v449_v63 = vpop.permute.xlu0 %448 }
 0x54a   : > { %v451_v0 = vmul.f32 %v449_v63, %v434_v56 }
 0x54c   : > { %453 = vrot.lane.b32.xlu1 %v451_v0, %s2680_s9 }
 0x5be   : > { %v454_v1 = vpop.permute.xlu1 %453 }
 0x5bf   : > { %2176 = vst.msk [vmem:[%s2829_s14 + $0x8] sm:$0xff] %vm245_vm4, %v454_v1  ;;  %2378 = vmatmul.mubr.msk.f32.vlgmr.msra.gmra.mxu0 %vm245_vm4, %v454_v1 }
 0x5c0   : > { %2392 = vmatpush3.msra.mxu0 %v2759_v16  ;;  %2399 = vmatprep.mubr.msk.f32.mxu0 %vm2677_vm0, %v2676_v17 }
 0x5c1   : > { %2393 = vmatprep.subr.mxu0 %v2676_v17 }
 0x5c2   : > { %2394 = vmatpush3.msra.mxu0 %v2765_v18 }
 0x5c3   : > { %2395 = vmatprep.subr.mxu0 %v2676_v17 }
 0x5c4   : > { %2396 = vmatpush3.msra.mxu0 %v2775_v19 }
 0x5c5   : > { %2397 = vmatprep.subr.mxu0 %v2676_v17 }
 0x5c6   : > { %2398 = vmatpush3.msra.mxu0 %v2784_v20 }
 0x5c7   : > { %2413 = vmatprep.subr.mxu0 %v2676_v17 }
 0x67f   : > { %v528_v3 = vpop.f32.mrf.mxu0 }
 0x680   : > { %v532_v4 = vadd.f32 %v2177_v2, %v528_v3 }
 0x681   : > { %v2379_v5 = vpop.f32.mrf.mxu0 }
 0x682   : > { %v533_v6 = vmul.f32 %v532_v4, %v2816_v25  ;;  %v2189_v5 = vld [vmem:[%s2813_s7 + $0x28] sm:$0xff] }
 0x684   : > { %v2179_v7 = vmul.f32 -1.442695, %v533_v6 }
 0x686   : > { %2564 = vpow2.f32 %v2179_v7 }
 0x693   : > { %v2565_v8 = vpop.eup %2564 }
 0x694   : > { %v537_v9 = vadd.f32 1.0, %v2565_v8 }
 0x696   : > { %2566 = vrcp.f32 %v537_v9 }
 0x6a3   : > { %v2567_v10 = vpop.eup %2566 }
 0x6a4   : > { %v540_v11 = vmul.f32 %v2567_v10, %v2816_v25 }
 0x6a6   : > { %v541_v12 = vadd.f32 %v540_v11, %v2820_v34 }
 0x6a8   : > { %544 = vrot.lane.b32.xlu0 %v541_v12, %s2679_s8  ;;  %v542_v15 = vmul.f32 %v541_v12, %v445_v61 }
 0x71a   : > { %v545_v13 = vpop.permute.xlu0 %544 }
 0x71b   : > { %v547_v14 = vmul.f32 %v545_v13, %v541_v12 }
 0x71d   : > { %549 = vrot.lane.b32.xlu1 %v547_v14, %s2680_s9 }
 0x78f   : > { %v550_v21 = vpop.permute.xlu1 %549 }
 0x790   : > { %v552_v22 = vadd.f32 %v550_v21, %v542_v15 }
 0x792   : > { %2568 = vtanh.f32 %v552_v22 }
 0x79f   : > { %v2569_v23 = vpop.eup %2568 }
 0x7a0   : > { %555 = vrot.lane.b32.xlu0 %v2569_v23, %s2679_s8 }
 0x812   : > { %v556_v24 = vpop.permute.xlu0 %555 }
 0x813   : > { %v558_v26 = vmul.f32 %v556_v24, %v541_v12 }
 0x815   : > { %560 = vrot.lane.b32.xlu1 %v558_v26, %s2680_s9 }
 0x887   : > { %v561_v27 = vpop.permute.xlu1 %560 }
 0x888   : > { %2180 = vst.msk [vmem:[%s2829_s14 + $0x10] sm:$0xff] %vm245_vm4, %v561_v27  ;;  %2389 = vmatmul.mubr.msk.f32.vlgmr.msra.gmra.mxu1 %vm245_vm4, %v561_v27 }
 0x889   : > { %2403 = vmatpush3.msra.mxu1 %v2759_v16  ;;  %2410 = vmatprep.mubr.msk.f32.mxu1 %vm2677_vm0, %v2676_v17 }
 0x88a   : > { %2404 = vmatprep.subr.mxu1 %v2676_v17 }
 0x88b   : > { %2405 = vmatpush3.msra.mxu1 %v2765_v18 }
 0x88c   : > { %2406 = vmatprep.subr.mxu1 %v2676_v17 }
 0x88d   : > { %2407 = vmatpush3.msra.mxu1 %v2775_v19 }
 0x88e   : > { %2408 = vmatprep.subr.mxu1 %v2676_v17 }
 0x88f   : > { %2409 = vmatpush3.msra.mxu1 %v2784_v20 }
 0x890   : > { %2424 = vmatprep.subr.mxu1 %v2676_v17 }
 0x948   : > { %v635_v29 = vpop.f32.mrf.mxu1 }
 0x949   : > { %v639_v30 = vadd.f32 %v2181_v28, %v635_v29 }
 0x94a   : > { %v2390_v31 = vpop.f32.mrf.mxu1 }
 0x94b   : > { %v640_v32 = vmul.f32 %v639_v30, %v2816_v25  ;;  %v2193_v31 = vld [vmem:[%s2813_s7 + $0x30] sm:$0xff] }
 0x94d   : > { %v2183_v33 = vmul.f32 -1.442695, %v640_v32 }
 0x94f   : > { %2570 = vpow2.f32 %v2183_v33 }
 0x95c   : > { %v2571_v35 = vpop.eup %2570 }
 0x95d   : > { %v644_v36 = vadd.f32 1.0, %v2571_v35 }
 0x95f   : > { %2572 = vrcp.f32 %v644_v36 }
 0x96c   : > { %v2573_v37 = vpop.eup %2572 }
 0x96d   : > { %v647_v38 = vmul.f32 %v2573_v37, %v2816_v25 }
 0x96f   : > { %v648_v39 = vadd.f32 %v647_v38, %v2820_v34 }
 0x971   : > { %651 = vrot.lane.b32.xlu0 %v648_v39, %s2679_s8  ;;  %v649_v42 = vmul.f32 %v648_v39, %v552_v22 }
 0x9e3   : > { %v652_v40 = vpop.permute.xlu0 %651 }
 0x9e4   : > { %v654_v41 = vmul.f32 %v652_v40, %v648_v39 }
 0x9e6   : > { %656 = vrot.lane.b32.xlu1 %v654_v41, %s2680_s9 }
 0xa58   : > { %v657_v43 = vpop.permute.xlu1 %656 }
 0xa59   : > { %v659_v44 = vadd.f32 %v657_v43, %v649_v42 }
 0xa5b   : > { %2574 = vtanh.f32 %v659_v44 }
 0xa68   : > { %v2575_v45 = vpop.eup %2574 }
 0xa69   : > { %662 = vrot.lane.b32.xlu0 %v2575_v45, %s2679_s8 }
 0xadb   : > { %v663_v46 = vpop.permute.xlu0 %662 }
 0xadc   : > { %v665_v47 = vmul.f32 %v663_v46, %v648_v39 }
 0xade   : > { %667 = vrot.lane.b32.xlu1 %v665_v47, %s2680_s9 }
 0xb50   : > { %v668_v48 = vpop.permute.xlu1 %667 }
 0xb51   : > { %2184 = vst.msk [vmem:[%s2829_s14 + $0x18] sm:$0xff] %vm245_vm4, %v668_v48  ;;  %2400 = vmatmul.mubr.msk.f32.vlgmr.msra.gmra.mxu0 %vm245_vm4, %v668_v48 }
 0xb52   : > { %2414 = vmatpush3.msra.mxu0 %v2759_v16  ;;  %2421 = vmatprep.mubr.msk.f32.mxu0 %vm2677_vm0, %v2676_v17 }
 0xb53   : > { %2415 = vmatprep.subr.mxu0 %v2676_v17 }
 0xb54   : > { %2416 = vmatpush3.msra.mxu0 %v2765_v18 }
 0xb55   : > { %2417 = vmatprep.subr.mxu0 %v2676_v17 }
 0xb56   : > { %2418 = vmatpush3.msra.mxu0 %v2775_v19 }
 0xb57   : > { %2419 = vmatprep.subr.mxu0 %v2676_v17 }
 0xb58   : > { %2420 = vmatpush3.msra.mxu0 %v2784_v20 }
 0xb59   : > { %2435 = vmatprep.subr.mxu0 %v2676_v17 }
 0xc11   : > { %v742_v50 = vpop.f32.mrf.mxu0 }
 0xc12   : > { %v746_v51 = vadd.f32 %v2185_v49, %v742_v50 }
 0xc13   : > { %v2401_v52 = vpop.f32.mrf.mxu0 }
 0xc14   : > { %v747_v53 = vmul.f32 %v746_v51, %v2816_v25  ;;  %v2197_v52 = vld [vmem:[%s2813_s7 + $0x38] sm:$0xff] }
 0xc16   : > { %v2187_v54 = vmul.f32 -1.442695, %v747_v53 }
 0xc18   : > { %2576 = vpow2.f32 %v2187_v54 }
 0xc25   : > { %v2577_v55 = vpop.eup %2576 }
 0xc26   : > { %v751_v56 = vadd.f32 1.0, %v2577_v55 }
 0xc28   : > { %2578 = vrcp.f32 %v751_v56 }
 0xc35   : > { %v2579_v57 = vpop.eup %2578 }
 0xc36   : > { %v754_v58 = vmul.f32 %v2579_v57, %v2816_v25 }
 0xc38   : > { %v755_v59 = vadd.f32 %v754_v58, %v2820_v34 }
 0xc3a   : > { %758 = vrot.lane.b32.xlu0 %v755_v59, %s2679_s8  ;;  %v756_v62 = vmul.f32 %v755_v59, %v659_v44 }
 0xcac   : > { %v759_v60 = vpop.permute.xlu0 %758 }
 0xcad   : > { %v761_v61 = vmul.f32 %v759_v60, %v755_v59 }
 0xcaf   : > { %763 = vrot.lane.b32.xlu1 %v761_v61, %s2680_s9 }
 0xd21   : > { %v764_v63 = vpop.permute.xlu1 %763 }
 0xd22   : > { %v766_v0 = vadd.f32 %v764_v63, %v756_v62 }
 0xd24   : > { %2580 = vtanh.f32 %v766_v0 }
 0xd31   : > { %v2581_v1 = vpop.eup %2580 }
 0xd32   : > { %769 = vrot.lane.b32.xlu0 %v2581_v1, %s2679_s8 }
 0xda4   : > { %v770_v2 = vpop.permute.xlu0 %769 }
 0xda5   : > { %v772_v3 = vmul.f32 %v770_v2, %v755_v59 }
 0xda7   : > { %774 = vrot.lane.b32.xlu1 %v772_v3, %s2680_s9 }
 0xe19   : > { %v775_v4 = vpop.permute.xlu1 %774 }
 0xe1a   : > { %2188 = vst.msk [vmem:[%s2829_s14 + $0x20] sm:$0xff] %vm245_vm4, %v775_v4  ;;  %2411 = vmatmul.mubr.msk.f32.vlgmr.msra.gmra.mxu1 %vm245_vm4, %v775_v4 }
 0xe1b   : > { %2425 = vmatpush3.msra.mxu1 %v2759_v16  ;;  %2432 = vmatprep.mubr.msk.f32.mxu1 %vm2677_vm0, %v2676_v17 }
 0xe1c   : > { %2426 = vmatprep.subr.mxu1 %v2676_v17 }
 0xe1d   : > { %2427 = vmatpush3.msra.mxu1 %v2765_v18 }
 0xe1e   : > { %2428 = vmatprep.subr.mxu1 %v2676_v17 }
 0xe1f   : > { %2429 = vmatpush3.msra.mxu1 %v2775_v19 }
 0xe20   : > { %2430 = vmatprep.subr.mxu1 %v2676_v17 }
 0xe21   : > { %2431 = vmatpush3.msra.mxu1 %v2784_v20 }
 0xe22   : > { %2446 = vmatprep.subr.mxu1 %v2676_v17 }
 0xeda   : > { %v849_v6 = vpop.f32.mrf.mxu1 }
 0xedb   : > { %v853_v7 = vadd.f32 %v2189_v5, %v849_v6 }
 0xedc   : > { %v2412_v8 = vpop.f32.mrf.mxu1 }
 0xedd   : > { %v854_v9 = vmul.f32 %v853_v7, %v2816_v25  ;;  %v2201_v8 = vld [vmem:[%s2813_s7 + $0x40] sm:$0xff] }
 0xedf   : > { %v2191_v10 = vmul.f32 -1.442695, %v854_v9 }
 0xee1   : > { %2582 = vpow2.f32 %v2191_v10 }
 0xeee   : > { %v2583_v11 = vpop.eup %2582 }
 0xeef   : > { %v858_v12 = vadd.f32 1.0, %v2583_v11 }
 0xef1   : > { %2584 = vrcp.f32 %v858_v12 }
 0xefe   : > { %v2585_v13 = vpop.eup %2584 }
 0xeff   : > { %v861_v14 = vmul.f32 %v2585_v13, %v2816_v25 }
 0xf01   : > { %v862_v15 = vadd.f32 %v861_v14, %v2820_v34 }
 0xf03   : > { %865 = vrot.lane.b32.xlu0 %v862_v15, %s2679_s8  ;;  %v863_v23 = vmul.f32 %v862_v15, %v766_v0 }
 0xf75   : > { %v866_v21 = vpop.permute.xlu0 %865 }
 0xf76   : > { %v868_v22 = vmul.f32 %v866_v21, %v862_v15 }
 0xf78   : > { %870 = vrot.lane.b32.xlu1 %v868_v22, %s2680_s9 }
 0xfea   : > { %v871_v24 = vpop.permute.xlu1 %870 }
 0xfeb   : > { %v873_v26 = vadd.f32 %v871_v24, %v863_v23 }
 0xfed   : > { %2586 = vtanh.f32 %v873_v26 }
 0xffa   : > { %v2587_v27 = vpop.eup %2586 }
 0xffb   : > { %876 = vrot.lane.b32.xlu0 %v2587_v27, %s2679_s8 }
0x106d   : > { %v877_v28 = vpop.permute.xlu0 %876 }
0x106e   : > { %v879_v29 = vmul.f32 %v877_v28, %v862_v15 }
0x1070   : > { %881 = vrot.lane.b32.xlu1 %v879_v29, %s2680_s9 }
0x10e2   : > { %v882_v30 = vpop.permute.xlu1 %881 }
0x10e3   : > { %2192 = vst.msk [vmem:[%s2829_s14 + $0x28] sm:$0xff] %vm245_vm4, %v882_v30  ;;  %2422 = vmatmul.mubr.msk.f32.vlgmr.msra.gmra.mxu0 %vm245_vm4, %v882_v30 }
0x10e4   : > { %2436 = vmatpush3.msra.mxu0 %v2759_v16  ;;  %2443 = vmatprep.mubr.msk.f32.mxu0 %vm2677_vm0, %v2676_v17 }
0x10e5   : > { %2437 = vmatprep.subr.mxu0 %v2676_v17 }
0x10e6   : > { %2438 = vmatpush3.msra.mxu0 %v2765_v18 }
0x10e7   : > { %2439 = vmatprep.subr.mxu0 %v2676_v17 }
0x10e8   : > { %2440 = vmatpush3.msra.mxu0 %v2775_v19 }
0x10e9   : > { %2441 = vmatprep.subr.mxu0 %v2676_v17 }
0x10ea   : > { %2442 = vmatpush3.msra.mxu0 %v2784_v20 }
0x10eb   : > { %2457 = vmatprep.subr.mxu0 %v2676_v17 }
0x11a3   : > { %v956_v32 = vpop.f32.mrf.mxu0 }
0x11a4   : > { %v960_v33 = vadd.f32 %v2193_v31, %v956_v32 }
0x11a5   : > { %v2423_v35 = vpop.f32.mrf.mxu0 }
0x11a6   : > { %v961_v36 = vmul.f32 %v960_v33, %v2816_v25 }
0x11a8   : > { %v2195_v37 = vmul.f32 -1.442695, %v961_v36 }
0x11aa   : > { %2588 = vpow2.f32 %v2195_v37 }
0x11b7   : > { %v2589_v38 = vpop.eup %2588 }
0x11b8   : > { %v965_v39 = vadd.f32 1.0, %v2589_v38 }
0x11ba   : > { %2590 = vrcp.f32 %v965_v39  ;;  %v2205_v39 = vld [vmem:[%s2813_s7 + $0x48] sm:$0xff] }
0x11c7   : > { %v2591_v40 = vpop.eup %2590 }
0x11c8   : > { %v968_v41 = vmul.f32 %v2591_v40, %v2816_v25 }
0x11ca   : > { %v969_v42 = vadd.f32 %v968_v41, %v2820_v34 }
0x11cc   : > { %972 = vrot.lane.b32.xlu0 %v969_v42, %s2679_s8  ;;  %v970_v45 = vmul.f32 %v969_v42, %v873_v26 }
0x123e   : > { %v973_v43 = vpop.permute.xlu0 %972 }
0x123f   : > { %v975_v44 = vmul.f32 %v973_v43, %v969_v42 }
0x1241   : > { %977 = vrot.lane.b32.xlu1 %v975_v44, %s2680_s9 }
0x12b3   : > { %v978_v46 = vpop.permute.xlu1 %977 }
0x12b4   : > { %v980_v47 = vadd.f32 %v978_v46, %v970_v45 }
0x12b6   : > { %2592 = vtanh.f32 %v980_v47 }
0x12c3   : > { %v2593_v48 = vpop.eup %2592 }
0x12c4   : > { %983 = vrot.lane.b32.xlu0 %v2593_v48, %s2679_s8 }
0x1336   : > { %v984_v49 = vpop.permute.xlu0 %983 }
0x1337   : > { %v986_v50 = vmul.f32 %v984_v49, %v969_v42 }
0x1339   : > { %988 = vrot.lane.b32.xlu1 %v986_v50, %s2680_s9 }
0x13ab   : > { %v989_v51 = vpop.permute.xlu1 %988 }
0x13ac   : > { %2196 = vst.msk [vmem:[%s2829_s14 + $0x30] sm:$0xff] %vm245_vm4, %v989_v51  ;;  %2433 = vmatmul.mubr.msk.f32.vlgmr.msra.gmra.mxu1 %vm245_vm4, %v989_v51 }
0x13ad   : > { %2447 = vmatpush3.msra.mxu1 %v2759_v16  ;;  %2454 = vmatprep.mubr.msk.f32.mxu1 %vm2677_vm0, %v2676_v17 }
0x13ae   : > { %2448 = vmatprep.subr.mxu1 %v2676_v17 }
0x13af   : > { %2449 = vmatpush3.msra.mxu1 %v2765_v18 }
0x13b0   : > { %2450 = vmatprep.subr.mxu1 %v2676_v17 }
0x13b1   : > { %2451 = vmatpush3.msra.mxu1 %v2775_v19 }
0x13b2   : > { %2452 = vmatprep.subr.mxu1 %v2676_v17 }
0x13b3   : > { %2453 = vmatpush3.msra.mxu1 %v2784_v20 }
0x13b4   : > { %2468 = vmatprep.subr.mxu1 %v2676_v17 }
0x146c   : > { %v1063_v53 = vpop.f32.mrf.mxu1 }
0x146d   : > { %v1067_v54 = vadd.f32 %v2197_v52, %v1063_v53 }
0x146e   : > { %v2434_v55 = vpop.f32.mrf.mxu1 }
0x146f   : > { %v1068_v56 = vmul.f32 %v1067_v54, %v2816_v25 }
0x1471   : > { %v2199_v57 = vmul.f32 -1.442695, %v1068_v56 }
0x1473   : > { %2594 = vpow2.f32 %v2199_v57 }
0x1480   : > { %v2595_v58 = vpop.eup %2594 }
0x1481   : > { %v1072_v59 = vadd.f32 1.0, %v2595_v58 }
0x1483   : > { %2596 = vrcp.f32 %v1072_v59  ;;  %v2255_v59 = vld [vmem:[%s2829_s14 + $0x30] sm:$0xff] }
0x1490   : > { %v2597_v60 = vpop.eup %2596 }
0x1491   : > { %v1075_v61 = vmul.f32 %v2597_v60, %v2816_v25 }
0x1493   : > { %v1076_v62 = vadd.f32 %v1075_v61, %v2820_v34 }
0x1495   : > { %1079 = vrot.lane.b32.xlu0 %v1076_v62, %s2679_s8  ;;  %v1077_v1 = vmul.f32 %v1076_v62, %v980_v47 }
0x1507   : > { %v1080_v63 = vpop.permute.xlu0 %1079 }
0x1508   : > { %v1082_v0 = vmul.f32 %v1080_v63, %v1076_v62  ;;  %v2209_v63 = vld [vmem:[%s2813_s7 + $0x50] sm:$0xff] }
0x150a   : > { %1084 = vrot.lane.b32.xlu1 %v1082_v0, %s2680_s9 }
0x157c   : > { %v1085_v2 = vpop.permute.xlu1 %1084 }
0x157d   : > { %v1087_v3 = vadd.f32 %v1085_v2, %v1077_v1 }
0x157f   : > { %2598 = vtanh.f32 %v1087_v3 }
0x158c   : > { %v2599_v4 = vpop.eup %2598 }
0x158d   : > { %1090 = vrot.lane.b32.xlu0 %v2599_v4, %s2679_s8 }
0x15ff   : > { %v1091_v5 = vpop.permute.xlu0 %1090 }
0x1600   : > { %v1093_v6 = vmul.f32 %v1091_v5, %v1076_v62 }
0x1602   : > { %1095 = vrot.lane.b32.xlu1 %v1093_v6, %s2680_s9 }
0x1674   : > { %v1096_v7 = vpop.permute.xlu1 %1095 }
0x1675   : > { %2200 = vst.msk [vmem:[%s2829_s14 + $0x38] sm:$0xff] %vm245_vm4, %v1096_v7  ;;  %2444 = vmatmul.mubr.msk.f32.vlgmr.msra.gmra.mxu0 %vm245_vm4, %v1096_v7 }
0x1676   : > { %2458 = vmatpush3.msra.mxu0 %v2759_v16  ;;  %2465 = vmatprep.mubr.msk.f32.mxu0 %vm2677_vm0, %v2676_v17 }
0x1677   : > { %2459 = vmatprep.subr.mxu0 %v2676_v17 }
0x1678   : > { %2460 = vmatpush3.msra.mxu0 %v2765_v18 }
0x1679   : > { %2461 = vmatprep.subr.mxu0 %v2676_v17 }
0x167a   : > { %2462 = vmatpush3.msra.mxu0 %v2775_v19 }
0x167b   : > { %2463 = vmatprep.subr.mxu0 %v2676_v17 }
0x167c   : > { %2464 = vmatpush3.msra.mxu0 %v2784_v20  ;;  %v2259_v35 = vld [vmem:[%s2829_s14 + $0x38] sm:$0xff] }
0x167d   : > { %2479 = vmatprep.subr.mxu0 %v2676_v17 }
0x1735   : > { %v1170_v9 = vpop.f32.mrf.mxu0 }
0x1736   : > { %v1174_v10 = vadd.f32 %v2201_v8, %v1170_v9 }
0x1737   : > { %v2445_v11 = vpop.f32.mrf.mxu0 }
0x1738   : > { %v1175_v12 = vmul.f32 %v1174_v10, %v2816_v25 }
0x173a   : > { %v2203_v13 = vmul.f32 -1.442695, %v1175_v12 }
0x173c   : > { %2600 = vpow2.f32 %v2203_v13 }
0x1749   : > { %v2601_v14 = vpop.eup %2600 }
0x174a   : > { %v1179_v15 = vadd.f32 1.0, %v2601_v14 }
0x174c   : > { %2602 = vrcp.f32 %v1179_v15 }
0x1759   : > { %v2603_v21 = vpop.eup %2602 }
0x175a   : > { %v1182_v22 = vmul.f32 %v2603_v21, %v2816_v25 }
0x175c   : > { %v1183_v23 = vadd.f32 %v1182_v22, %v2820_v34 }
0x175e   : > { %1186 = vrot.lane.b32.xlu0 %v1183_v23, %s2679_s8  ;;  %v1184_v27 = vmul.f32 %v1183_v23, %v1087_v3 }
0x17d0   : > { %v1187_v24 = vpop.permute.xlu0 %1186 }
0x17d1   : > { %v1189_v26 = vmul.f32 %v1187_v24, %v1183_v23  ;;  %v2251_v24 = vld [vmem:[%s2829_s14 + $0x28] sm:$0xff] }
0x17d3   : > { %1191 = vrot.lane.b32.xlu1 %v1189_v26, %s2680_s9 }
0x1845   : > { %v1192_v28 = vpop.permute.xlu1 %1191 }
0x1846   : > { %v1194_v29 = vadd.f32 %v1192_v28, %v1184_v27 }
0x1848   : > { %2604 = vtanh.f32 %v1194_v29 }
0x1855   : > { %v2605_v30 = vpop.eup %2604 }
0x1856   : > { %1197 = vrot.lane.b32.xlu0 %v2605_v30, %s2679_s8 }
0x18c8   : > { %v1198_v31 = vpop.permute.xlu0 %1197 }
0x18c9   : > { %v1200_v32 = vmul.f32 %v1198_v31, %v1183_v23 }
0x18cb   : > { %1202 = vrot.lane.b32.xlu1 %v1200_v32, %s2680_s9 }
0x193d   : > { %v1203_v33 = vpop.permute.xlu1 %1202 }
0x193e   : > { %2204 = vst.msk [vmem:[%s2829_s14 + $0x40] sm:$0xff] %vm245_vm4, %v1203_v33  ;;  %2455 = vmatmul.mubr.msk.f32.vlgmr.msra.gmra.mxu1 %vm245_vm4, %v1203_v33 }
0x193f   : > { %2469 = vmatpush3.msra.mxu1 %v2759_v16  ;;  %2476 = vmatprep.mubr.msk.f32.mxu1 %vm2677_vm0, %v2676_v17 }
0x1940   : > { %2470 = vmatprep.subr.mxu1 %v2676_v17 }
0x1941   : > { %2471 = vmatpush3.msra.mxu1 %v2765_v18 }
0x1942   : > { %2472 = vmatprep.subr.mxu1 %v2676_v17 }
0x1943   : > { %2473 = vmatpush3.msra.mxu1 %v2775_v19 }
0x1944   : > { %2474 = vmatprep.subr.mxu1 %v2676_v17 }
0x1945   : > { %v2260_v36 = vld [vmem:[%s2829_s14 + $0x40] sm:$0xff]  ;;  %2475 = vmatpush3.msra.mxu1 %v2784_v20 }
0x1946   : > { %v2001_v37 = vsel %vm1958_vm5, %v2259_v35, %v2260_v36  ;;  %v2003_v38 = vsel %vm1958_vm5, %v2260_v36, %v2259_v35  ;;  %2490 = vmatprep.subr.mxu1 %v2676_v17 }
0x1947   : > { %2261 = vst.msk [vmem:[%s2829_s14 + $0x38] sm:$0xff] %vm245_vm4, %v2001_v37  ;;  %2262 = vst.msk [vmem:[%s2829_s14 + $0x40] sm:$0xff] %vm245_vm4, %v2003_v38 }
0x19fe   : > { %v1277_v40 = vpop.f32.mrf.mxu1 }
0x19ff   : > { %v1281_v41 = vadd.f32 %v2205_v39, %v1277_v40 }
0x1a00   : > { %v2456_v42 = vpop.f32.mrf.mxu1 }
0x1a01   : > { %v1282_v43 = vmul.f32 %v1281_v41, %v2816_v25 }
0x1a03   : > { %v2207_v44 = vmul.f32 -1.442695, %v1282_v43 }
0x1a05   : > { %2606 = vpow2.f32 %v2207_v44 }
0x1a12   : > { %v2607_v45 = vpop.eup %2606 }
0x1a13   : > { %v1286_v46 = vadd.f32 1.0, %v2607_v45 }
0x1a15   : > { %2608 = vrcp.f32 %v1286_v46  ;;  %v2648_v46 = vld [vmem:[%s3228_s1 + $0x18] sm:$0xff] }
0x1a22   : > { %v2609_v47 = vpop.eup %2608 }
0x1a23   : > { %v1289_v48 = vmul.f32 %v2609_v47, %v2816_v25  ;;  %v2649_v47 = vld [vmem:[%s3228_s1 + $0x10] sm:$0xff] }
0x1a25   : > { %v1290_v49 = vadd.f32 %v1289_v48, %v2820_v34  ;;  %v2650_v48 = vld [vmem:[%s3228_s1 + $0x8] sm:$0xff] }
0x1a27   : > { %1293 = vrot.lane.b32.xlu0 %v1290_v49, %s2679_s8  ;;  %v1291_v52 = vmul.f32 %v1290_v49, %v1194_v29 }
0x1a99   : > { %v1294_v50 = vpop.permute.xlu0 %1293 }
0x1a9a   : > { %v1296_v51 = vmul.f32 %v1294_v50, %v1290_v49 }
0x1a9c   : > { %1298 = vrot.lane.b32.xlu1 %v1296_v51, %s2680_s9  ;;  %v2651_v51 = vld [vmem:[%s3228_s1] sm:$0xff] }
0x1b0e   : > { %v1299_v53 = vpop.permute.xlu1 %1298 }
0x1b0f   : > { %v1301_v54 = vadd.f32 %v1299_v53, %v1291_v52 }
0x1b11   : > { %2610 = vtanh.f32 %v1301_v54 }
0x1b1e   : > { %v2611_v55 = vpop.eup %2610 }
0x1b1f   : > { %1304 = vrot.lane.b32.xlu0 %v2611_v55, %s2679_s8 }
0x1b91   : > { %v1305_v56 = vpop.permute.xlu0 %1304 }
0x1b92   : > { %v1307_v57 = vmul.f32 %v1305_v56, %v1290_v49  ;;  %v2247_v49 = vld [vmem:[%s2829_s14 + $0x20] sm:$0xff] }
0x1b94   : > { %1309 = vrot.lane.b32.xlu1 %v1307_v57, %s2680_s9 }
0x1c06   : > { %v1310_v58 = vpop.permute.xlu1 %1309 }
0x1c07   : > { %2208 = vst.msk [vmem:[%s2829_s14 + $0x48] sm:$0xff] %vm245_vm4, %v1310_v58  ;;  %2466 = vmatmul.mubr.msk.f32.vlgmr.msra.gmra.mxu0 %vm245_vm4, %v1310_v58 }
0x1c08   : > { %2480 = vmatpush3.msra.mxu0 %v2759_v16  ;;  %2487 = vmatprep.mubr.msk.f32.mxu0 %vm2677_vm0, %v2676_v17 }
0x1c09   : > { %2481 = vmatprep.subr.mxu0 %v2676_v17 }
0x1c0a   : > { %2482 = vmatpush3.msra.mxu0 %v2765_v18 }
0x1c0b   : > { %2483 = vmatprep.subr.mxu0 %v2676_v17 }
0x1c0c   : > { %2484 = vmatpush3.msra.mxu0 %v2775_v19 }
0x1c0d   : > { %2485 = vmatprep.subr.mxu0 %v2676_v17 }
0x1c0e   : > { %v2256_v60 = vld [vmem:[%s2829_s14 + $0x48] sm:$0xff]  ;;  %2486 = vmatpush3.msra.mxu0 %v2784_v20 }
0x1c0f   : > { %v1995_v61 = vsel %vm1958_vm5, %v2255_v59, %v2256_v60  ;;  %v1997_v62 = vsel %vm1958_vm5, %v2256_v60, %v2255_v59  ;;  %2501 = vmatprep.subr.mxu0 %v2676_v17 }
0x1c10   : > { %2257 = vst.msk [vmem:[%s2829_s14 + $0x30] sm:$0xff] %vm245_vm4, %v1995_v61  ;;  %2258 = vst.msk [vmem:[%s2829_s14 + $0x48] sm:$0xff] %vm245_vm4, %v1997_v62 }
0x1cc7   : > { %v1384_v0 = vpop.f32.mrf.mxu0 }
0x1cc8   : > { %v1388_v1 = vadd.f32 %v2209_v63, %v1384_v0 }
0x1cc9   : > { %v2467_v2 = vpop.f32.mrf.mxu0 }
0x1cca   : > { %v1389_v3 = vmul.f32 %v1388_v1, %v2816_v25 }
0x1ccc   : > { %v2211_v4 = vmul.f32 -1.442695, %v1389_v3 }
0x1cce   : > { %2612 = vpow2.f32 %v2211_v4 }
0x1cdb   : > { %v2613_v5 = vpop.eup %2612 }
0x1cdc   : > { %v1393_v6 = vadd.f32 1.0, %v2613_v5 }
0x1cde   : > { %2614 = vrcp.f32 %v1393_v6 }
0x1ceb   : > { %v2615_v7 = vpop.eup %2614 }
0x1cec   : > { %v1396_v8 = vmul.f32 %v2615_v7, %v2816_v25 }
0x1cee   : > { %v1397_v9 = vadd.f32 %v1396_v8, %v2820_v34 }
0x1cf0   : > { %1400 = vrot.lane.b32.xlu0 %v1397_v9, %s2679_s8  ;;  %v1398_v12 = vmul.f32 %v1397_v9, %v1301_v54  ;;  %v2217_v54 = vld [vmem:[%s2813_s7 + $0x60] sm:$0xff] }
0x1d62   : > { %v1401_v10 = vpop.permute.xlu0 %1400 }
0x1d63   : > { %v1403_v11 = vmul.f32 %v1401_v10, %v1397_v9  ;;  %v2243_v10 = vld [vmem:[%s2829_s14 + $0x18] sm:$0xff] }
0x1d65   : > { %1405 = vrot.lane.b32.xlu1 %v1403_v11, %s2680_s9 }
0x1dd7   : > { %v1406_v13 = vpop.permute.xlu1 %1405 }
0x1dd8   : > { %v1408_v14 = vadd.f32 %v1406_v13, %v1398_v12 }
0x1dda   : > { %2616 = vtanh.f32 %v1408_v14 }
0x1de7   : > { %v2617_v15 = vpop.eup %2616 }
0x1de8   : > { %1411 = vrot.lane.b32.xlu0 %v2617_v15, %s2679_s8 }
0x1e5a   : > { %v1412_v21 = vpop.permute.xlu0 %1411 }
0x1e5b   : > { %v1414_v22 = vmul.f32 %v1412_v21, %v1397_v9 }
0x1e5d   : > { %1416 = vrot.lane.b32.xlu1 %v1414_v22, %s2680_s9 }
0x1ecf   : > { %v1417_v23 = vpop.permute.xlu1 %1416 }
0x1ed0   : > { %2212 = vst.msk [vmem:[%s2829_s14 + $0x50] sm:$0xff] %vm245_vm4, %v1417_v23  ;;  %2477 = vmatmul.mubr.msk.f32.vlgmr.msra.gmra.mxu1 %vm245_vm4, %v1417_v23 }
0x1ed1   : > { %2491 = vmatpush3.msra.mxu1 %v2759_v16  ;;  %2498 = vmatprep.mubr.msk.f32.mxu1 %vm2677_vm0, %v2676_v17 }
0x1ed2   : > { %2492 = vmatprep.subr.mxu1 %v2676_v17 }
0x1ed3   : > { %2493 = vmatpush3.msra.mxu1 %v2765_v18  ;;  %v2213_v18 = vld [vmem:[%s2813_s7 + $0x58] sm:$0xff] }
0x1ed4   : > { %2494 = vmatprep.subr.mxu1 %v2676_v17 }
0x1ed5   : > { %2495 = vmatpush3.msra.mxu1 %v2775_v19 }
0x1ed6   : > { %2496 = vmatprep.subr.mxu1 %v2676_v17 }
0x1ed7   : > { %v2252_v26 = vld [vmem:[%s2829_s14 + $0x50] sm:$0xff]  ;;  %2497 = vmatpush3.msra.mxu1 %v2784_v20 }
0x1ed8   : > { %v1989_v27 = vsel %vm1958_vm5, %v2251_v24, %v2252_v26  ;;  %v1991_v16 = vsel %vm1958_vm5, %v2252_v26, %v2251_v24  ;;  %2512 = vmatprep.subr.mxu1 %v2676_v17 }
0x1ed9   : > { %2253 = vst.msk [vmem:[%s2829_s14 + $0x28] sm:$0xff] %vm245_vm4, %v1989_v27  ;;  %2254 = vst.msk [vmem:[%s2829_s14 + $0x50] sm:$0xff] %vm245_vm4, %v1991_v16 }
0x1f90   : > { %v1491_v28 = vpop.f32.mrf.mxu1 }
0x1f91   : > { %v1495_v29 = vadd.f32 %v2213_v18, %v1491_v28 }
0x1f92   : > { %v2478_v19 = vpop.f32.mrf.mxu1 }
0x1f93   : > { %v1496_v30 = vmul.f32 %v1495_v29, %v2816_v25 }
0x1f95   : > { %v2215_v31 = vmul.f32 -1.442695, %v1496_v30 }
0x1f97   : > { %2618 = vpow2.f32 %v2215_v31 }
0x1fa4   : > { %v2619_v32 = vpop.eup %2618 }
0x1fa5   : > { %v1500_v20 = vadd.f32 1.0, %v2619_v32 }
0x1fa7   : > { %2620 = vrcp.f32 %v1500_v20 }
0x1fb4   : > { %v2621_v33 = vpop.eup %2620 }
0x1fb5   : > { %v1503_v35 = vmul.f32 %v2621_v33, %v2816_v25 }
0x1fb7   : > { %v1504_v36 = vadd.f32 %v1503_v35, %v2820_v34 }
0x1fb9   : > { %1507 = vrot.lane.b32.xlu0 %v1504_v36, %s2679_s8  ;;  %v1505_v39 = vmul.f32 %v1504_v36, %v1408_v14  ;;  %v2221_v14 = vld [vmem:[%s2813_s7 + $0x68] sm:$0xff] }
0x202b   : > { %v1508_v37 = vpop.permute.xlu0 %1507 }
0x202c   : > { %v1510_v38 = vmul.f32 %v1508_v37, %v1504_v36 }
0x202e   : > { %1512 = vrot.lane.b32.xlu1 %v1510_v38, %s2680_s9 }
0x20a0   : > { %v1513_v40 = vpop.permute.xlu1 %1512 }
0x20a1   : > { %v1515_v41 = vadd.f32 %v1513_v40, %v1505_v39  ;;  %v2225_v40 = vld [vmem:[%s2813_s7 + $0x70] sm:$0xff] }
0x20a3   : > { %2622 = vtanh.f32 %v1515_v41 }
0x20b0   : > { %v2623_v42 = vpop.eup %2622 }
0x20b1   : > { %1518 = vrot.lane.b32.xlu0 %v2623_v42, %s2679_s8 }
0x2123   : > { %v1519_v43 = vpop.permute.xlu0 %1518 }
0x2124   : > { %v1521_v44 = vmul.f32 %v1519_v43, %v1504_v36  ;;  %v2239_v36 = vld [vmem:[%s2829_s14 + $0x10] sm:$0xff] }
0x2126   : > { %1523 = vrot.lane.b32.xlu1 %v1521_v44, %s2680_s9 }
0x2198   : > { %v1524_v45 = vpop.permute.xlu1 %1523 }
0x2199   : > { %2216 = vst.msk [vmem:[%s2829_s14 + $0x58] sm:$0xff] %vm245_vm4, %v1524_v45  ;;  %2488 = vmatmul.mubr.msk.f32.vlgmr.msra.gmra.mxu0 %vm245_vm4, %v1524_v45 }
0x219a   : > { %2502 = vmatpush3.msra.mxu0 %v2648_v46  ;;  %2509 = vmatprep.mubr.msk.f32.mxu0 %vm2677_vm0, %v2676_v17 }
0x219b   : > { %2503 = vmatprep.subr.mxu0 %v2676_v17 }
0x219c   : > { %2504 = vmatpush3.msra.mxu0 %v2649_v47 }
0x219d   : > { %2505 = vmatprep.subr.mxu0 %v2676_v17 }
0x219e   : > { %2506 = vmatpush3.msra.mxu0 %v2650_v48 }
0x219f   : > { %2507 = vmatprep.subr.mxu0 %v2676_v17 }
0x21a0   : > { %v2248_v50 = vld [vmem:[%s2829_s14 + $0x58] sm:$0xff]  ;;  %2508 = vmatpush3.msra.mxu0 %v2651_v51 }
0x21a1   : > { %v1983_v52 = vsel %vm1958_vm5, %v2247_v49, %v2248_v50  ;;  %v1985_v53 = vsel %vm1958_vm5, %v2248_v50, %v2247_v49 }
0x21a2   : > { %2249 = vst.msk [vmem:[%s2829_s14 + $0x20] sm:$0xff] %vm245_vm4, %v1983_v52  ;;  %2250 = vst.msk [vmem:[%s2829_s14 + $0x58] sm:$0xff] %vm245_vm4, %v1985_v53 }
0x2259   : > { %v1598_v55 = vpop.f32.mrf.mxu0 }
0x225a   : > { %v1602_v56 = vadd.f32 %v2217_v54, %v1598_v55 }
0x225b   : > { %v2489_v57 = vpop.f32.mrf.mxu0 }
0x225c   : > { %v1603_v58 = vmul.f32 %v1602_v56, %v2816_v25 }
0x225e   : > { %v2219_v59 = vmul.f32 -1.442695, %v1603_v58 }
0x2260   : > { %2624 = vpow2.f32 %v2219_v59 }
0x226d   : > { %v2625_v60 = vpop.eup %2624 }
0x226e   : > { %v1607_v61 = vadd.f32 1.0, %v2625_v60  ;;  %v2235_v60 = vld [vmem:[%s2829_s14 + $0x8] sm:$0xff] }
0x2270   : > { %2626 = vrcp.f32 %v1607_v61 }
0x227d   : > { %v2627_v62 = vpop.eup %2626 }
0x227e   : > { %v1610_v63 = vmul.f32 %v2627_v62, %v2816_v25 }
0x2280   : > { %v1611_v0 = vadd.f32 %v1610_v63, %v2820_v34 }
0x2282   : > { %1614 = vrot.lane.b32.xlu0 %v1611_v0, %s2679_s8  ;;  %v1612_v3 = vmul.f32 %v1611_v0, %v1515_v41 }
0x22f4   : > { %v1615_v1 = vpop.permute.xlu0 %1614 }
0x22f5   : > { %v1617_v2 = vmul.f32 %v1615_v1, %v1611_v0 }
0x22f7   : > { %1619 = vrot.lane.b32.xlu1 %v1617_v2, %s2680_s9 }
0x2369   : > { %v1620_v4 = vpop.permute.xlu1 %1619 }
0x236a   : > { %v1622_v5 = vadd.f32 %v1620_v4, %v1612_v3 }
0x236c   : > { %2628 = vtanh.f32 %v1622_v5 }
0x2379   : > { %v2629_v6 = vpop.eup %2628 }
0x237a   : > { %1625 = vrot.lane.b32.xlu0 %v2629_v6, %s2679_s8 }
0x23ec   : > { %v1626_v7 = vpop.permute.xlu0 %1625 }
0x23ed   : > { %v1628_v8 = vmul.f32 %v1626_v7, %v1611_v0  ;;  %v2229_v0 = vld [vmem:[%s2813_s7 + $0x78] sm:$0xff] }
0x23ef   : > { %1630 = vrot.lane.b32.xlu1 %v1628_v8, %s2680_s9 }
0x2461   : > { %v1631_v9 = vpop.permute.xlu1 %1630 }
0x2462   : > { %2220 = vst.msk [vmem:[%s2829_s14 + $0x60] sm:$0xff] %vm245_vm4, %v1631_v9  ;;  %2499 = vmatmul.mubr.msk.f32.vlgmr.msra.gmra.mxu1 %vm245_vm4, %v1631_v9 }
0x2463   : > { %2513 = vmatpush3.msra.mxu1 %v2648_v46  ;;  %2520 = vmatprep.mubr.msk.f32.mxu1 %vm2677_vm0, %v2676_v17 }
0x2464   : > { %2514 = vmatprep.subr.mxu1 %v2676_v17 }
0x2465   : > { %2515 = vmatpush3.msra.mxu1 %v2649_v47 }
0x2466   : > { %2516 = vmatprep.subr.mxu1 %v2676_v17 }
0x2467   : > { %2517 = vmatpush3.msra.mxu1 %v2650_v48 }
0x2468   : > { %2518 = vmatprep.subr.mxu1 %v2676_v17 }
0x2469   : > { %v2244_v11 = vld [vmem:[%s2829_s14 + $0x60] sm:$0xff]  ;;  %2519 = vmatpush3.msra.mxu1 %v2651_v51 }
0x246a   : > { %v1977_v12 = vsel %vm1958_vm5, %v2243_v10, %v2244_v11  ;;  %v1979_v13 = vsel %vm1958_vm5, %v2244_v11, %v2243_v10 }
0x246b   : > { %2245 = vst.msk [vmem:[%s2829_s14 + $0x18] sm:$0xff] %vm245_vm4, %v1977_v12  ;;  %2246 = vst.msk [vmem:[%s2829_s14 + $0x60] sm:$0xff] %vm245_vm4, %v1979_v13 }
0x2522   : > { %v1705_v15 = vpop.f32.mrf.mxu1 }
0x2523   : > { %v1709_v21 = vadd.f32 %v2221_v14, %v1705_v15 }
0x2524   : > { %v2500_v22 = vpop.f32.mrf.mxu1 }
0x2525   : > { %v1710_v23 = vmul.f32 %v1709_v21, %v2816_v25 }
0x2527   : > { %v2223_v24 = vmul.f32 -1.442695, %v1710_v23  ;;  %v1956_v23 = vld [vmem:[%s2829_s14] sm:$0xff] }
0x2529   : > { %2630 = vpow2.f32 %v2223_v24 }
0x2536   : > { %v2631_v17 = vpop.eup %2630 }
0x2537   : > { %v1714_v26 = vadd.f32 1.0, %v2631_v17 }
0x2539   : > { %2632 = vrcp.f32 %v1714_v26 }
0x2546   : > { %v2633_v27 = vpop.eup %2632 }
0x2547   : > { %v1717_v16 = vmul.f32 %v2633_v27, %v2816_v25 }
0x2549   : > { %v1718_v18 = vadd.f32 %v1717_v16, %v2820_v34 }
0x254b   : > { %1721 = vrot.lane.b32.xlu0 %v1718_v18, %s2679_s8  ;;  %v1719_v19 = vmul.f32 %v1718_v18, %v1622_v5 }
0x25bd   : > { %v1722_v28 = vpop.permute.xlu0 %1721 }
0x25be   : > { %v1724_v29 = vmul.f32 %v1722_v28, %v1718_v18  ;;  %v2078_v28 = vld [vmem:[%s2829_s14 + $0x18] sm:$0xff] (%p2726_p5) }
0x25bf   : > { %2079 = vst [vmem:[%s2013_s17 + $0x30] sm:$0xff] (%p2726_p5), %v2078_v28 }
0x25c0   : > { %1726 = vrot.lane.b32.xlu1 %v1724_v29, %s2680_s9  ;;  %v2080_v29 = vld [vmem:[%s2829_s14 + $0x20] sm:$0xff] (%p2726_p5) }
0x25c1   : > { %2081 = vst [vmem:[%s2013_s17 + $0x40] sm:$0xff] (%p2726_p5), %v2080_v29 }
0x2632   : > { %v1727_v30 = vpop.permute.xlu1 %1726 }
0x2633   : > { %v1729_v31 = vadd.f32 %v1727_v30, %v1719_v19  ;;  %v2082_v19 = vld [vmem:[%s2829_s14 + $0x28] sm:$0xff] (%p2726_p5)  ;;  %v2084_v30 = vld [vmem:[%s2829_s14 + $0x30] sm:$0xff] (%p2726_p5) }
0x2634   : > { %2083 = vst [vmem:[%s2013_s17 + $0x50] sm:$0xff] (%p2726_p5), %v2082_v19  ;;  %2085 = vst [vmem:[%s2013_s17 + $0x60] sm:$0xff] (%p2726_p5), %v2084_v30 }
0x2635   : > { %2634 = vtanh.f32 %v1729_v31 }
0x2642   : > { %v2635_v32 = vpop.eup %2634 }
0x2643   : > { %1732 = vrot.lane.b32.xlu0 %v2635_v32, %s2679_s8  ;;  %v2088_v32 = vld [vmem:[%s2829_s14 + $0x40] sm:$0xff] (%p2726_p5) }
0x2644   : > { %2089 = vst [vmem:[%s2013_s17 + $0x80] sm:$0xff] (%p2726_p5), %v2088_v32 }
0x26b5   : > { %v1733_v20 = vpop.permute.xlu0 %1732 }
0x26b6   : > { %v1735_v33 = vmul.f32 %v1733_v20, %v1718_v18  ;;  %v2090_v20 = vld [vmem:[%s2829_s14 + $0x48] sm:$0xff] (%p2726_p5) }
0x26b7   : > { %2091 = vst [vmem:[%s2013_s17 + $0x90] sm:$0xff] (%p2726_p5), %v2090_v20 }
0x26b8   : > { %1737 = vrot.lane.b32.xlu1 %v1735_v33, %s2680_s9  ;;  %v2092_v33 = vld [vmem:[%s2829_s14 + $0x50] sm:$0xff] (%p2726_p5) }
0x26b9   : > { %2093 = vst [vmem:[%s2013_s17 + $0xa0] sm:$0xff] (%p2726_p5), %v2092_v33 }
0x272a   : > { %v1738_v35 = vpop.permute.xlu1 %1737 }
0x272b   : > { %2224 = vst.msk [vmem:[%s2829_s14 + $0x68] sm:$0xff] %vm245_vm4, %v1738_v35  ;;  %2510 = vmatmul.mubr.msk.f32.vlgmr.msra.gmra.mxu0 %vm245_vm4, %v1738_v35  ;;  %v2094_v35 = vld [vmem:[%s2829_s14 + $0x58] sm:$0xff] (%p2726_p5) }
0x272c   : > { %2095 = vst [vmem:[%s2013_s17 + $0xb0] sm:$0xff] (%p2726_p5), %v2094_v35 }
0x2732   : > { %v2240_v37 = vld [vmem:[%s2829_s14 + $0x68] sm:$0xff] }
0x2733   : > { %v1971_v38 = vsel %vm1958_vm5, %v2239_v36, %v2240_v37  ;;  %v1973_v39 = vsel %vm1958_vm5, %v2240_v37, %v2239_v36  ;;  %v2096_v36 = vld [vmem:[%s2829_s14 + $0x60] sm:$0xff] (%p2726_p5) }
0x2734   : > { %2241 = vst.msk [vmem:[%s2829_s14 + $0x10] sm:$0xff] %vm245_vm4, %v1971_v38  ;;  %2242 = vst.msk [vmem:[%s2829_s14 + $0x68] sm:$0xff] %vm245_vm4, %v1973_v39 }
0x2735   : > { %2097 = vst [vmem:[%s2013_s17 + $0xc0] sm:$0xff] (%p2726_p5), %v2096_v36 }
0x273b   : > { %v2076_v18 = vld [vmem:[%s2829_s14 + $0x10] sm:$0xff] (%p2726_p5)  ;;  %v2098_v37 = vld [vmem:[%s2829_s14 + $0x68] sm:$0xff] (%p2726_p5) }
0x273c   : > { %2077 = vst [vmem:[%s2013_s17 + $0x20] sm:$0xff] (%p2726_p5), %v2076_v18  ;;  %2099 = vst [vmem:[%s2013_s17 + $0xd0] sm:$0xff] (%p2726_p5), %v2098_v37 }
0x27eb   : > { %v1812_v41 = vpop.f32.mrf.mxu0 }
0x27ec   : > { %v1816_v42 = vadd.f32 %v2225_v40, %v1812_v41 }
0x27ed   : > { %v2511_v43 = vpop.f32.mrf.mxu0 }
0x27ee   : > { %v1817_v44 = vmul.f32 %v1816_v42, %v2816_v25 }
0x27f0   : > { %v2227_v45 = vmul.f32 -1.442695, %v1817_v44 }
0x27f2   : > { %2636 = vpow2.f32 %v2227_v45 }
0x27ff   : > { %v2637_v46 = vpop.eup %2636 }
0x2800   : > { %v1821_v47 = vadd.f32 1.0, %v2637_v46 }
0x2802   : > { %2638 = vrcp.f32 %v1821_v47 }
0x280f   : > { %v2639_v48 = vpop.eup %2638 }
0x2810   : > { %v1824_v49 = vmul.f32 %v2639_v48, %v2816_v25 }
0x2812   : > { %v1825_v50 = vadd.f32 %v1824_v49, %v2820_v34 }
0x2814   : > { %1828 = vrot.lane.b32.xlu0 %v1825_v50, %s2679_s8  ;;  %v1826_v53 = vmul.f32 %v1825_v50, %v1729_v31  ;;  %v2086_v31 = vld [vmem:[%s2829_s14 + $0x38] sm:$0xff] (%p2726_p5) }
0x2815   : > { %2087 = vst [vmem:[%s2013_s17 + $0x70] sm:$0xff] (%p2726_p5), %v2086_v31 }
0x2886   : > { %v1829_v51 = vpop.permute.xlu0 %1828 }
0x2887   : > { %v1831_v52 = vmul.f32 %v1829_v51, %v1825_v50 }
0x2889   : > { %1833 = vrot.lane.b32.xlu1 %v1831_v52, %s2680_s9 }
0x28fb   : > { %v1834_v54 = vpop.permute.xlu1 %1833 }
0x28fc   : > { %v1836_v55 = vadd.f32 %v1834_v54, %v1826_v53 }
0x28fe   : > { %2640 = vtanh.f32 %v1836_v55 }
0x290b   : > { %v2641_v56 = vpop.eup %2640 }
0x290c   : > { %1839 = vrot.lane.b32.xlu0 %v2641_v56, %s2679_s8 }
0x297e   : > { %v1840_v57 = vpop.permute.xlu0 %1839 }
0x297f   : > { %v1842_v58 = vmul.f32 %v1840_v57, %v1825_v50 }
0x2981   : > { %1844 = vrot.lane.b32.xlu1 %v1842_v58, %s2680_s9 }
0x29f3   : > { %v1845_v59 = vpop.permute.xlu1 %1844 }
0x29f4   : > { %2228 = vst.msk [vmem:[%s2829_s14 + $0x70] sm:$0xff] %vm245_vm4, %v1845_v59  ;;  %2521 = vmatmul.mubr.msk.f32.vlgmr.msra.gmra.mxu1 %vm245_vm4, %v1845_v59 }
0x29fb   : > { %v2236_v61 = vld [vmem:[%s2829_s14 + $0x70] sm:$0xff] }
0x29fc   : > { %v1965_v62 = vsel %vm1958_vm5, %v2235_v60, %v2236_v61  ;;  %v1967_v63 = vsel %vm1958_vm5, %v2236_v61, %v2235_v60 }
0x29fd   : > { %2237 = vst.msk [vmem:[%s2829_s14 + $0x8] sm:$0xff] %vm245_vm4, %v1965_v62  ;;  %2238 = vst.msk [vmem:[%s2829_s14 + $0x70] sm:$0xff] %vm245_vm4, %v1967_v63 }
0x2a04   : > { %v2074_v16 = vld [vmem:[%s2829_s14 + $0x8] sm:$0xff] (%p2726_p5)  ;;  %v2100_v38 = vld [vmem:[%s2829_s14 + $0x70] sm:$0xff] (%p2726_p5) }
0x2a05   : > { %2075 = vst [vmem:[%s2013_s17 + $0x10] sm:$0xff] (%p2726_p5), %v2074_v16  ;;  %2101 = vst [vmem:[%s2013_s17 + $0xe0] sm:$0xff] (%p2726_p5), %v2100_v38 }
0x2ab4   : > { %v1919_v1 = vpop.f32.mrf.mxu1 }
0x2ab5   : > { %v1923_v2 = vadd.f32 %v2229_v0, %v1919_v1 }
0x2ab6   : > { %v2522_v3 = vpop.f32.mrf.mxu1 }
0x2ab7   : > { %v1924_v4 = vmul.f32 %v1923_v2, %v2816_v25 }
0x2ab9   : > { %v2231_v5 = vmul.f32 -1.442695, %v1924_v4 }
0x2abb   : > { %2642 = vpow2.f32 %v2231_v5 }
0x2ac8   : > { %v2643_v6 = vpop.eup %2642 }
0x2ac9   : > { %v1928_v7 = vadd.f32 1.0, %v2643_v6 }
0x2acb   : > { %2644 = vrcp.f32 %v1928_v7 }
0x2ad8   : > { %v2645_v8 = vpop.eup %2644 }
0x2ad9   : > { %v1931_v9 = vmul.f32 %v2645_v8, %v2816_v25 }
0x2adb   : > { %v1932_v10 = vadd.f32 %v1931_v9, %v2820_v34 }
0x2add   : > { %1935 = vrot.lane.b32.xlu0 %v1932_v10, %s2679_s8  ;;  %v1933_v13 = vmul.f32 %v1932_v10, %v1836_v55 }
0x2b4f   : > { %v1936_v11 = vpop.permute.xlu0 %1935 }
0x2b50   : > { %v1938_v12 = vmul.f32 %v1936_v11, %v1932_v10 }
0x2b52   : > { %1940 = vrot.lane.b32.xlu1 %v1938_v12, %s2680_s9 }
0x2bc4   : > { %v1941_v14 = vpop.permute.xlu1 %1940 }
0x2bc5   : > { %v1943_v15 = vadd.f32 %v1941_v14, %v1933_v13 }
0x2bc7   : > { %2646 = vtanh.f32 %v1943_v15 }
0x2bd4   : > { %v2647_v21 = vpop.eup %2646 }
0x2bd5   : > { %1946 = vrot.lane.b32.xlu0 %v2647_v21, %s2679_s8 }
0x2c47   : > { %v1947_v25 = vpop.permute.xlu0 %1946 }
0x2c48   : > { %v1949_v22 = vmul.f32 %v1947_v25, %v1932_v10 }
0x2c4a   : > { %1951 = vrot.lane.b32.xlu1 %v1949_v22, %s2680_s9 }
0x2cbc   : > { %v1952_v34 = vpop.permute.xlu1 %1951 }
0x2cbd   : > { %2232 = vst.msk [vmem:[%s2829_s14 + $0x78] sm:$0xff] %vm245_vm4, %v1952_v34 }
0x2cc2   : > { %2011 = sbr.rel (!%p2726_p5) target bundleno = 11471 (0x2ccf), region = 70 }
0x2cc4   : > { %v2233_v24 = vld [vmem:[%s2829_s14 + $0x78] sm:$0xff] }
0x2cc5   : > { %v1959_v17 = vsel %vm1958_vm5, %v1956_v23, %v2233_v24  ;;  %v1961_v26 = vsel %vm1958_vm5, %v2233_v24, %v1956_v23 }
0x2cc6   : > { %1960 = vst.msk [vmem:[%s2829_s14] sm:$0xff] %vm245_vm4, %v1959_v17  ;;  %2234 = vst.msk [vmem:[%s2829_s14 + $0x78] sm:$0xff] %vm245_vm4, %v1961_v26 }
0x2ccd   : > { %v2072_v27 = vld [vmem:[%s2829_s14] sm:$0xff]  ;;  %v2102_v39 = vld [vmem:[%s2829_s14 + $0x78] sm:$0xff] }
0x2cce   : > { %2073 = vst [vmem:[%s2013_s17] sm:$0xff] %v2072_v27  ;;  %2103 = vst [vmem:[%s2013_s17 + $0xf0] sm:$0xff] %v2102_v39 }
0x2ccf PF: > { %p9_p10 = scmp.ge.s32.totalorder %s2713_s13, 4   ;;  %s3231_s9 = smov %s2670_s10 }
0x2cd0   : > { %s3232_s10 = smov %s2724_s16  ;;  %s3233_s11 = smov %s2713_s13 }
0x2cd1   :  { %11 = sbr.rel (!%p9_p10) target bundleno = 2 (0x2), region = 169 }

</bundles_post_ra>
